<compile_context>
chip_gen: v6e
topology: v6e:2x2x1
jax: 0.10.0
libtpu: 0.0.40
codegen_flags: <defaults>
</compile_context>

<pallas_src>
import jax
import jax.numpy as jnp
from jax.experimental import pallas as pl
from jax.experimental.pallas import tpu as pltpu


def _round_up(a, b):
    return ((a + b - 1) // b) * b


def _make_kernel(HW, thw, n_hw):
    need_mask = (HW % thw) != 0  # only the last spatial chunk can be partial

    def kernel(x_ref, wc_ref, bc_ref, out_ref, acc_ref):
        # x_ref:   (tn, C, thw)  native dtype (NCHW rows, spatial on lanes)
        # wc_ref:  (C,  Kp)      collapsed f2∘f1 weight (bf16), pre-scaled by 1/HW
        # bc_ref:  (1,  Kp)      collapsed bias, f32
        # out_ref: (tn, Kp)      x.dtype
        # acc_ref: (tn, C)       f32 pooling accumulator (VMEM scratch)
        hw = pl.program_id(1)

        @pl.when(hw == 0)
        def _init():
            acc_ref[...] = jnp.zeros_like(acc_ref)

        x = x_ref[...]
        if need_mask:
            lane = jax.lax.broadcasted_iota(jnp.int32, x.shape, dimension=2)
            valid = (hw * thw + lane) < HW
            part = jnp.sum(jnp.where(valid, x, jnp.zeros_like(x)),
                           axis=-1, dtype=jnp.float32)          # (tn, C)
        else:
            # Lane-axis reduce (XLU) with f32 accumulate; no f32 copy of the tile.
            part = jnp.sum(x, axis=-1, dtype=jnp.float32)        # (tn, C)
        acc_ref[...] += part

        @pl.when(hw == n_hw - 1)
        def _finish():
            pooled = acc_ref[...].astype(wc_ref.dtype)           # bf16 for the MXU
            y = jnp.dot(pooled, wc_ref[...],
                        preferred_element_type=jnp.float32) + bc_ref[...]
            out_ref[...] = y.astype(out_ref.dtype)

    return kernel


def mlp_forward(x, w1, b1, w2, b2, *,
                x_block_bytes=None, vmem_cap_bytes=None,
                mxu_dtype=jnp.bfloat16):
    """x: (N, C, H, W); w1: (C, C); b1: (C,); w2: (K, C); b2: (K,)."""
    N, C, H, W = x.shape
    K = w2.shape[0]
    HW = H * W
    f32 = jnp.float32
    hp = jax.lax.Precision.HIGHEST
    x_itemsize = x.dtype.itemsize

    # ---- generation gating (v7x: 64 MiB VMEM/TC; v5e/v6e: 128 MiB) ----
    try:
        info = pltpu.get_tpu_info()
        vmem_phys = int(getattr(info, "vmem_capacity_bytes", 64 << 20))
    except Exception:  # pragma: no cover - conservative fallback
        vmem_phys = 64 << 20
    small_vmem = vmem_phys <= (64 << 20)
    if vmem_cap_bytes is None:
        vmem_cap_bytes = (48 << 20) if small_vmem else (96 << 20)
    if x_block_bytes is None:
        x_block_bytes = (8 << 20) if small_vmem else (28 << 20)

    # ---- collapse f1 and f2 (exact: no nonlinearity between them) ----
    w1t = jnp.transpose(w1).astype(f32)                      # (C, C)
    w2t = jnp.transpose(w2).astype(f32)                      # (C, K)
    wc = jnp.dot(w1t, w2t, precision=hp) / HW                # fold GAP's 1/(H*W)
    bc = jnp.dot(b1.astype(f32), w2t, precision=hp) + b2.astype(f32)

    # ---- pad num_class to a lane-dense multiple of 128 (unmasked stores) ----
    Kp = max(128, _round_up(K, 128))
    if Kp != K:
        wc = jnp.pad(wc, ((0, 0), (0, Kp - K)))
        bc = jnp.pad(bc, (0, Kp - K))
    wc = wc.astype(mxu_dtype)            # single-pass MXU, half the weight VMEM
    bc = bc.reshape(1, Kp).astype(f32)

    # ---- x stays NCHW: free reshape to (N, C, HW); spatial on lanes ----
    x3 = x.reshape(N, C, HW)
    row_bytes = C * HW * x_itemsize      # one batch row of x

    # sublane packing for the batch (output) axis, per dtype
    if x_itemsize >= 4:
        sub = 8
    elif x_itemsize == 2:
        sub = 16
    else:
        sub = 32

    # ---- choose batch tile (tn) and spatial tile (thw) ----
    rows_per_buf = x_block_bytes // max(1, row_bytes)
    if rows_per_buf >= min(N, sub):
        # Full (C, HW) rows fit: tile over batch only.
        thw = HW
        nb = max(1, pl.cdiv(N, max(1, rows_per_buf)))
        if N >= 2 * sub:
            nb = max(nb, 2)              # >= 2 blocks so both v7x TCs stream x
        if nb > 1 and nb % 2:
            nb += 1                      # even block count for megacore balance
        tn = pl.cdiv(N, nb)
        tn = N if tn >= N else max(sub, _round_up(tn, sub))
    else:
        # Large HW*C: a sublane-aligned batch tile of full rows would blow VMEM.
        # Tile the spatial axis and accumulate the pool in f32 scratch instead.
        tn = N if N <= sub else sub
        if HW <= 128:
            thw = HW
            # TODO(synk): if C alone is too large for VMEM here, the contraction
            # axis C would also need tiling; not implemented.
        else:
            budget_thw = x_block_bytes // max(1, tn * C * x_itemsize)
            thw = max(128, (budget_thw // 128) * 128)
            thw = min(thw, HW)           # == HW -> effectively no spatial tiling
    n_batch = pl.cdiv(N, tn)
    n_hw = pl.cdiv(HW, thw)

    out_dtype = x.dtype                  # tiny writeback; keep caller dtype

    # ---- VMEM budget (single conservative pass, no double counting) ----
    est = (2 * tn * C * thw * x_itemsize          # x double buffer
           + 2 * C * Kp * wc.dtype.itemsize       # resident weight
           + 2 * Kp * 4                           # bias
           + 2 * tn * Kp * out_dtype.itemsize     # output double buffer
           + tn * C * 4)                          # f32 pooling accumulator
    vmem_limit = int(min(max(est + (4 << 20), 16 << 20), vmem_cap_bytes))

    out = pl.pallas_call(
        _make_kernel(HW, thw, n_hw),
        out_shape=jax.ShapeDtypeStruct((N, Kp), out_dtype),
        grid=(n_batch, n_hw),
        in_specs=[
            pl.BlockSpec((tn, C, thw), lambda i, hw: (i, 0, hw)),  # batch/spatial tile of x
            pl.BlockSpec((C, Kp), lambda i, hw: (0, 0)),           # resident weight
            pl.BlockSpec((1, Kp), lambda i, hw: (0, 0)),           # resident bias
        ],
        out_specs=pl.BlockSpec((tn, Kp), lambda i, hw: (i, 0)),
        scratch_shapes=[pltpu.VMEM((tn, C), jnp.float32)],
        compiler_params=pltpu.CompilerParams(
            dimension_semantics=("parallel", "arbitrary"),
            vmem_limit_bytes=vmem_limit,
        ),
    )(x3, wc, bc)

    return out[:, :K]


if __name__ == "__main__":
    # Module defaults: input_channels=512, num_class=128; small batch/spatial.
    N, C, H, W, K = 4, 512, 8, 8, 128

    key = jax.random.PRNGKey(0)
    kx, kw1, kb1, kw2, kb2 = jax.random.split(key, 5)

    x = jax.random.normal(kx, (N, C, H, W), dtype=jnp.float32)
    # Deterministic synthetic parameters (not loaded from a checkpoint).
    w1 = jax.random.normal(kw1, (C, C), dtype=jnp.float32) * 0.02   # f1.weight (out, in)
    b1 = jax.random.normal(kb1, (C,), dtype=jnp.float32) * 0.02     # f1.bias
    w2 = jax.random.normal(kw2, (K, C), dtype=jnp.float32) * 0.02   # f2.weight (out, in)
    b2 = jax.random.normal(kb2, (K,), dtype=jnp.float32) * 0.02     # f2.bias

    out = jax.block_until_ready(mlp_forward(x, w1, b1, w2, b2))

    # Reference: same math as the PyTorch module, full-precision matmuls.
    hp = jax.lax.Precision.HIGHEST
    pooled = jnp.mean(x, axis=(2, 3))                                # gap + squeeze
    ref = jnp.dot(pooled, w1.T, precision=hp) + b1
    ref = jnp.dot(ref, w2.T, precision=hp) + b2

    assert out.shape == (N, K)
    err = float(jnp.max(jnp.abs(out - ref)))
    # bf16 collapsed-weight MXU matmul (f32 accumulate) -> slightly looser tol.
    assert jnp.allclose(out, ref, atol=2e-3, rtol=1e-2), (
        f"mismatch vs reference, max abs err = {err}")

    print("KERNEL_OK")
</pallas_src>

<mosaic_0001>
module attributes {stable_mosaic.version = 11 : i64} {
  func.func @kernel(%arg0: i32, %arg1: i32, %arg2: memref<4x512x64xf32, #tpu.memory_space<vmem>>, %arg3: memref<512x128xbf16, #tpu.memory_space<vmem>>, %arg4: memref<1x128xf32, #tpu.memory_space<vmem>>, %arg5: memref<4x128xf32, #tpu.memory_space<vmem>>, %arg6: memref<4x512xf32, #tpu.memory_space<vmem>>) attributes {dimension_semantics = [#tpu.dimension_semantics<parallel>, #tpu.dimension_semantics<arbitrary>], iteration_bounds = array<i64: 1, 1>, scalar_prefetch = 0 : i64, scratch_operands = 1 : i64, tpu.core_type = #tpu.core_type<tc>, window_params = [{transform_indices = @transform_0, window_bounds = array<i64: 4, 512, 64>}, {pipeline_mode = #tpu.pipeline_mode<synchronous>, transform_indices = @transform_1, window_bounds = array<i64: 512, 128>}, {pipeline_mode = #tpu.pipeline_mode<synchronous>, transform_indices = @transform_2, window_bounds = array<i64: 1, 128>}, {transform_indices = @transform_3, window_bounds = array<i64: 4, 128>}]} {
    %c0_i32 = arith.constant 0 : i32
    %0 = arith.cmpi eq, %arg1, %c0_i32 : i32
    %1 = arith.extui %0 : i1 to i32
    %c0_i32_0 = arith.constant 0 : i32
    %2 = arith.cmpi ne, %1, %c0_i32_0 : i32
    scf.if %2 {
      %cst_9 = arith.constant 0.000000e+00 : f32
      %11 = vector.broadcast %cst_9 : f32 to vector<4x512xf32>
      %c0_10 = arith.constant 0 : index
      %c0_11 = arith.constant 0 : index
      %12 = vector.load %arg6[%c0_10, %c0_11] : memref<4x512xf32, #tpu.memory_space<vmem>>, vector<4x512xf32>
      tpu.vector_store %arg6[%c0_10, %c0_11], %11 {strides = array<i32>} : memref<4x512xf32, #tpu.memory_space<vmem>>, vector<4x512xf32>,
    } else {
    }
    %c0 = arith.constant 0 : index
    %c0_1 = arith.constant 0 : index
    %c0_2 = arith.constant 0 : index
    %3 = vector.load %arg2[%c0, %c0_1, %c0_2] : memref<4x512x64xf32, #tpu.memory_space<vmem>>, vector<4x512x64xf32>
    %cst = arith.constant dense<0.000000e+00> : vector<4x512xf32>
    %4 = vector.multi_reduction <add>, %3, %cst [2] : vector<4x512x64xf32> to vector<4x512xf32>
    %c0_3 = arith.constant 0 : index
    %c0_4 = arith.constant 0 : index
    %5 = vector.load %arg6[%c0_3, %c0_4] : memref<4x512xf32, #tpu.memory_space<vmem>>, vector<4x512xf32>
    %6 = arith.addf %5, %4 : vector<4x512xf32>
    %c0_5 = arith.constant 0 : index
    %c0_6 = arith.constant 0 : index
    %7 = vector.load %arg6[%c0_5, %c0_6] : memref<4x512xf32, #tpu.memory_space<vmem>>, vector<4x512xf32>
    tpu.vector_store %arg6[%c0_5, %c0_6], %6 {strides = array<i32>} : memref<4x512xf32, #tpu.memory_space<vmem>>, vector<4x512xf32>,
    %c0_i32_7 = arith.constant 0 : i32
    %8 = arith.cmpi eq, %arg1, %c0_i32_7 : i32
    %9 = arith.extui %8 : i1 to i32
    %c0_i32_8 = arith.constant 0 : i32
    %10 = arith.cmpi ne, %9, %c0_i32_8 : i32
    scf.if %10 {
      %c0_9 = arith.constant 0 : index
      %c0_10 = arith.constant 0 : index
      %11 = vector.load %arg6[%c0_9, %c0_10] : memref<4x512xf32, #tpu.memory_space<vmem>>, vector<4x512xf32>
      %12 = arith.truncf %11 : vector<4x512xf32> to vector<4x512xbf16>
      %c0_11 = arith.constant 0 : index
      %c0_12 = arith.constant 0 : index
      %13 = vector.load %arg3[%c0_11, %c0_12] : memref<512x128xbf16, #tpu.memory_space<vmem>>, vector<512x128xbf16>
      %cst_13 = arith.constant dense<0.000000e+00> : vector<4x128xf32>
      %14 = tpu.matmul %12, %13, %cst_13 {dimension_numbers = #tpu.dot_dimension_numbers<[1], [0], [0], [1], [0, 0, 1, 1], [], []>} : vector<4x512xbf16>, vector<512x128xbf16>, vector<4x128xf32> -> vector<4x128xf32>
      %c0_14 = arith.constant 0 : index
      %c0_15 = arith.constant 0 : index
      %15 = vector.load %arg4[%c0_14, %c0_15] : memref<1x128xf32, #tpu.memory_space<vmem>>, vector<1x128xf32>
      %16 = vector.broadcast %15 : vector<1x128xf32> to vector<4x128xf32>
      %17 = arith.addf %14, %16 : vector<4x128xf32>
      %c0_16 = arith.constant 0 : index
      %c0_17 = arith.constant 0 : index
      %18 = vector.load %arg5[%c0_16, %c0_17] : memref<4x128xf32, #tpu.memory_space<vmem>>, vector<4x128xf32>
      tpu.vector_store %arg5[%c0_16, %c0_17], %17 {strides = array<i32>} : memref<4x128xf32, #tpu.memory_space<vmem>>, vector<4x128xf32>,
    } else {
    }
    return
  }
  func.func @transform_0(%arg0: i32, %arg1: i32) -> (i32, i32, i32) {
    %c0_i32 = arith.constant 0 : i32
    %c0_i32_0 = arith.constant 0 : i32
    return %arg0, %c0_i32, %arg1 : i32, i32, i32
  }
  func.func @transform_1(%arg0: i32, %arg1: i32) -> (i32, i32) {
    %c0_i32 = arith.constant 0 : i32
    %c0_i32_0 = arith.constant 0 : i32
    %c0_i32_1 = arith.constant 0 : i32
    return %c0_i32, %c0_i32_0 : i32, i32
  }
  func.func @transform_2(%arg0: i32, %arg1: i32) -> (i32, i32) {
    %c0_i32 = arith.constant 0 : i32
    %c0_i32_0 = arith.constant 0 : i32
    %c0_i32_1 = arith.constant 0 : i32
    return %c0_i32, %c0_i32_0 : i32, i32
  }
  func.func @transform_3(%arg0: i32, %arg1: i32) -> (i32, i32) {
    %c0_i32 = arith.constant 0 : i32
    %c0_i32_0 = arith.constant 0 : i32
    return %arg0, %c0_i32 : i32, i32
  }
}

</mosaic_0001>

<bundles_post_ra>
// kernel: tpu_custom_call.1
= control target key start
LH: loop header
LB: loop body
LE: loop exit
PB: predicated region body
PF: predicated region fallthrough
CT: control target
= control target key end

     0   :  { %vm278_vm0 = vcmask 523264   ;;  %s11668_s0 = inlined_call_operand.vmem [shape: f32[4,512,64], index: 0, kind: input, shape index: {}]   ;;  %s11669_s1 = inlined_call_operand.vmem [shape: bf16[512,128], index: 1, kind: input, shape index: {}]   ;;  %s11670_s2 = inlined_call_operand.vmem [shape: f32[1,128], index: 2, kind: input, shape index: {}]   ;;  %s11671_s3 = inlined_call_operand.hbm [shape: f32[4,128], index: 3, kind: output, shape index: {}]  }
   0x1   :  { %v24_v0 = vld [vmem:[%s11668_s0 + $0x10] sm:$0xff]  ;;  %v22_v1 = vld [vmem:[%s11668_s0] sm:$0xff]  ;;  %v25_v2 = vld [vmem:[%s11668_s0 + $0x18] sm:$0xff] }
   0x2   :  { %v285_v3 = vsel %vm278_vm0, %v24_v0, 0.0  ;;  %v279_v4 = vsel %vm278_vm0, %v22_v1, 0.0  ;;  %v23_v5 = vld [vmem:[%s11668_s0 + $0x8] sm:$0xff]  ;;  %v288_v6 = vsel %vm278_vm0, %v25_v2, 0.0  ;;  %v26_v9 = vld [vmem:[%s11668_s0 + $0x20] sm:$0xff]  ;;  %v29_v12 = vld [vmem:[%s11668_s0 + $0x38] sm:$0xff] }
   0x3   :  { %286 = vadd.xlane.f32.xlu1 %v285_v3  ;;  %280 = vadd.xlane.f32.xlu0 %v279_v4  ;;  %v282_v7 = vsel %vm278_vm0, %v23_v5, 0.0  ;;  %v27_v8 = vld [vmem:[%s11668_s0 + $0x28] sm:$0xff]  ;;  %v291_v11 = vsel %vm278_vm0, %v26_v9, 0.0  ;;  %v28_v13 = vld [vmem:[%s11668_s0 + $0x30] sm:$0xff]  ;;  %v300_v14 = vsel %vm278_vm0, %v29_v12, 0.0  ;;  %v30_v17 = vld [vmem:[%s11668_s0 + $0x40] sm:$0xff] }
   0x4   :  { %v294_v10 = vsel %vm278_vm0, %v27_v8, 0.0  ;;  %v297_v15 = vsel %vm278_vm0, %v28_v13, 0.0  ;;  %v31_v16 = vld [vmem:[%s11668_s0 + $0x48] sm:$0xff]  ;;  %v303_v19 = vsel %vm278_vm0, %v30_v17, 0.0  ;;  %v33_v20 = vld [vmem:[%s11668_s0 + $0x58] sm:$0xff]  ;;  %v32_v21 = vld [vmem:[%s11668_s0 + $0x50] sm:$0xff] }
   0x5   :  { %v306_v18 = vsel %vm278_vm0, %v31_v16, 0.0  ;;  %v312_v22 = vsel %vm278_vm0, %v33_v20, 0.0  ;;  %v309_v23 = vsel %vm278_vm0, %v32_v21, 0.0  ;;  %v35_v24 = vld [vmem:[%s11668_s0 + $0x68] sm:$0xff]  ;;  %v34_v25 = vld [vmem:[%s11668_s0 + $0x60] sm:$0xff]  ;;  %v37_v28 = vld [vmem:[%s11668_s0 + $0x78] sm:$0xff] }
   0x6   :  { %v318_v26 = vsel %vm278_vm0, %v35_v24, 0.0  ;;  %v315_v27 = vsel %vm278_vm0, %v34_v25, 0.0  ;;  %v36_v29 = vld [vmem:[%s11668_s0 + $0x70] sm:$0xff]  ;;  %v39_v30 = vld [vmem:[%s11668_s0 + $0x88] sm:$0xff]  ;;  %v38_v31 = vld [vmem:[%s11668_s0 + $0x80] sm:$0xff]  ;;  %v324_v32 = vsel %vm278_vm0, %v37_v28, 0.0 }
   0x7   :  { %289 = vadd.xlane.f32.xlu1 %v288_v6  ;;  %283 = vadd.xlane.f32.xlu0 %v282_v7  ;;  %v321_v33 = vsel %vm278_vm0, %v36_v29, 0.0  ;;  %v330_v34 = vsel %vm278_vm0, %v39_v30, 0.0  ;;  %v41_v35 = vld [vmem:[%s11668_s0 + $0x98] sm:$0xff]  ;;  %v327_v36 = vsel %vm278_vm0, %v38_v31, 0.0  ;;  %v40_v37 = vld [vmem:[%s11668_s0 + $0x90] sm:$0xff]  ;;  %v43_v39 = vld [vmem:[%s11668_s0 + $0xa8] sm:$0xff] }
   0x8   :  { %v336_v38 = vsel %vm278_vm0, %v41_v35, 0.0  ;;  %v333_v40 = vsel %vm278_vm0, %v40_v37, 0.0  ;;  %v42_v41 = vld [vmem:[%s11668_s0 + $0xa0] sm:$0xff]  ;;  %v342_v42 = vsel %vm278_vm0, %v43_v39, 0.0  ;;  %v45_v43 = vld [vmem:[%s11668_s0 + $0xb8] sm:$0xff]  ;;  %v44_v45 = vld [vmem:[%s11668_s0 + $0xb0] sm:$0xff] }
   0x9   :  { %v339_v44 = vsel %vm278_vm0, %v42_v41, 0.0  ;;  %v348_v46 = vsel %vm278_vm0, %v45_v43, 0.0  ;;  %v47_v47 = vld [vmem:[%s11668_s0 + $0xc8] sm:$0xff]  ;;  %v345_v48 = vsel %vm278_vm0, %v44_v45, 0.0  ;;  %v46_v49 = vld [vmem:[%s11668_s0 + $0xc0] sm:$0xff]  ;;  %v49_v51 = vld [vmem:[%s11668_s0 + $0xd8] sm:$0xff] }
   0xa   :  { %v354_v50 = vsel %vm278_vm0, %v47_v47, 0.0  ;;  %v351_v52 = vsel %vm278_vm0, %v46_v49, 0.0  ;;  %v48_v53 = vld [vmem:[%s11668_s0 + $0xd0] sm:$0xff]  ;;  %v360_v54 = vsel %vm278_vm0, %v49_v51, 0.0  ;;  %v51_v55 = vld [vmem:[%s11668_s0 + $0xe8] sm:$0xff]  ;;  %v50_v57 = vld [vmem:[%s11668_s0 + $0xe0] sm:$0xff] }
   0xb   :  { %295 = vadd.xlane.f32.xlu1 %v294_v10  ;;  %292 = vadd.xlane.f32.xlu0 %v291_v11  ;;  %v357_v56 = vsel %vm278_vm0, %v48_v53, 0.0  ;;  %v366_v58 = vsel %vm278_vm0, %v51_v55, 0.0  ;;  %v363_v59 = vsel %vm278_vm0, %v50_v57, 0.0  ;;  %v53_v60 = vld [vmem:[%s11668_s0 + $0xf8] sm:$0xff]  ;;  %v52_v61 = vld [vmem:[%s11668_s0 + $0xf0] sm:$0xff] }
   0xf   :  { %301 = vadd.xlane.f32.xlu1 %v300_v14  ;;  %298 = vadd.xlane.f32.xlu0 %v297_v15 }
  0x13   :  { %307 = vadd.xlane.f32.xlu1 %v306_v18  ;;  %304 = vadd.xlane.f32.xlu0 %v303_v19 }
  0x17   :  { %313 = vadd.xlane.f32.xlu1 %v312_v22  ;;  %310 = vadd.xlane.f32.xlu0 %v309_v23 }
  0x1b   :  { %319 = vadd.xlane.f32.xlu1 %v318_v26  ;;  %316 = vadd.xlane.f32.xlu0 %v315_v27 }
  0x1f   :  { %325 = vadd.xlane.f32.xlu1 %v324_v32  ;;  %322 = vadd.xlane.f32.xlu0 %v321_v33 }
  0x23   :  { %331 = vadd.xlane.f32.xlu1 %v330_v34  ;;  %328 = vadd.xlane.f32.xlu0 %v327_v36 }
  0x27   :  { %337 = vadd.xlane.f32.xlu1 %v336_v38  ;;  %334 = vadd.xlane.f32.xlu0 %v333_v40 }
  0x2b   :  { %343 = vadd.xlane.f32.xlu1 %v342_v42  ;;  %340 = vadd.xlane.f32.xlu0 %v339_v44 }
  0x2f   :  { %349 = vadd.xlane.f32.xlu1 %v348_v46  ;;  %346 = vadd.xlane.f32.xlu0 %v345_v48 }
  0x33   :  { %355 = vadd.xlane.f32.xlu1 %v354_v50  ;;  %352 = vadd.xlane.f32.xlu0 %v351_v52 }
  0x37   :  { %361 = vadd.xlane.f32.xlu1 %v360_v54  ;;  %358 = vadd.xlane.f32.xlu0 %v357_v56 }
  0x38   :  { %8 = vsyncpa [#allocation4], 0  ;;  %v372_v62 = vsel %vm278_vm0, %v53_v60, 0.0  ;;  %v369_v63 = vsel %vm278_vm0, %v52_v61, 0.0  ;;  %v55_v0 = vld [vmem:[%s11668_s0 + $0x108] sm:$0xff]  ;;  %v54_v1 = vld [vmem:[%s11668_s0 + $0x100] sm:$0xff] }
  0x39   :  { %v378_v2 = vsel %vm278_vm0, %v55_v0, 0.0  ;;  %v375_v3 = vsel %vm278_vm0, %v54_v1, 0.0  ;;  %v57_v4 = vld [vmem:[%s11668_s0 + $0x118] sm:$0xff]  ;;  %v56_v5 = vld [vmem:[%s11668_s0 + $0x110] sm:$0xff]  ;;  %v59_v8 = vld [vmem:[%s11668_s0 + $0x128] sm:$0xff]  ;;  %vm5924_vm1 = vcmask 130112  }
  0x3a   :  { %v384_v6 = vsel %vm278_vm0, %v57_v4, 0.0  ;;  %v381_v7 = vsel %vm278_vm0, %v56_v5, 0.0  ;;  %v58_v9 = vld [vmem:[%s11668_s0 + $0x120] sm:$0xff]  ;;  %v390_v10 = vsel %vm278_vm0, %v59_v8, 0.0  ;;  %v61_v12 = vld [vmem:[%s11668_s0 + $0x138] sm:$0xff]  ;;  %v60_v13 = vld [vmem:[%s11668_s0 + $0x130] sm:$0xff] }
  0x3b   :  { %367 = vadd.xlane.f32.xlu1 %v366_v58  ;;  %364 = vadd.xlane.f32.xlu0 %v363_v59  ;;  %v387_v11 = vsel %vm278_vm0, %v58_v9, 0.0  ;;  %v396_v14 = vsel %vm278_vm0, %v61_v12, 0.0  ;;  %v393_v15 = vsel %vm278_vm0, %v60_v13, 0.0  ;;  %v63_v16 = vld [vmem:[%s11668_s0 + $0x148] sm:$0xff]  ;;  %v62_v17 = vld [vmem:[%s11668_s0 + $0x140] sm:$0xff]  ;;  %v65_v20 = vld [vmem:[%s11668_s0 + $0x158] sm:$0xff] }
  0x3c   :  { %v402_v18 = vsel %vm278_vm0, %v63_v16, 0.0  ;;  %v399_v19 = vsel %vm278_vm0, %v62_v17, 0.0  ;;  %v64_v21 = vld [vmem:[%s11668_s0 + $0x150] sm:$0xff]  ;;  %v408_v22 = vsel %vm278_vm0, %v65_v20, 0.0  ;;  %v67_v24 = vld [vmem:[%s11668_s0 + $0x168] sm:$0xff]  ;;  %v66_v25 = vld [vmem:[%s11668_s0 + $0x160] sm:$0xff] }
  0x3d   :  { %v405_v23 = vsel %vm278_vm0, %v64_v21, 0.0  ;;  %v414_v26 = vsel %vm278_vm0, %v67_v24, 0.0  ;;  %v411_v27 = vsel %vm278_vm0, %v66_v25, 0.0  ;;  %v69_v28 = vld [vmem:[%s11668_s0 + $0x178] sm:$0xff]  ;;  %v68_v29 = vld [vmem:[%s11668_s0 + $0x170] sm:$0xff]  ;;  %v71_v32 = vld [vmem:[%s11668_s0 + $0x188] sm:$0xff] }
  0x3e   :  { %v420_v30 = vsel %vm278_vm0, %v69_v28, 0.0  ;;  %v417_v31 = vsel %vm278_vm0, %v68_v29, 0.0  ;;  %v70_v33 = vld [vmem:[%s11668_s0 + $0x180] sm:$0xff]  ;;  %v426_v34 = vsel %vm278_vm0, %v71_v32, 0.0  ;;  %v73_v36 = vld [vmem:[%s11668_s0 + $0x198] sm:$0xff]  ;;  %v72_v37 = vld [vmem:[%s11668_s0 + $0x190] sm:$0xff] }
  0x3f   :  { %373 = vadd.xlane.f32.xlu1 %v372_v62  ;;  %370 = vadd.xlane.f32.xlu0 %v369_v63  ;;  %v423_v35 = vsel %vm278_vm0, %v70_v33, 0.0  ;;  %v432_v38 = vsel %vm278_vm0, %v73_v36, 0.0  ;;  %v429_v39 = vsel %vm278_vm0, %v72_v37, 0.0  ;;  %v75_v40 = vld [vmem:[%s11668_s0 + $0x1a8] sm:$0xff]  ;;  %v74_v41 = vld [vmem:[%s11668_s0 + $0x1a0] sm:$0xff]  ;;  %v77_v44 = vld [vmem:[%s11668_s0 + $0x1b8] sm:$0xff] }
  0x40   :  { %v438_v42 = vsel %vm278_vm0, %v75_v40, 0.0  ;;  %v435_v43 = vsel %vm278_vm0, %v74_v41, 0.0  ;;  %v76_v45 = vld [vmem:[%s11668_s0 + $0x1b0] sm:$0xff]  ;;  %v444_v46 = vsel %vm278_vm0, %v77_v44, 0.0  ;;  %v79_v48 = vld [vmem:[%s11668_s0 + $0x1c8] sm:$0xff]  ;;  %v78_v49 = vld [vmem:[%s11668_s0 + $0x1c0] sm:$0xff] }
  0x41   :  { %v441_v47 = vsel %vm278_vm0, %v76_v45, 0.0  ;;  %v450_v50 = vsel %vm278_vm0, %v79_v48, 0.0  ;;  %v447_v51 = vsel %vm278_vm0, %v78_v49, 0.0  ;;  %v81_v52 = vld [vmem:[%s11668_s0 + $0x1d8] sm:$0xff]  ;;  %v80_v53 = vld [vmem:[%s11668_s0 + $0x1d0] sm:$0xff]  ;;  %v83_v56 = vld [vmem:[%s11668_s0 + $0x1e8] sm:$0xff] }
  0x42   :  { %v456_v54 = vsel %vm278_vm0, %v81_v52, 0.0  ;;  %v453_v55 = vsel %vm278_vm0, %v80_v53, 0.0  ;;  %v82_v57 = vld [vmem:[%s11668_s0 + $0x1e0] sm:$0xff]  ;;  %v462_v58 = vsel %vm278_vm0, %v83_v56, 0.0  ;;  %v85_v60 = vld [vmem:[%s11668_s0 + $0x1f8] sm:$0xff]  ;;  %v84_v61 = vld [vmem:[%s11668_s0 + $0x1f0] sm:$0xff] }
  0x43   :  { %379 = vadd.xlane.f32.xlu1 %v378_v2  ;;  %376 = vadd.xlane.f32.xlu0 %v375_v3  ;;  %v459_v59 = vsel %vm278_vm0, %v82_v57, 0.0  ;;  %v468_v62 = vsel %vm278_vm0, %v85_v60, 0.0  ;;  %v465_v63 = vsel %vm278_vm0, %v84_v61, 0.0  ;;  %v87_v0 = vld [vmem:[%s11668_s0 + $0x208] sm:$0xff]  ;;  %v86_v1 = vld [vmem:[%s11668_s0 + $0x200] sm:$0xff]  ;;  %v89_v4 = vld [vmem:[%s11668_s0 + $0x218] sm:$0xff] }
  0x44   :  { %v474_v2 = vsel %vm278_vm0, %v87_v0, 0.0  ;;  %v471_v3 = vsel %vm278_vm0, %v86_v1, 0.0  ;;  %v88_v5 = vld [vmem:[%s11668_s0 + $0x210] sm:$0xff]  ;;  %v91_v8 = vld [vmem:[%s11668_s0 + $0x228] sm:$0xff]  ;;  %v90_v9 = vld [vmem:[%s11668_s0 + $0x220] sm:$0xff]  ;;  %vm5931_vm2 = vcmask 195712  }
  0x45   :  { %v93_v12 = vld [vmem:[%s11668_s0 + $0x238] sm:$0xff]  ;;  %v92_v13 = vld [vmem:[%s11668_s0 + $0x230] sm:$0xff]  ;;  %vm5938_vm3 = vcmask 261312   ;;  %vm5945_vm4 = vcmask 326912   ;;  %vm5952_vm5 = vcmask 392512   ;;  %vm5959_vm6 = vcmask 458112  }
  0x46   :  { %v489_v16 = vsel %vm278_vm0, %v92_v13, 0.0  ;;  %v97_v24 = vld [vmem:[%s11668_s0 + $0x258] sm:$0xff]  ;;  %v96_v25 = vld [vmem:[%s11668_s0 + $0x250] sm:$0xff]  ;;  %vm5966_vm7 = vcmask 523712   ;;  %vm5973_vm8 = vcmask 589312   ;;  %vm5980_vm9 = vcmask 654912  }
  0x47   :  { %385 = vadd.xlane.f32.xlu1 %v384_v6  ;;  %382 = vadd.xlane.f32.xlu0 %v381_v7  ;;  %v480_v6 = vsel %vm278_vm0, %v89_v4, 0.0  ;;  %v477_v7 = vsel %vm278_vm0, %v88_v5, 0.0  ;;  %v501_v28 = vsel %vm278_vm0, %v96_v25, 0.0  ;;  %v101_v36 = vld [vmem:[%s11668_s0 + $0x278] sm:$0xff]  ;;  %v100_v37 = vld [vmem:[%s11668_s0 + $0x270] sm:$0xff]  ;;  %vm5987_vm10 = vcmask 720512  }
  0x48   :  { %v513_v40 = vsel %vm278_vm0, %v100_v37, 0.0  ;;  %v105_v48 = vld [vmem:[%s11668_s0 + $0x298] sm:$0xff]  ;;  %v104_v49 = vld [vmem:[%s11668_s0 + $0x290] sm:$0xff]  ;;  %vm5994_vm11 = vcmask 786112   ;;  %vm6001_vm12 = vcmask 851712   ;;  %vm6008_vm13 = vcmask 917312  }
  0x49   :  { %v525_v52 = vsel %vm278_vm0, %v104_v49, 0.0  ;;  %v109_v60 = vld [vmem:[%s11668_s0 + $0x2b8] sm:$0xff]  ;;  %v108_v61 = vld [vmem:[%s11668_s0 + $0x2b0] sm:$0xff]  ;;  %vm6015_vm14 = vcmask 982912   ;;  %vm6022_vm15 = vcmask 1048512   ;;  %s7747_s19 = smov [#allocation3]  }
  0x4a   :  { %v537_v0 = vsel %vm278_vm0, %v108_v61, 0.0  ;;  %v116_v25 = vld [vmem:[%s11668_s0 + $0x2f0] sm:$0xff]  ;;  %s7597_s20 = sshll.u32 %s7747_s19, 4  ;;  %s7598_s20 = int_to_ptr.vmem [resolvable:$true] %s7597_s20 }
  0x4b   :  { %391 = vadd.xlane.f32.xlu1 %v390_v10  ;;  %388 = vadd.xlane.f32.xlu0 %v387_v11  ;;  %v486_v10 = vsel %vm278_vm0, %v91_v8, 0.0  ;;  %v483_v11 = vsel %vm278_vm0, %v90_v9, 0.0  ;;  %v113_v8 = vld [vmem:[%s11668_s0 + $0x2d8] sm:$0xff]  ;;  %v112_v9 = vld [vmem:[%s11668_s0 + $0x2d0] sm:$0xff]  ;;  %s7722_s21 = scalar_lea.vmem %s7598_s20, 64  ;;  %p7727_p1 = scmp.lt.s32.totalorder %s7598_s20, %s7598_s20 }
  0x4c   :  { %v124_v61 = vld [vmem:[%s11668_s0 + $0x330] sm:$0xff]  ;;  %p7723_p0 = scmp.ne.s32.totalorder %s7598_s20, %s7722_s21  ;;  %p7728_p2 = scmp.lt.s32.totalorder %s7722_s21, %s7722_s21 }
  0x4e   :  { %p7729_p3 = por %p7728_p2, %p7727_p1 }
  0x4f   :  { %397 = vadd.xlane.f32.xlu1 %v396_v14  ;;  %394 = vadd.xlane.f32.xlu0 %v393_v15  ;;  %v492_v15 = vsel %vm278_vm0, %v93_v12, 0.0  ;;  %v549_v12 = vsel %vm278_vm0, %v112_v9, 0.0 }
  0x50   :  { %p7730_p4 = pnand %p7729_p3, %p7723_p0 }
  0x53   :  { %403 = vadd.xlane.f32.xlu1 %v402_v18  ;;  %400 = vadd.xlane.f32.xlu0 %v399_v19  ;;  %v95_v18 = vld [vmem:[%s11668_s0 + $0x248] sm:$0xff]  ;;  %v94_v19 = vld [vmem:[%s11668_s0 + $0x240] sm:$0xff] }
  0x54   :  { %v498_v21 = vsel %vm278_vm0, %v95_v18, 0.0 }
  0x57   :  { %409 = vadd.xlane.f32.xlu1 %v408_v22  ;;  %406 = vadd.xlane.f32.xlu0 %v405_v23  ;;  %v495_v22 = vsel %vm278_vm0, %v94_v19, 0.0 }
  0x5b   :  { %415 = vadd.xlane.f32.xlu1 %v414_v26  ;;  %412 = vadd.xlane.f32.xlu0 %v411_v27  ;;  %v504_v27 = vsel %vm278_vm0, %v97_v24, 0.0  ;;  %v117_v24 = vld [vmem:[%s11668_s0 + $0x2f8] sm:$0xff] }
  0x5f   :  { %421 = vadd.xlane.f32.xlu1 %v420_v30  ;;  %418 = vadd.xlane.f32.xlu0 %v417_v31  ;;  %v99_v30 = vld [vmem:[%s11668_s0 + $0x268] sm:$0xff]  ;;  %v98_v31 = vld [vmem:[%s11668_s0 + $0x260] sm:$0xff] }
  0x60   :  { %v510_v33 = vsel %vm278_vm0, %v99_v30, 0.0  ;;  %v561_v30 = vsel %vm278_vm0, %v116_v25, 0.0 }
  0x63   :  { %427 = vadd.xlane.f32.xlu1 %v426_v34  ;;  %424 = vadd.xlane.f32.xlu0 %v423_v35  ;;  %v507_v34 = vsel %vm278_vm0, %v98_v31, 0.0 }
  0x67   :  { %433 = vadd.xlane.f32.xlu1 %v432_v38  ;;  %430 = vadd.xlane.f32.xlu0 %v429_v39  ;;  %v516_v39 = vsel %vm278_vm0, %v101_v36, 0.0 }
  0x6b   :  { %439 = vadd.xlane.f32.xlu1 %v438_v42  ;;  %436 = vadd.xlane.f32.xlu0 %v435_v43  ;;  %v103_v42 = vld [vmem:[%s11668_s0 + $0x288] sm:$0xff]  ;;  %v102_v43 = vld [vmem:[%s11668_s0 + $0x280] sm:$0xff] }
  0x6c   :  { %v522_v45 = vsel %vm278_vm0, %v103_v42, 0.0  ;;  %v121_v42 = vld [vmem:[%s11668_s0 + $0x318] sm:$0xff] }
  0x6f   :  { %445 = vadd.xlane.f32.xlu1 %v444_v46  ;;  %442 = vadd.xlane.f32.xlu0 %v441_v47  ;;  %v519_v46 = vsel %vm278_vm0, %v102_v43, 0.0  ;;  %v120_v43 = vld [vmem:[%s11668_s0 + $0x310] sm:$0xff] }
  0x73   :  { %451 = vadd.xlane.f32.xlu1 %v450_v50  ;;  %448 = vadd.xlane.f32.xlu0 %v447_v51  ;;  %v528_v51 = vsel %vm278_vm0, %v105_v48, 0.0  ;;  %v573_v48 = vsel %vm278_vm0, %v120_v43, 0.0  ;;  %v132_v43 = vld [vmem:[%s11668_s0 + $0x370] sm:$0xff] }
  0x77   :  { %457 = vadd.xlane.f32.xlu1 %v456_v54  ;;  %454 = vadd.xlane.f32.xlu0 %v453_v55  ;;  %v107_v54 = vld [vmem:[%s11668_s0 + $0x2a8] sm:$0xff]  ;;  %v106_v55 = vld [vmem:[%s11668_s0 + $0x2a0] sm:$0xff] }
  0x78   :  { %v534_v57 = vsel %vm278_vm0, %v107_v54, 0.0 }
  0x7b   :  { %463 = vadd.xlane.f32.xlu1 %v462_v58  ;;  %460 = vadd.xlane.f32.xlu0 %v459_v59  ;;  %v531_v58 = vsel %vm278_vm0, %v106_v55, 0.0 }
  0x7f   :  { %469 = vadd.xlane.f32.xlu1 %v468_v62  ;;  %466 = vadd.xlane.f32.xlu0 %v465_v63  ;;  %v540_v63 = vsel %vm278_vm0, %v109_v60, 0.0  ;;  %v125_v60 = vld [vmem:[%s11668_s0 + $0x338] sm:$0xff] }
  0x83   :  { %475 = vadd.xlane.f32.xlu1 %v474_v2  ;;  %472 = vadd.xlane.f32.xlu0 %v471_v3  ;;  %v111_v2 = vld [vmem:[%s11668_s0 + $0x2c8] sm:$0xff]  ;;  %v110_v3 = vld [vmem:[%s11668_s0 + $0x2c0] sm:$0xff] }
  0x84   :  { %v546_v5 = vsel %vm278_vm0, %v111_v2, 0.0  ;;  %v585_v2 = vsel %vm278_vm0, %v124_v61, 0.0 }
  0x87   :  { %481 = vadd.xlane.f32.xlu1 %v480_v6  ;;  %478 = vadd.xlane.f32.xlu0 %v477_v7  ;;  %v543_v6 = vsel %vm278_vm0, %v110_v3, 0.0 }
  0x8b   :  { %487 = vadd.xlane.f32.xlu1 %v486_v10  ;;  %484 = vadd.xlane.f32.xlu0 %v483_v11  ;;  %v552_v11 = vsel %vm278_vm0, %v113_v8, 0.0 }
  0x8c   :  { %v8054_v14 = vpop.xlane.xlu1 %286  ;;  %v8058_v17 = vpop.xlane.xlu0 %280 }
  0x8f   :  { %493 = vadd.xlane.f32.xlu1 %v492_v15  ;;  %490 = vadd.xlane.f32.xlu0 %v489_v16  ;;  %v115_v15 = vld [vmem:[%s11668_s0 + $0x2e8] sm:$0xff]  ;;  %v114_v16 = vld [vmem:[%s11668_s0 + $0x2e0] sm:$0xff] }
  0x90   :  { %v8066_v20 = vpop.xlane.xlu1 %289  ;;  %v8070_v23 = vpop.xlane.xlu0 %283  ;;  %v558_v19 = vsel %vm278_vm0, %v115_v15, 0.0  ;;  %v129_v15 = vld [vmem:[%s11668_s0 + $0x358] sm:$0xff] }
  0x93   :  { %499 = vadd.xlane.f32.xlu1 %v498_v21  ;;  %496 = vadd.xlane.f32.xlu0 %v495_v22  ;;  %v555_v21 = vsel %vm278_vm0, %v114_v16, 0.0  ;;  %v128_v16 = vld [vmem:[%s11668_s0 + $0x350] sm:$0xff] }
  0x94   :  { %v8078_v26 = vpop.xlane.xlu1 %295  ;;  %v8082_v29 = vpop.xlane.xlu0 %292 }
  0x97   :  { %505 = vadd.xlane.f32.xlu1 %v504_v27  ;;  %502 = vadd.xlane.f32.xlu0 %v501_v28  ;;  %v564_v28 = vsel %vm278_vm0, %v117_v24, 0.0  ;;  %v597_v24 = vsel %vm278_vm0, %v128_v16, 0.0 }
  0x98   :  { %v8090_v32 = vpop.xlane.xlu1 %301  ;;  %v8094_v35 = vpop.xlane.xlu0 %298 }
  0x9b   :  { %511 = vadd.xlane.f32.xlu1 %v510_v33  ;;  %508 = vadd.xlane.f32.xlu0 %v507_v34  ;;  %v119_v33 = vld [vmem:[%s11668_s0 + $0x308] sm:$0xff]  ;;  %v118_v34 = vld [vmem:[%s11668_s0 + $0x300] sm:$0xff] }
  0x9c   :  { %v8102_v38 = vpop.xlane.xlu1 %307  ;;  %v8106_v41 = vpop.xlane.xlu0 %304  ;;  %v570_v37 = vsel %vm278_vm0, %v119_v33, 0.0 }
  0x9f   :  { %517 = vadd.xlane.f32.xlu1 %v516_v39  ;;  %514 = vadd.xlane.f32.xlu0 %v513_v40  ;;  %v567_v39 = vsel %vm278_vm0, %v118_v34, 0.0 }
  0xa0   :  { %v8114_v44 = vpop.xlane.xlu1 %313  ;;  %v8118_v47 = vpop.xlane.xlu0 %310 }
  0xa3   :  { %523 = vadd.xlane.f32.xlu1 %v522_v45  ;;  %520 = vadd.xlane.f32.xlu0 %v519_v46  ;;  %v576_v46 = vsel %vm278_vm0, %v121_v42, 0.0  ;;  %v133_v42 = vld [vmem:[%s11668_s0 + $0x378] sm:$0xff] }
  0xa4   :  { %v8126_v50 = vpop.xlane.xlu1 %319  ;;  %v8130_v53 = vpop.xlane.xlu0 %316 }
  0xa7   :  { %529 = vadd.xlane.f32.xlu1 %v528_v51  ;;  %526 = vadd.xlane.f32.xlu0 %v525_v52  ;;  %v123_v51 = vld [vmem:[%s11668_s0 + $0x328] sm:$0xff]  ;;  %v122_v52 = vld [vmem:[%s11668_s0 + $0x320] sm:$0xff] }
  0xa8   :  { %v8138_v56 = vpop.xlane.xlu1 %325  ;;  %v8142_v59 = vpop.xlane.xlu0 %322  ;;  %v582_v55 = vsel %vm278_vm0, %v123_v51, 0.0  ;;  %v609_v51 = vsel %vm278_vm0, %v132_v43, 0.0  ;;  %v140_v43 = vld [vmem:[%s11668_s0 + $0x3b0] sm:$0xff] }
  0xab   :  { %535 = vadd.xlane.f32.xlu1 %v534_v57  ;;  %532 = vadd.xlane.f32.xlu0 %v531_v58  ;;  %v579_v57 = vsel %vm278_vm0, %v122_v52, 0.0 }
  0xac   :  { %v8150_v62 = vpop.xlane.xlu1 %331  ;;  %v8154_v1 = vpop.xlane.xlu0 %328 }
  0xaf   :  { %541 = vadd.xlane.f32.xlu1 %v540_v63  ;;  %538 = vadd.xlane.f32.xlu0 %v537_v0  ;;  %v588_v0 = vsel %vm278_vm0, %v125_v60, 0.0 }
  0xb0   :  { %v8162_v4 = vpop.xlane.xlu1 %337  ;;  %v8166_v7 = vpop.xlane.xlu0 %334 }
  0xb3   :  { %547 = vadd.xlane.f32.xlu1 %v546_v5  ;;  %544 = vadd.xlane.f32.xlu0 %v543_v6  ;;  %v127_v5 = vld [vmem:[%s11668_s0 + $0x348] sm:$0xff]  ;;  %v126_v6 = vld [vmem:[%s11668_s0 + $0x340] sm:$0xff] }
  0xb4   :  { %v8174_v10 = vpop.xlane.xlu1 %343  ;;  %v8178_v13 = vpop.xlane.xlu0 %340  ;;  %v594_v9 = vsel %vm278_vm0, %v127_v5, 0.0  ;;  %v137_v5 = vld [vmem:[%s11668_s0 + $0x398] sm:$0xff] }
  0xb7   :  { %553 = vadd.xlane.f32.xlu1 %v552_v11  ;;  %550 = vadd.xlane.f32.xlu0 %v549_v12  ;;  %v591_v11 = vsel %vm278_vm0, %v126_v6, 0.0  ;;  %v136_v6 = vld [vmem:[%s11668_s0 + $0x390] sm:$0xff] }
  0xb8   :  { %v8186_v18 = vpop.xlane.xlu1 %349  ;;  %v8190_v22 = vpop.xlane.xlu0 %346 }
  0xbb   :  { %559 = vadd.xlane.f32.xlu1 %v558_v19  ;;  %556 = vadd.xlane.f32.xlu0 %v555_v21  ;;  %v600_v21 = vsel %vm278_vm0, %v129_v15, 0.0  ;;  %v621_v15 = vsel %vm278_vm0, %v136_v6, 0.0 }
  0xbc   :  { %v8198_v27 = vpop.xlane.xlu1 %355  ;;  %v8202_v31 = vpop.xlane.xlu0 %352 }
  0xbf   :  { %565 = vadd.xlane.f32.xlu1 %v564_v28  ;;  %562 = vadd.xlane.f32.xlu0 %v561_v30  ;;  %v131_v28 = vld [vmem:[%s11668_s0 + $0x368] sm:$0xff]  ;;  %v130_v30 = vld [vmem:[%s11668_s0 + $0x360] sm:$0xff] }
  0xc0   :  { %v8210_v36 = vpop.xlane.xlu1 %361  ;;  %v8214_v40 = vpop.xlane.xlu0 %358  ;;  %v606_v34 = vsel %vm278_vm0, %v131_v28, 0.0 }
  0xc3   :  { %571 = vadd.xlane.f32.xlu1 %v570_v37  ;;  %568 = vadd.xlane.f32.xlu0 %v567_v39  ;;  %v603_v37 = vsel %vm278_vm0, %v130_v30, 0.0 }
  0xc4   :  { %v8222_v45 = vpop.xlane.xlu1 %367  ;;  %v8226_v49 = vpop.xlane.xlu0 %364 }
  0xc7   :  { %577 = vadd.xlane.f32.xlu1 %v576_v46  ;;  %574 = vadd.xlane.f32.xlu0 %v573_v48  ;;  %v612_v48 = vsel %vm278_vm0, %v133_v42, 0.0  ;;  %v141_v42 = vld [vmem:[%s11668_s0 + $0x3b8] sm:$0xff] }
  0xc8   :  { %v8234_v54 = vpop.xlane.xlu1 %373  ;;  %v8238_v58 = vpop.xlane.xlu0 %370 }
  0xcb   :  { %583 = vadd.xlane.f32.xlu1 %v582_v55  ;;  %580 = vadd.xlane.f32.xlu0 %v579_v57  ;;  %v135_v55 = vld [vmem:[%s11668_s0 + $0x388] sm:$0xff]  ;;  %v134_v57 = vld [vmem:[%s11668_s0 + $0x380] sm:$0xff] }
  0xcc   :  { %v8246_v63 = vpop.xlane.xlu1 %379  ;;  %v8250_v3 = vpop.xlane.xlu0 %376  ;;  %v618_v61 = vsel %vm278_vm0, %v135_v55, 0.0  ;;  %v633_v55 = vsel %vm278_vm0, %v140_v43, 0.0 }
  0xcf   :  { %589 = vadd.xlane.f32.xlu1 %v588_v0  ;;  %586 = vadd.xlane.f32.xlu0 %v585_v2  ;;  %v615_v0 = vsel %vm278_vm0, %v134_v57, 0.0 }
  0xd0   :  { %v8258_v8 = vpop.xlane.xlu1 %385  ;;  %v8262_v12 = vpop.xlane.xlu0 %382 }
  0xd3   :  { %595 = vadd.xlane.f32.xlu1 %v594_v9  ;;  %592 = vadd.xlane.f32.xlu0 %v591_v11  ;;  %v624_v11 = vsel %vm278_vm0, %v137_v5, 0.0 }
  0xd4   :  { %v8270_v19 = vpop.xlane.xlu1 %391  ;;  %v8274_v25 = vpop.xlane.xlu0 %388 }
  0xd7   :  { %601 = vadd.xlane.f32.xlu1 %v600_v21  ;;  %598 = vadd.xlane.f32.xlu0 %v597_v24  ;;  %v139_v21 = vld [vmem:[%s11668_s0 + $0x3a8] sm:$0xff]  ;;  %v138_v24 = vld [vmem:[%s11668_s0 + $0x3a0] sm:$0xff] }
  0xd8   :  { %v8282_v33 = vpop.xlane.xlu1 %397  ;;  %v8286_v39 = vpop.xlane.xlu0 %394  ;;  %v630_v30 = vsel %vm278_vm0, %v139_v21, 0.0  ;;  %v145_v21 = vld [vmem:[%s11668_s0 + $0x3d8] sm:$0xff] }
  0xdb   :  { %607 = vadd.xlane.f32.xlu1 %v606_v34  ;;  %604 = vadd.xlane.f32.xlu0 %v603_v37  ;;  %v627_v34 = vsel %vm278_vm0, %v138_v24, 0.0  ;;  %v144_v24 = vld [vmem:[%s11668_s0 + $0x3d0] sm:$0xff] }
  0xdc   :  { %v8294_v46 = vpop.xlane.xlu1 %403  ;;  %v8298_v52 = vpop.xlane.xlu0 %400 }
  0xdf   :  { %613 = vadd.xlane.f32.xlu1 %v612_v48  ;;  %610 = vadd.xlane.f32.xlu0 %v609_v51  ;;  %v636_v51 = vsel %vm278_vm0, %v141_v42, 0.0  ;;  %v645_v42 = vsel %vm278_vm0, %v144_v24, 0.0  ;;  %v148_v24 = vld [vmem:[%s11668_s0 + $0x3f0] sm:$0xff] }
  0xe0   :  { %v8306_v60 = vpop.xlane.xlu1 %409  ;;  %v8310_v2 = vpop.xlane.xlu0 %406 }
  0xe3   :  { %619 = vadd.xlane.f32.xlu1 %v618_v61  ;;  %616 = vadd.xlane.f32.xlu0 %v615_v0  ;;  %v143_v61 = vld [vmem:[%s11668_s0 + $0x3c8] sm:$0xff]  ;;  %v142_v0 = vld [vmem:[%s11668_s0 + $0x3c0] sm:$0xff] }
  0xe4   :  { %v8318_v9 = vpop.xlane.xlu1 %415  ;;  %v8322_v16 = vpop.xlane.xlu0 %412  ;;  %v642_v6 = vsel %vm278_vm0, %v143_v61, 0.0 }
  0xe5   :  { %11841 = vst [vmem:[#allocation6_spill] sm:$0xff] %v8322_v16 }
  0xe7   :  { %625 = vadd.xlane.f32.xlu1 %v624_v11  ;;  %622 = vadd.xlane.f32.xlu0 %v621_v15  ;;  %v639_v11 = vsel %vm278_vm0, %v142_v0, 0.0 }
  0xe8   :  { %v8330_v28 = vpop.xlane.xlu1 %421  ;;  %v8334_v37 = vpop.xlane.xlu0 %418 }
  0xe9   :  { %11842 = vst [vmem:[#allocation7_spill] sm:$0xff] %v8334_v37 }
  0xeb   :  { %631 = vadd.xlane.f32.xlu1 %v630_v30  ;;  %628 = vadd.xlane.f32.xlu0 %v627_v34  ;;  %v648_v34 = vsel %vm278_vm0, %v145_v21, 0.0  ;;  %v149_v21 = vld [vmem:[%s11668_s0 + $0x3f8] sm:$0xff] }
  0xec   :  { %v8342_v48 = vpop.xlane.xlu1 %427  ;;  %v8346_v57 = vpop.xlane.xlu0 %424 }
  0xed   :  { %11843 = vst [vmem:[#allocation8_spill] sm:$0xff] %v8346_v57  ;;  %v11808_v57 = vlaneseq }
  0xef   :  { %637 = vadd.xlane.f32.xlu1 %v636_v51  ;;  %634 = vadd.xlane.f32.xlu0 %v633_v55  ;;  %v147_v51 = vld [vmem:[%s11668_s0 + $0x3e8] sm:$0xff]  ;;  %v146_v55 = vld [vmem:[%s11668_s0 + $0x3e0] sm:$0xff] }
  0xf0   :  { %v8354_v5 = vpop.xlane.xlu1 %433  ;;  %v8358_v15 = vpop.xlane.xlu0 %430  ;;  %v654_v0 = vsel %vm278_vm0, %v147_v51, 0.0  ;;  %v657_v51 = vsel %vm278_vm0, %v148_v24, 0.0  ;;  %v153_v24 = vld [vmem:[%s11668_s0 + $0x418] sm:$0xff] }
  0xf1   :  { %11844 = vst [vmem:[#allocation9_spill] sm:$0xff] %v8358_v15 }
  0xf3   :  { %643 = vadd.xlane.f32.xlu1 %v642_v6  ;;  %640 = vadd.xlane.f32.xlu0 %v639_v11  ;;  %v651_v6 = vsel %vm278_vm0, %v146_v55, 0.0  ;;  %v151_v55 = vld [vmem:[%s11668_s0 + $0x408] sm:$0xff] }
  0xf4   :  { %v8366_v30 = vpop.xlane.xlu1 %439  ;;  %v8370_v43 = vpop.xlane.xlu0 %436 }
  0xf5   :  { %11845 = vst [vmem:[#allocation10_spill] sm:$0xff] %v8370_v43 }
  0xf7   :  { %649 = vadd.xlane.f32.xlu1 %v648_v34  ;;  %646 = vadd.xlane.f32.xlu0 %v645_v42  ;;  %v660_v42 = vsel %vm278_vm0, %v149_v21, 0.0 }
  0xf8   :  { %v8378_v61 = vpop.xlane.xlu1 %445  ;;  %v8382_v11 = vpop.xlane.xlu0 %442 }
  0xf9   :  { %11846 = vst [vmem:[#allocation11_spill] sm:$0xff] %v8378_v61  ;;  %11847 = vst [vmem:[#allocation12_spill] sm:$0xff] %v8382_v11  ;;  %v150_v11 = vld [vmem:[%s11668_s0 + $0x400] sm:$0xff] }
  0xfa   :  { %v663_v21 = vsel %vm278_vm0, %v150_v11, 0.0  ;;  %v155_v11 = vld [vmem:[%s11668_s0 + $0x428] sm:$0xff] }
  0xfb   :  { %655 = vadd.xlane.f32.xlu1 %v654_v0  ;;  %652 = vadd.xlane.f32.xlu0 %v651_v6  ;;  %v666_v6 = vsel %vm278_vm0, %v151_v55, 0.0 }
  0xfc   :  { %v8390_v34 = vpop.xlane.xlu1 %451  ;;  %v8394_v43 = vpop.xlane.xlu0 %448 }
  0xfd   :  { %11848 = vst [vmem:[#allocation13_spill] sm:$0xff] %v8390_v34  ;;  %11849 = vst [vmem:[#allocation14_spill] sm:$0xff] %v8394_v43  ;;  %v152_v43 = vld [vmem:[%s11668_s0 + $0x410] sm:$0xff]  ;;  %v7746_v34 = vmov 1985246804  }
  0xfe   :  { %v669_v55 = vsel %vm278_vm0, %v152_v43, 0.0  ;;  %v157_v43 = vld [vmem:[%s11668_s0 + $0x438] sm:$0xff]  ;;  %v1313_v37 = vunpack.c.l.s4 %v7746_v34 }
  0xff   :  { %661 = vadd.xlane.f32.xlu1 %v660_v42  ;;  %658 = vadd.xlane.f32.xlu0 %v657_v51  ;;  %v672_v51 = vsel %vm278_vm0, %v153_v24, 0.0 }
 0x100   :  { %v8402_v0 = vpop.xlane.xlu1 %457  ;;  %v8406_v15 = vpop.xlane.xlu0 %454 }
 0x101   :  { %11850 = vst [vmem:[#allocation15_spill] sm:$0xff] %v8402_v0  ;;  %11851 = vst [vmem:[#allocation16_spill] sm:$0xff] %v8406_v15  ;;  %v154_v15 = vld [vmem:[%s11668_s0 + $0x420] sm:$0xff] }
 0x102   :  { %v675_v24 = vsel %vm278_vm0, %v154_v15, 0.0  ;;  %v159_v15 = vld [vmem:[%s11668_s0 + $0x448] sm:$0xff] }
 0x103   :  { %667 = vadd.xlane.f32.xlu1 %v666_v6  ;;  %664 = vadd.xlane.f32.xlu0 %v663_v21  ;;  %v678_v21 = vsel %vm278_vm0, %v155_v11, 0.0 }
 0x104   :  { %v8414_v42 = vpop.xlane.xlu1 %463  ;;  %v8418_v0 = vpop.xlane.xlu0 %460 }
 0x105   :  { %11852 = vst [vmem:[#allocation17_spill] sm:$0xff] %v8414_v42  ;;  %11853 = vst [vmem:[#allocation18_spill] sm:$0xff] %v8418_v0  ;;  %v156_v0 = vld [vmem:[%s11668_s0 + $0x430] sm:$0xff] }
 0x106   :  { %v681_v11 = vsel %vm278_vm0, %v156_v0, 0.0  ;;  %v161_v0 = vld [vmem:[%s11668_s0 + $0x458] sm:$0xff] }
 0x107   :  { %673 = vadd.xlane.f32.xlu1 %v672_v51  ;;  %670 = vadd.xlane.f32.xlu0 %v669_v55  ;;  %v684_v55 = vsel %vm278_vm0, %v157_v43, 0.0 }
 0x108   :  { %v8426_v6 = vpop.xlane.xlu1 %469  ;;  %v8430_v42 = vpop.xlane.xlu0 %466 }
 0x109   :  { %11854 = vst [vmem:[#allocation19_spill] sm:$0xff] %v8426_v6  ;;  %11855 = vst [vmem:[#allocation20_spill] sm:$0xff] %v8430_v42  ;;  %v158_v42 = vld [vmem:[%s11668_s0 + $0x440] sm:$0xff] }
 0x10a   :  { %v687_v43 = vsel %vm278_vm0, %v158_v42, 0.0  ;;  %v163_v42 = vld [vmem:[%s11668_s0 + $0x468] sm:$0xff] }
 0x10b   :  { %679 = vadd.xlane.f32.xlu1 %v678_v21  ;;  %676 = vadd.xlane.f32.xlu0 %v675_v24  ;;  %v690_v24 = vsel %vm278_vm0, %v159_v15, 0.0 }
 0x10c   :  { %v8438_v51 = vpop.xlane.xlu1 %475  ;;  %v8442_v6 = vpop.xlane.xlu0 %472 }
 0x10d   :  { %11856 = vst [vmem:[#allocation21_spill] sm:$0xff] %v8438_v51  ;;  %11857 = vst [vmem:[#allocation22_spill] sm:$0xff] %v8442_v6  ;;  %v160_v6 = vld [vmem:[%s11668_s0 + $0x450] sm:$0xff] }
 0x10e   :  { %v693_v15 = vsel %vm278_vm0, %v160_v6, 0.0  ;;  %v165_v6 = vld [vmem:[%s11668_s0 + $0x478] sm:$0xff] }
 0x10f   :  { %685 = vadd.xlane.f32.xlu1 %v684_v55  ;;  %682 = vadd.xlane.f32.xlu0 %v681_v11  ;;  %v696_v11 = vsel %vm278_vm0, %v161_v0, 0.0 }
 0x110   :  { %v8450_v21 = vpop.xlane.xlu1 %481  ;;  %v8454_v51 = vpop.xlane.xlu0 %478 }
 0x111   :  { %11858 = vst [vmem:[#allocation23_spill] sm:$0xff] %v8450_v21  ;;  %11859 = vst [vmem:[#allocation24_spill] sm:$0xff] %v8454_v51  ;;  %v162_v51 = vld [vmem:[%s11668_s0 + $0x460] sm:$0xff] }
 0x112   :  { %v699_v0 = vsel %vm278_vm0, %v162_v51, 0.0  ;;  %v167_v51 = vld [vmem:[%s11668_s0 + $0x488] sm:$0xff] }
 0x113   :  { %691 = vadd.xlane.f32.xlu1 %v690_v24  ;;  %688 = vadd.xlane.f32.xlu0 %v687_v43  ;;  %v702_v43 = vsel %vm278_vm0, %v163_v42, 0.0 }
 0x114   :  { %v8462_v55 = vpop.xlane.xlu1 %487  ;;  %v8466_v21 = vpop.xlane.xlu0 %484 }
 0x115   :  { %11860 = vst [vmem:[#allocation25_spill] sm:$0xff] %v8462_v55  ;;  %11861 = vst [vmem:[#allocation26_spill] sm:$0xff] %v8466_v21  ;;  %v164_v21 = vld [vmem:[%s11668_s0 + $0x470] sm:$0xff] }
 0x116   :  { %v705_v42 = vsel %vm278_vm0, %v164_v21, 0.0  ;;  %v169_v21 = vld [vmem:[%s11668_s0 + $0x498] sm:$0xff] }
 0x117   :  { %697 = vadd.xlane.f32.xlu1 %v696_v11  ;;  %694 = vadd.xlane.f32.xlu0 %v693_v15  ;;  %v708_v15 = vsel %vm278_vm0, %v165_v6, 0.0 }
 0x118   :  { %v8474_v24 = vpop.xlane.xlu1 %493  ;;  %v8478_v55 = vpop.xlane.xlu0 %490 }
 0x119   :  { %11862 = vst [vmem:[#allocation27_spill] sm:$0xff] %v8474_v24  ;;  %11863 = vst [vmem:[#allocation28_spill] sm:$0xff] %v8478_v55  ;;  %v166_v55 = vld [vmem:[%s11668_s0 + $0x480] sm:$0xff] }
 0x11a   :  { %v711_v6 = vsel %vm278_vm0, %v166_v55, 0.0  ;;  %v171_v55 = vld [vmem:[%s11668_s0 + $0x4a8] sm:$0xff] }
 0x11b   :  { %703 = vadd.xlane.f32.xlu1 %v702_v43  ;;  %700 = vadd.xlane.f32.xlu0 %v699_v0  ;;  %v714_v0 = vsel %vm278_vm0, %v167_v51, 0.0 }
 0x11c   :  { %v8486_v11 = vpop.xlane.xlu1 %499  ;;  %v8490_v24 = vpop.xlane.xlu0 %496 }
 0x11d   :  { %11864 = vst [vmem:[#allocation29_spill] sm:$0xff] %v8486_v11  ;;  %11865 = vst [vmem:[#allocation30_spill] sm:$0xff] %v8490_v24  ;;  %v168_v24 = vld [vmem:[%s11668_s0 + $0x490] sm:$0xff] }
 0x11e   :  { %v717_v51 = vsel %vm278_vm0, %v168_v24, 0.0  ;;  %v173_v24 = vld [vmem:[%s11668_s0 + $0x4b8] sm:$0xff] }
 0x11f   :  { %709 = vadd.xlane.f32.xlu1 %v708_v15  ;;  %706 = vadd.xlane.f32.xlu0 %v705_v42  ;;  %v720_v42 = vsel %vm278_vm0, %v169_v21, 0.0 }
 0x120   :  { %v8498_v43 = vpop.xlane.xlu1 %505  ;;  %v8502_v11 = vpop.xlane.xlu0 %502 }
 0x121   :  { %11866 = vst [vmem:[#allocation31_spill] sm:$0xff] %v8498_v43  ;;  %11867 = vst [vmem:[#allocation32_spill] sm:$0xff] %v8502_v11  ;;  %v170_v11 = vld [vmem:[%s11668_s0 + $0x4a0] sm:$0xff] }
 0x122   :  { %v723_v21 = vsel %vm278_vm0, %v170_v11, 0.0  ;;  %v175_v11 = vld [vmem:[%s11668_s0 + $0x4c8] sm:$0xff] }
 0x123   :  { %715 = vadd.xlane.f32.xlu1 %v714_v0  ;;  %712 = vadd.xlane.f32.xlu0 %v711_v6  ;;  %v726_v6 = vsel %vm278_vm0, %v171_v55, 0.0 }
 0x124   :  { %v8510_v15 = vpop.xlane.xlu1 %511  ;;  %v8514_v43 = vpop.xlane.xlu0 %508 }
 0x125   :  { %11868 = vst [vmem:[#allocation33_spill] sm:$0xff] %v8510_v15  ;;  %11869 = vst [vmem:[#allocation34_spill] sm:$0xff] %v8514_v43  ;;  %v172_v43 = vld [vmem:[%s11668_s0 + $0x4b0] sm:$0xff] }
 0x126   :  { %v729_v55 = vsel %vm278_vm0, %v172_v43, 0.0  ;;  %v177_v43 = vld [vmem:[%s11668_s0 + $0x4d8] sm:$0xff] }
 0x127   :  { %721 = vadd.xlane.f32.xlu1 %v720_v42  ;;  %718 = vadd.xlane.f32.xlu0 %v717_v51  ;;  %v732_v51 = vsel %vm278_vm0, %v173_v24, 0.0 }
 0x128   :  { %v8522_v0 = vpop.xlane.xlu1 %517  ;;  %v8526_v15 = vpop.xlane.xlu0 %514 }
 0x129   :  { %11870 = vst [vmem:[#allocation35_spill] sm:$0xff] %v8522_v0  ;;  %11871 = vst [vmem:[#allocation36_spill] sm:$0xff] %v8526_v15  ;;  %v174_v15 = vld [vmem:[%s11668_s0 + $0x4c0] sm:$0xff] }
 0x12a   :  { %v735_v24 = vsel %vm278_vm0, %v174_v15, 0.0  ;;  %v179_v15 = vld [vmem:[%s11668_s0 + $0x4e8] sm:$0xff] }
 0x12b   :  { %727 = vadd.xlane.f32.xlu1 %v726_v6  ;;  %724 = vadd.xlane.f32.xlu0 %v723_v21  ;;  %v738_v21 = vsel %vm278_vm0, %v175_v11, 0.0 }
 0x12c   :  { %v8534_v42 = vpop.xlane.xlu1 %523  ;;  %v8538_v0 = vpop.xlane.xlu0 %520 }
 0x12d   :  { %11872 = vst [vmem:[#allocation37_spill] sm:$0xff] %v8534_v42  ;;  %11873 = vst [vmem:[#allocation38_spill] sm:$0xff] %v8538_v0  ;;  %v176_v0 = vld [vmem:[%s11668_s0 + $0x4d0] sm:$0xff] }
 0x12e   :  { %v741_v11 = vsel %vm278_vm0, %v176_v0, 0.0  ;;  %v181_v0 = vld [vmem:[%s11668_s0 + $0x4f8] sm:$0xff] }
 0x12f   :  { %733 = vadd.xlane.f32.xlu1 %v732_v51  ;;  %730 = vadd.xlane.f32.xlu0 %v729_v55  ;;  %v744_v55 = vsel %vm278_vm0, %v177_v43, 0.0 }
 0x130   :  { %v8546_v6 = vpop.xlane.xlu1 %529  ;;  %v8550_v42 = vpop.xlane.xlu0 %526 }
 0x131   :  { %11874 = vst [vmem:[#allocation39_spill] sm:$0xff] %v8546_v6  ;;  %11875 = vst [vmem:[#allocation40_spill] sm:$0xff] %v8550_v42  ;;  %v178_v42 = vld [vmem:[%s11668_s0 + $0x4e0] sm:$0xff] }
 0x132   :  { %v747_v43 = vsel %vm278_vm0, %v178_v42, 0.0  ;;  %v183_v42 = vld [vmem:[%s11668_s0 + $0x508] sm:$0xff] }
 0x133   :  { %739 = vadd.xlane.f32.xlu1 %v738_v21  ;;  %736 = vadd.xlane.f32.xlu0 %v735_v24  ;;  %v750_v24 = vsel %vm278_vm0, %v179_v15, 0.0 }
 0x134   :  { %v8558_v51 = vpop.xlane.xlu1 %535  ;;  %v8562_v6 = vpop.xlane.xlu0 %532 }
 0x135   :  { %11876 = vst [vmem:[#allocation41_spill] sm:$0xff] %v8558_v51  ;;  %11877 = vst [vmem:[#allocation42_spill] sm:$0xff] %v8562_v6  ;;  %v180_v6 = vld [vmem:[%s11668_s0 + $0x4f0] sm:$0xff] }
 0x136   :  { %v753_v15 = vsel %vm278_vm0, %v180_v6, 0.0  ;;  %v185_v6 = vld [vmem:[%s11668_s0 + $0x518] sm:$0xff] }
 0x137   :  { %745 = vadd.xlane.f32.xlu1 %v744_v55  ;;  %742 = vadd.xlane.f32.xlu0 %v741_v11  ;;  %v756_v11 = vsel %vm278_vm0, %v181_v0, 0.0 }
 0x138   :  { %v8570_v21 = vpop.xlane.xlu1 %541  ;;  %v8574_v51 = vpop.xlane.xlu0 %538 }
 0x139   :  { %11878 = vst [vmem:[#allocation43_spill] sm:$0xff] %v8570_v21  ;;  %11879 = vst [vmem:[#allocation44_spill] sm:$0xff] %v8574_v51  ;;  %v182_v51 = vld [vmem:[%s11668_s0 + $0x500] sm:$0xff] }
 0x13a   :  { %v759_v0 = vsel %vm278_vm0, %v182_v51, 0.0  ;;  %v187_v51 = vld [vmem:[%s11668_s0 + $0x528] sm:$0xff] }
 0x13b   :  { %751 = vadd.xlane.f32.xlu1 %v750_v24  ;;  %748 = vadd.xlane.f32.xlu0 %v747_v43  ;;  %v762_v43 = vsel %vm278_vm0, %v183_v42, 0.0 }
 0x13c   :  { %v8582_v55 = vpop.xlane.xlu1 %547  ;;  %v8586_v21 = vpop.xlane.xlu0 %544 }
 0x13d   :  { %11880 = vst [vmem:[#allocation45_spill] sm:$0xff] %v8582_v55  ;;  %11881 = vst [vmem:[#allocation46_spill] sm:$0xff] %v8586_v21  ;;  %v184_v21 = vld [vmem:[%s11668_s0 + $0x510] sm:$0xff] }
 0x13e   :  { %v765_v42 = vsel %vm278_vm0, %v184_v21, 0.0  ;;  %v189_v21 = vld [vmem:[%s11668_s0 + $0x538] sm:$0xff] }
 0x13f   :  { %757 = vadd.xlane.f32.xlu1 %v756_v11  ;;  %754 = vadd.xlane.f32.xlu0 %v753_v15  ;;  %v768_v15 = vsel %vm278_vm0, %v185_v6, 0.0 }
 0x140   :  { %v8594_v24 = vpop.xlane.xlu1 %553  ;;  %v8598_v55 = vpop.xlane.xlu0 %550 }
 0x141   :  { %11882 = vst [vmem:[#allocation47_spill] sm:$0xff] %v8594_v24  ;;  %11883 = vst [vmem:[#allocation48_spill] sm:$0xff] %v8598_v55  ;;  %v186_v55 = vld [vmem:[%s11668_s0 + $0x520] sm:$0xff] }
 0x142   :  { %v771_v6 = vsel %vm278_vm0, %v186_v55, 0.0  ;;  %v191_v55 = vld [vmem:[%s11668_s0 + $0x548] sm:$0xff] }
 0x143   :  { %763 = vadd.xlane.f32.xlu1 %v762_v43  ;;  %760 = vadd.xlane.f32.xlu0 %v759_v0  ;;  %v774_v0 = vsel %vm278_vm0, %v187_v51, 0.0 }
 0x144   :  { %v8606_v11 = vpop.xlane.xlu1 %559  ;;  %v8610_v24 = vpop.xlane.xlu0 %556 }
 0x145   :  { %11884 = vst [vmem:[#allocation49_spill] sm:$0xff] %v8606_v11  ;;  %11885 = vst [vmem:[#allocation50_spill] sm:$0xff] %v8610_v24  ;;  %v188_v24 = vld [vmem:[%s11668_s0 + $0x530] sm:$0xff] }
 0x146   :  { %v777_v51 = vsel %vm278_vm0, %v188_v24, 0.0  ;;  %v193_v24 = vld [vmem:[%s11668_s0 + $0x558] sm:$0xff] }
 0x147   :  { %769 = vadd.xlane.f32.xlu1 %v768_v15  ;;  %766 = vadd.xlane.f32.xlu0 %v765_v42  ;;  %v780_v42 = vsel %vm278_vm0, %v189_v21, 0.0 }
 0x148   :  { %v8618_v43 = vpop.xlane.xlu1 %565  ;;  %v8622_v11 = vpop.xlane.xlu0 %562 }
 0x149   :  { %11886 = vst [vmem:[#allocation51_spill] sm:$0xff] %v8618_v43  ;;  %11887 = vst [vmem:[#allocation52_spill] sm:$0xff] %v8622_v11  ;;  %v190_v11 = vld [vmem:[%s11668_s0 + $0x540] sm:$0xff] }
 0x14a   :  { %v783_v21 = vsel %vm278_vm0, %v190_v11, 0.0  ;;  %v195_v11 = vld [vmem:[%s11668_s0 + $0x568] sm:$0xff] }
 0x14b   :  { %775 = vadd.xlane.f32.xlu1 %v774_v0  ;;  %772 = vadd.xlane.f32.xlu0 %v771_v6  ;;  %v786_v6 = vsel %vm278_vm0, %v191_v55, 0.0 }
 0x14c   :  { %v8630_v15 = vpop.xlane.xlu1 %571  ;;  %v8634_v43 = vpop.xlane.xlu0 %568 }
 0x14d   :  { %11888 = vst [vmem:[#allocation53_spill] sm:$0xff] %v8630_v15  ;;  %11889 = vst [vmem:[#allocation54_spill] sm:$0xff] %v8634_v43  ;;  %v192_v43 = vld [vmem:[%s11668_s0 + $0x550] sm:$0xff] }
 0x14e   :  { %v789_v55 = vsel %vm278_vm0, %v192_v43, 0.0  ;;  %v197_v43 = vld [vmem:[%s11668_s0 + $0x578] sm:$0xff] }
 0x14f   :  { %781 = vadd.xlane.f32.xlu1 %v780_v42  ;;  %778 = vadd.xlane.f32.xlu0 %v777_v51  ;;  %v792_v51 = vsel %vm278_vm0, %v193_v24, 0.0 }
 0x150   :  { %v8642_v0 = vpop.xlane.xlu1 %577  ;;  %v8646_v15 = vpop.xlane.xlu0 %574 }
 0x151   :  { %11890 = vst [vmem:[#allocation55_spill] sm:$0xff] %v8642_v0  ;;  %11891 = vst [vmem:[#allocation56_spill] sm:$0xff] %v8646_v15  ;;  %v194_v15 = vld [vmem:[%s11668_s0 + $0x560] sm:$0xff] }
 0x152   :  { %v795_v24 = vsel %vm278_vm0, %v194_v15, 0.0  ;;  %v199_v15 = vld [vmem:[%s11668_s0 + $0x588] sm:$0xff] }
 0x153   :  { %787 = vadd.xlane.f32.xlu1 %v786_v6  ;;  %784 = vadd.xlane.f32.xlu0 %v783_v21  ;;  %v798_v21 = vsel %vm278_vm0, %v195_v11, 0.0 }
 0x154   :  { %v8654_v42 = vpop.xlane.xlu1 %583  ;;  %v8658_v0 = vpop.xlane.xlu0 %580 }
 0x155   :  { %11892 = vst [vmem:[#allocation57_spill] sm:$0xff] %v8654_v42  ;;  %11893 = vst [vmem:[#allocation58_spill] sm:$0xff] %v8658_v0  ;;  %v196_v0 = vld [vmem:[%s11668_s0 + $0x570] sm:$0xff] }
 0x156   :  { %v801_v11 = vsel %vm278_vm0, %v196_v0, 0.0  ;;  %v201_v0 = vld [vmem:[%s11668_s0 + $0x598] sm:$0xff] }
 0x157   :  { %793 = vadd.xlane.f32.xlu1 %v792_v51  ;;  %790 = vadd.xlane.f32.xlu0 %v789_v55  ;;  %v804_v55 = vsel %vm278_vm0, %v197_v43, 0.0 }
 0x158   :  { %v8666_v6 = vpop.xlane.xlu1 %589  ;;  %v8670_v42 = vpop.xlane.xlu0 %586 }
 0x159   :  { %11894 = vst [vmem:[#allocation59_spill] sm:$0xff] %v8666_v6  ;;  %11895 = vst [vmem:[#allocation60_spill] sm:$0xff] %v8670_v42  ;;  %v198_v42 = vld [vmem:[%s11668_s0 + $0x580] sm:$0xff] }
 0x15a   :  { %v807_v43 = vsel %vm278_vm0, %v198_v42, 0.0  ;;  %v203_v42 = vld [vmem:[%s11668_s0 + $0x5a8] sm:$0xff] }
 0x15b   :  { %799 = vadd.xlane.f32.xlu1 %v798_v21  ;;  %796 = vadd.xlane.f32.xlu0 %v795_v24  ;;  %v810_v24 = vsel %vm278_vm0, %v199_v15, 0.0 }
 0x15c   :  { %v8678_v51 = vpop.xlane.xlu1 %595  ;;  %v8682_v6 = vpop.xlane.xlu0 %592 }
 0x15d   :  { %11896 = vst [vmem:[#allocation61_spill] sm:$0xff] %v8678_v51  ;;  %11897 = vst [vmem:[#allocation62_spill] sm:$0xff] %v8682_v6  ;;  %v200_v6 = vld [vmem:[%s11668_s0 + $0x590] sm:$0xff] }
 0x15e   :  { %v813_v15 = vsel %vm278_vm0, %v200_v6, 0.0  ;;  %v205_v6 = vld [vmem:[%s11668_s0 + $0x5b8] sm:$0xff] }
 0x15f   :  { %805 = vadd.xlane.f32.xlu1 %v804_v55  ;;  %802 = vadd.xlane.f32.xlu0 %v801_v11  ;;  %v816_v11 = vsel %vm278_vm0, %v201_v0, 0.0 }
 0x160   :  { %v8690_v21 = vpop.xlane.xlu1 %601  ;;  %v8694_v51 = vpop.xlane.xlu0 %598 }
 0x161   :  { %11898 = vst [vmem:[#allocation63_spill] sm:$0xff] %v8690_v21  ;;  %11899 = vst [vmem:[#allocation64_spill] sm:$0xff] %v8694_v51  ;;  %v202_v51 = vld [vmem:[%s11668_s0 + $0x5a0] sm:$0xff] }
 0x162   :  { %v819_v0 = vsel %vm278_vm0, %v202_v51, 0.0  ;;  %v207_v51 = vld [vmem:[%s11668_s0 + $0x5c8] sm:$0xff] }
 0x163   :  { %811 = vadd.xlane.f32.xlu1 %v810_v24  ;;  %808 = vadd.xlane.f32.xlu0 %v807_v43  ;;  %v822_v43 = vsel %vm278_vm0, %v203_v42, 0.0 }
 0x164   :  { %v8702_v55 = vpop.xlane.xlu1 %607  ;;  %v8706_v21 = vpop.xlane.xlu0 %604 }
 0x165   :  { %11900 = vst [vmem:[#allocation65_spill] sm:$0xff] %v8702_v55  ;;  %11901 = vst [vmem:[#allocation66_spill] sm:$0xff] %v8706_v21  ;;  %v204_v21 = vld [vmem:[%s11668_s0 + $0x5b0] sm:$0xff] }
 0x166   :  { %v825_v42 = vsel %vm278_vm0, %v204_v21, 0.0  ;;  %v209_v21 = vld [vmem:[%s11668_s0 + $0x5d8] sm:$0xff] }
 0x167   :  { %817 = vadd.xlane.f32.xlu1 %v816_v11  ;;  %814 = vadd.xlane.f32.xlu0 %v813_v15  ;;  %v828_v15 = vsel %vm278_vm0, %v205_v6, 0.0 }
 0x168   :  { %v8714_v24 = vpop.xlane.xlu1 %613  ;;  %v8718_v55 = vpop.xlane.xlu0 %610 }
 0x169   :  { %11902 = vst [vmem:[#allocation67_spill] sm:$0xff] %v8714_v24  ;;  %11903 = vst [vmem:[#allocation68_spill] sm:$0xff] %v8718_v55  ;;  %v206_v55 = vld [vmem:[%s11668_s0 + $0x5c0] sm:$0xff] }
 0x16a   :  { %v831_v6 = vsel %vm278_vm0, %v206_v55, 0.0  ;;  %v211_v55 = vld [vmem:[%s11668_s0 + $0x5e8] sm:$0xff] }
 0x16b   :  { %823 = vadd.xlane.f32.xlu1 %v822_v43  ;;  %820 = vadd.xlane.f32.xlu0 %v819_v0  ;;  %v834_v0 = vsel %vm278_vm0, %v207_v51, 0.0 }
 0x16c   :  { %v8726_v11 = vpop.xlane.xlu1 %619  ;;  %v8730_v24 = vpop.xlane.xlu0 %616 }
 0x16d   :  { %11904 = vst [vmem:[#allocation69_spill] sm:$0xff] %v8726_v11  ;;  %11905 = vst [vmem:[#allocation70_spill] sm:$0xff] %v8730_v24  ;;  %v208_v24 = vld [vmem:[%s11668_s0 + $0x5d0] sm:$0xff] }
 0x16e   :  { %v837_v51 = vsel %vm278_vm0, %v208_v24, 0.0  ;;  %v213_v24 = vld [vmem:[%s11668_s0 + $0x5f8] sm:$0xff] }
 0x16f   :  { %829 = vadd.xlane.f32.xlu1 %v828_v15  ;;  %826 = vadd.xlane.f32.xlu0 %v825_v42  ;;  %v840_v42 = vsel %vm278_vm0, %v209_v21, 0.0 }
 0x170   :  { %v8738_v43 = vpop.xlane.xlu1 %625  ;;  %v8742_v11 = vpop.xlane.xlu0 %622 }
 0x171   :  { %11906 = vst [vmem:[#allocation71_spill] sm:$0xff] %v8738_v43  ;;  %11907 = vst [vmem:[#allocation72_spill] sm:$0xff] %v8742_v11  ;;  %v210_v11 = vld [vmem:[%s11668_s0 + $0x5e0] sm:$0xff] }
 0x172   :  { %v843_v21 = vsel %vm278_vm0, %v210_v11, 0.0  ;;  %v215_v11 = vld [vmem:[%s11668_s0 + $0x608] sm:$0xff] }
 0x173   :  { %835 = vadd.xlane.f32.xlu1 %v834_v0  ;;  %832 = vadd.xlane.f32.xlu0 %v831_v6  ;;  %v846_v6 = vsel %vm278_vm0, %v211_v55, 0.0 }
 0x174   :  { %v8750_v15 = vpop.xlane.xlu1 %631  ;;  %v8754_v43 = vpop.xlane.xlu0 %628 }
 0x175   :  { %11908 = vst [vmem:[#allocation73_spill] sm:$0xff] %v8750_v15  ;;  %11909 = vst [vmem:[#allocation74_spill] sm:$0xff] %v8754_v43  ;;  %v212_v43 = vld [vmem:[%s11668_s0 + $0x5f0] sm:$0xff] }
 0x176   :  { %v849_v55 = vsel %vm278_vm0, %v212_v43, 0.0  ;;  %v217_v43 = vld [vmem:[%s11668_s0 + $0x618] sm:$0xff] }
 0x177   :  { %841 = vadd.xlane.f32.xlu1 %v840_v42  ;;  %838 = vadd.xlane.f32.xlu0 %v837_v51  ;;  %v852_v51 = vsel %vm278_vm0, %v213_v24, 0.0 }
 0x178   :  { %v8762_v0 = vpop.xlane.xlu1 %637  ;;  %v8766_v15 = vpop.xlane.xlu0 %634 }
 0x179   :  { %11910 = vst [vmem:[#allocation75_spill] sm:$0xff] %v8762_v0  ;;  %11911 = vst [vmem:[#allocation76_spill] sm:$0xff] %v8766_v15  ;;  %v214_v15 = vld [vmem:[%s11668_s0 + $0x600] sm:$0xff] }
 0x17a   :  { %v855_v24 = vsel %vm278_vm0, %v214_v15, 0.0  ;;  %v219_v15 = vld [vmem:[%s11668_s0 + $0x628] sm:$0xff] }
 0x17b   :  { %847 = vadd.xlane.f32.xlu1 %v846_v6  ;;  %844 = vadd.xlane.f32.xlu0 %v843_v21  ;;  %v858_v21 = vsel %vm278_vm0, %v215_v11, 0.0 }
 0x17c   :  { %v8774_v42 = vpop.xlane.xlu1 %643  ;;  %v8778_v0 = vpop.xlane.xlu0 %640 }
 0x17d   :  { %11912 = vst [vmem:[#allocation77_spill] sm:$0xff] %v8774_v42  ;;  %11913 = vst [vmem:[#allocation78_spill] sm:$0xff] %v8778_v0  ;;  %v216_v0 = vld [vmem:[%s11668_s0 + $0x610] sm:$0xff] }
 0x17e   :  { %v861_v11 = vsel %vm278_vm0, %v216_v0, 0.0  ;;  %v221_v0 = vld [vmem:[%s11668_s0 + $0x638] sm:$0xff] }
 0x17f   :  { %853 = vadd.xlane.f32.xlu1 %v852_v51  ;;  %850 = vadd.xlane.f32.xlu0 %v849_v55  ;;  %v864_v55 = vsel %vm278_vm0, %v217_v43, 0.0 }
 0x180   :  { %v8786_v6 = vpop.xlane.xlu1 %649  ;;  %v8790_v42 = vpop.xlane.xlu0 %646 }
 0x181   :  { %11914 = vst [vmem:[#allocation79_spill] sm:$0xff] %v8786_v6  ;;  %11915 = vst [vmem:[#allocation80_spill] sm:$0xff] %v8790_v42  ;;  %v218_v42 = vld [vmem:[%s11668_s0 + $0x620] sm:$0xff] }
 0x182   :  { %v867_v43 = vsel %vm278_vm0, %v218_v42, 0.0  ;;  %v223_v42 = vld [vmem:[%s11668_s0 + $0x648] sm:$0xff] }
 0x183   :  { %859 = vadd.xlane.f32.xlu1 %v858_v21  ;;  %856 = vadd.xlane.f32.xlu0 %v855_v24  ;;  %v870_v24 = vsel %vm278_vm0, %v219_v15, 0.0 }
 0x184   :  { %v8798_v51 = vpop.xlane.xlu1 %655  ;;  %v8802_v6 = vpop.xlane.xlu0 %652 }
 0x185   :  { %11916 = vst [vmem:[#allocation81_spill] sm:$0xff] %v8798_v51  ;;  %11917 = vst [vmem:[#allocation82_spill] sm:$0xff] %v8802_v6  ;;  %v220_v6 = vld [vmem:[%s11668_s0 + $0x630] sm:$0xff] }
 0x186   :  { %v873_v15 = vsel %vm278_vm0, %v220_v6, 0.0  ;;  %v7744_v6 = vmov 0  }
 0x187   :  { %865 = vadd.xlane.f32.xlu1 %v864_v55  ;;  %862 = vadd.xlane.f32.xlu0 %v861_v11  ;;  %v876_v11 = vsel %vm278_vm0, %v221_v0, 0.0 }
 0x188   :  { %v8810_v21 = vpop.xlane.xlu1 %661  ;;  %v8814_v51 = vpop.xlane.xlu0 %658  ;;  %7689 = vset.pattern.permute.xlu1 %v7744_v6  ;;  %7688 = vset.pattern.permute.xlu0 %v7744_v6  ;;  %v227_v6 = vld [vmem:[%s11668_s0 + $0x668] sm:$0xff] }
 0x189   :  { %11918 = vst [vmem:[#allocation83_spill] sm:$0xff] %v8810_v21  ;;  %11919 = vst [vmem:[#allocation84_spill] sm:$0xff] %v8814_v51  ;;  %v222_v51 = vld [vmem:[%s11668_s0 + $0x640] sm:$0xff] }
 0x18a   :  { %v879_v0 = vsel %vm278_vm0, %v222_v51, 0.0 }
 0x18b   :  { %871 = vadd.xlane.f32.xlu1 %v870_v24  ;;  %868 = vadd.xlane.f32.xlu0 %v867_v43  ;;  %v882_v43 = vsel %vm278_vm0, %v223_v42, 0.0 }
 0x18c   :  { %v8822_v55 = vpop.xlane.xlu1 %667  ;;  %v8826_v21 = vpop.xlane.xlu0 %664 }
 0x18d   :  { %11920 = vst [vmem:[#allocation85_spill] sm:$0xff] %v8822_v55  ;;  %11921 = vst [vmem:[#allocation86_spill] sm:$0xff] %v8826_v21  ;;  %v225_v21 = vld [vmem:[%s11668_s0 + $0x658] sm:$0xff] }
 0x18e   :  { %v888_v42 = vsel %vm278_vm0, %v225_v21, 0.0 }
 0x18f   :  { %877 = vadd.xlane.f32.xlu1 %v876_v11  ;;  %874 = vadd.xlane.f32.xlu0 %v873_v15  ;;  %v224_v11 = vld [vmem:[%s11668_s0 + $0x650] sm:$0xff] }
 0x190   :  { %v8834_v24 = vpop.xlane.xlu1 %673  ;;  %v8838_v55 = vpop.xlane.xlu0 %670  ;;  %v885_v51 = vsel %vm278_vm0, %v224_v11, 0.0  ;;  %v229_v11 = vld [vmem:[%s11668_s0 + $0x678] sm:$0xff] }
 0x191   :  { %11922 = vst [vmem:[#allocation87_spill] sm:$0xff] %v8834_v24  ;;  %11923 = vst [vmem:[#allocation88_spill] sm:$0xff] %v8838_v55  ;;  %v226_v24 = vld [vmem:[%s11668_s0 + $0x660] sm:$0xff] }
 0x192   :  { %v891_v21 = vsel %vm278_vm0, %v226_v24, 0.0  ;;  %v231_v24 = vld [vmem:[%s11668_s0 + $0x688] sm:$0xff] }
 0x193   :  { %883 = vadd.xlane.f32.xlu1 %v882_v43  ;;  %880 = vadd.xlane.f32.xlu0 %v879_v0  ;;  %v894_v0 = vsel %vm278_vm0, %v227_v6, 0.0 }
 0x194   :  { %v8846_v15 = vpop.xlane.xlu1 %679  ;;  %v8850_v55 = vpop.xlane.xlu0 %676 }
 0x195   :  { %11924 = vst [vmem:[#allocation89_spill] sm:$0xff] %v8846_v15  ;;  %11925 = vst [vmem:[#allocation90_spill] sm:$0xff] %v8850_v55  ;;  %v228_v55 = vld [vmem:[%s11668_s0 + $0x670] sm:$0xff] }
 0x196   :  { %v897_v6 = vsel %vm278_vm0, %v228_v55, 0.0  ;;  %v233_v55 = vld [vmem:[%s11668_s0 + $0x698] sm:$0xff] }
 0x197   :  { %889 = vadd.xlane.f32.xlu1 %v888_v42  ;;  %886 = vadd.xlane.f32.xlu0 %v885_v51  ;;  %v900_v51 = vsel %vm278_vm0, %v229_v11, 0.0 }
 0x198   :  { %v8858_v43 = vpop.xlane.xlu1 %685  ;;  %v8862_v15 = vpop.xlane.xlu0 %682 }
 0x199   :  { %11926 = vst [vmem:[#allocation91_spill] sm:$0xff] %v8858_v43  ;;  %11927 = vst [vmem:[#allocation92_spill] sm:$0xff] %v8862_v15  ;;  %v230_v15 = vld [vmem:[%s11668_s0 + $0x680] sm:$0xff] }
 0x19a   :  { %v903_v11 = vsel %vm278_vm0, %v230_v15, 0.0  ;;  %v235_v15 = vld [vmem:[%s11668_s0 + $0x6a8] sm:$0xff] }
 0x19b   :  { %895 = vadd.xlane.f32.xlu1 %v894_v0  ;;  %892 = vadd.xlane.f32.xlu0 %v891_v21  ;;  %v906_v21 = vsel %vm278_vm0, %v231_v24, 0.0 }
 0x19c   :  { %v8870_v42 = vpop.xlane.xlu1 %691  ;;  %v8874_v43 = vpop.xlane.xlu0 %688 }
 0x19d   :  { %11928 = vst [vmem:[#allocation93_spill] sm:$0xff] %v8870_v42  ;;  %11929 = vst [vmem:[#allocation94_spill] sm:$0xff] %v8874_v43  ;;  %v232_v43 = vld [vmem:[%s11668_s0 + $0x690] sm:$0xff] }
 0x19e   :  { %v909_v24 = vsel %vm278_vm0, %v232_v43, 0.0  ;;  %v237_v43 = vld [vmem:[%s11668_s0 + $0x6b8] sm:$0xff] }
 0x19f   :  { %901 = vadd.xlane.f32.xlu1 %v900_v51  ;;  %898 = vadd.xlane.f32.xlu0 %v897_v6  ;;  %v912_v6 = vsel %vm278_vm0, %v233_v55, 0.0 }
 0x1a0   :  { %v8882_v0 = vpop.xlane.xlu1 %697  ;;  %v8886_v42 = vpop.xlane.xlu0 %694 }
 0x1a1   :  { %11930 = vst [vmem:[#allocation95_spill] sm:$0xff] %v8882_v0  ;;  %11931 = vst [vmem:[#allocation96_spill] sm:$0xff] %v8886_v42  ;;  %v234_v42 = vld [vmem:[%s11668_s0 + $0x6a0] sm:$0xff] }
 0x1a2   :  { %v915_v55 = vsel %vm278_vm0, %v234_v42, 0.0  ;;  %v239_v42 = vld [vmem:[%s11668_s0 + $0x6c8] sm:$0xff] }
 0x1a3   :  { %907 = vadd.xlane.f32.xlu1 %v906_v21  ;;  %904 = vadd.xlane.f32.xlu0 %v903_v11  ;;  %v918_v11 = vsel %vm278_vm0, %v235_v15, 0.0 }
 0x1a4   :  { %v8894_v51 = vpop.xlane.xlu1 %703  ;;  %v8898_v0 = vpop.xlane.xlu0 %700 }
 0x1a5   :  { %11932 = vst [vmem:[#allocation97_spill] sm:$0xff] %v8894_v51  ;;  %11933 = vst [vmem:[#allocation98_spill] sm:$0xff] %v8898_v0  ;;  %v236_v0 = vld [vmem:[%s11668_s0 + $0x6b0] sm:$0xff] }
 0x1a6   :  { %v921_v15 = vsel %vm278_vm0, %v236_v0, 0.0  ;;  %v241_v0 = vld [vmem:[%s11668_s0 + $0x6d8] sm:$0xff] }
 0x1a7   :  { %913 = vadd.xlane.f32.xlu1 %v912_v6  ;;  %910 = vadd.xlane.f32.xlu0 %v909_v24  ;;  %v924_v24 = vsel %vm278_vm0, %v237_v43, 0.0 }
 0x1a8   :  { %v8906_v21 = vpop.xlane.xlu1 %709  ;;  %v8910_v51 = vpop.xlane.xlu0 %706 }
 0x1a9   :  { %11934 = vst [vmem:[#allocation99_spill] sm:$0xff] %v8906_v21  ;;  %11935 = vst [vmem:[#allocation100_spill] sm:$0xff] %v8910_v51  ;;  %v238_v51 = vld [vmem:[%s11668_s0 + $0x6c0] sm:$0xff] }
 0x1aa   :  { %v927_v43 = vsel %vm278_vm0, %v238_v51, 0.0  ;;  %v243_v51 = vld [vmem:[%s11668_s0 + $0x6e8] sm:$0xff] }
 0x1ab   :  { %919 = vadd.xlane.f32.xlu1 %v918_v11  ;;  %916 = vadd.xlane.f32.xlu0 %v915_v55  ;;  %v930_v55 = vsel %vm278_vm0, %v239_v42, 0.0 }
 0x1ac   :  { %v8918_v6 = vpop.xlane.xlu1 %715  ;;  %v8922_v21 = vpop.xlane.xlu0 %712 }
 0x1ad   :  { %11936 = vst [vmem:[#allocation101_spill] sm:$0xff] %v8918_v6  ;;  %11937 = vst [vmem:[#allocation102_spill] sm:$0xff] %v8922_v21  ;;  %v240_v21 = vld [vmem:[%s11668_s0 + $0x6d0] sm:$0xff] }
 0x1ae   :  { %v933_v42 = vsel %vm278_vm0, %v240_v21, 0.0  ;;  %v245_v21 = vld [vmem:[%s11668_s0 + $0x6f8] sm:$0xff] }
 0x1af   :  { %925 = vadd.xlane.f32.xlu1 %v924_v24  ;;  %922 = vadd.xlane.f32.xlu0 %v921_v15  ;;  %v936_v15 = vsel %vm278_vm0, %v241_v0, 0.0 }
 0x1b0   :  { %v8930_v11 = vpop.xlane.xlu1 %721  ;;  %v8934_v6 = vpop.xlane.xlu0 %718 }
 0x1b1   :  { %11938 = vst [vmem:[#allocation103_spill] sm:$0xff] %v8930_v11  ;;  %11939 = vst [vmem:[#allocation104_spill] sm:$0xff] %v8934_v6  ;;  %v242_v6 = vld [vmem:[%s11668_s0 + $0x6e0] sm:$0xff] }
 0x1b2   :  { %v939_v0 = vsel %vm278_vm0, %v242_v6, 0.0  ;;  %v247_v6 = vld [vmem:[%s11668_s0 + $0x708] sm:$0xff] }
 0x1b3   :  { %931 = vadd.xlane.f32.xlu1 %v930_v55  ;;  %928 = vadd.xlane.f32.xlu0 %v927_v43  ;;  %v942_v43 = vsel %vm278_vm0, %v243_v51, 0.0 }
 0x1b4   :  { %v8942_v24 = vpop.xlane.xlu1 %727  ;;  %v8946_v11 = vpop.xlane.xlu0 %724 }
 0x1b5   :  { %11940 = vst [vmem:[#allocation105_spill] sm:$0xff] %v8942_v24  ;;  %11941 = vst [vmem:[#allocation106_spill] sm:$0xff] %v8946_v11  ;;  %v244_v11 = vld [vmem:[%s11668_s0 + $0x6f0] sm:$0xff] }
 0x1b6   :  { %v945_v51 = vsel %vm278_vm0, %v244_v11, 0.0  ;;  %v249_v11 = vld [vmem:[%s11668_s0 + $0x718] sm:$0xff] }
 0x1b7   :  { %937 = vadd.xlane.f32.xlu1 %v936_v15  ;;  %934 = vadd.xlane.f32.xlu0 %v933_v42  ;;  %v948_v42 = vsel %vm278_vm0, %v245_v21, 0.0 }
 0x1b8   :  { %v8954_v55 = vpop.xlane.xlu1 %733  ;;  %v8958_v24 = vpop.xlane.xlu0 %730 }
 0x1b9   :  { %11942 = vst [vmem:[#allocation107_spill] sm:$0xff] %v8954_v55  ;;  %11943 = vst [vmem:[#allocation108_spill] sm:$0xff] %v8958_v24  ;;  %v246_v24 = vld [vmem:[%s11668_s0 + $0x700] sm:$0xff] }
 0x1ba   :  { %v951_v21 = vsel %vm278_vm0, %v246_v24, 0.0  ;;  %v251_v24 = vld [vmem:[%s11668_s0 + $0x728] sm:$0xff] }
 0x1bb   :  { %943 = vadd.xlane.f32.xlu1 %v942_v43  ;;  %940 = vadd.xlane.f32.xlu0 %v939_v0  ;;  %v954_v0 = vsel %vm278_vm0, %v247_v6, 0.0 }
 0x1bc   :  { %v8966_v15 = vpop.xlane.xlu1 %739  ;;  %v8970_v55 = vpop.xlane.xlu0 %736 }
 0x1bd   :  { %11944 = vst [vmem:[#allocation109_spill] sm:$0xff] %v8966_v15  ;;  %11945 = vst [vmem:[#allocation110_spill] sm:$0xff] %v8970_v55  ;;  %v248_v55 = vld [vmem:[%s11668_s0 + $0x710] sm:$0xff] }
 0x1be   :  { %v957_v6 = vsel %vm278_vm0, %v248_v55, 0.0  ;;  %v253_v55 = vld [vmem:[%s11668_s0 + $0x738] sm:$0xff] }
 0x1bf   :  { %949 = vadd.xlane.f32.xlu1 %v948_v42  ;;  %946 = vadd.xlane.f32.xlu0 %v945_v51  ;;  %v960_v51 = vsel %vm278_vm0, %v249_v11, 0.0 }
 0x1c0   :  { %v8978_v43 = vpop.xlane.xlu1 %745  ;;  %v8982_v15 = vpop.xlane.xlu0 %742 }
 0x1c1   :  { %11946 = vst [vmem:[#allocation111_spill] sm:$0xff] %v8978_v43  ;;  %11947 = vst [vmem:[#allocation112_spill] sm:$0xff] %v8982_v15  ;;  %v250_v15 = vld [vmem:[%s11668_s0 + $0x720] sm:$0xff] }
 0x1c2   :  { %v963_v11 = vsel %vm278_vm0, %v250_v15, 0.0  ;;  %v255_v15 = vld [vmem:[%s11668_s0 + $0x748] sm:$0xff] }
 0x1c3   :  { %955 = vadd.xlane.f32.xlu1 %v954_v0  ;;  %952 = vadd.xlane.f32.xlu0 %v951_v21  ;;  %v966_v21 = vsel %vm278_vm0, %v251_v24, 0.0 }
 0x1c4   :  { %v8990_v42 = vpop.xlane.xlu1 %751  ;;  %v8994_v43 = vpop.xlane.xlu0 %748 }
 0x1c5   :  { %11948 = vst [vmem:[#allocation113_spill] sm:$0xff] %v8990_v42  ;;  %11949 = vst [vmem:[#allocation114_spill] sm:$0xff] %v8994_v43  ;;  %v252_v43 = vld [vmem:[%s11668_s0 + $0x730] sm:$0xff] }
 0x1c6   :  { %v969_v24 = vsel %vm278_vm0, %v252_v43, 0.0  ;;  %v257_v43 = vld [vmem:[%s11668_s0 + $0x758] sm:$0xff] }
 0x1c7   :  { %961 = vadd.xlane.f32.xlu1 %v960_v51  ;;  %958 = vadd.xlane.f32.xlu0 %v957_v6  ;;  %v972_v6 = vsel %vm278_vm0, %v253_v55, 0.0 }
 0x1c8   :  { %v9002_v0 = vpop.xlane.xlu1 %757  ;;  %v9006_v42 = vpop.xlane.xlu0 %754 }
 0x1c9   :  { %11950 = vst [vmem:[#allocation115_spill] sm:$0xff] %v9002_v0  ;;  %11951 = vst [vmem:[#allocation116_spill] sm:$0xff] %v9006_v42  ;;  %v254_v42 = vld [vmem:[%s11668_s0 + $0x740] sm:$0xff] }
 0x1ca   :  { %v975_v55 = vsel %vm278_vm0, %v254_v42, 0.0  ;;  %v259_v42 = vld [vmem:[%s11668_s0 + $0x768] sm:$0xff] }
 0x1cb   :  { %967 = vadd.xlane.f32.xlu1 %v966_v21  ;;  %964 = vadd.xlane.f32.xlu0 %v963_v11  ;;  %v978_v11 = vsel %vm278_vm0, %v255_v15, 0.0 }
 0x1cc   :  { %v9014_v51 = vpop.xlane.xlu1 %763  ;;  %v9018_v0 = vpop.xlane.xlu0 %760 }
 0x1cd   :  { %11952 = vst [vmem:[#allocation117_spill] sm:$0xff] %v9014_v51  ;;  %11953 = vst [vmem:[#allocation118_spill] sm:$0xff] %v9018_v0  ;;  %v256_v0 = vld [vmem:[%s11668_s0 + $0x750] sm:$0xff] }
 0x1ce   :  { %v981_v15 = vsel %vm278_vm0, %v256_v0, 0.0  ;;  %v261_v0 = vld [vmem:[%s11668_s0 + $0x778] sm:$0xff] }
 0x1cf   :  { %973 = vadd.xlane.f32.xlu1 %v972_v6  ;;  %970 = vadd.xlane.f32.xlu0 %v969_v24  ;;  %v984_v24 = vsel %vm278_vm0, %v257_v43, 0.0 }
 0x1d0   :  { %v9026_v21 = vpop.xlane.xlu1 %769  ;;  %v9030_v51 = vpop.xlane.xlu0 %766 }
 0x1d1   :  { %11954 = vst [vmem:[#allocation119_spill] sm:$0xff] %v9026_v21  ;;  %11955 = vst [vmem:[#allocation120_spill] sm:$0xff] %v9030_v51  ;;  %v258_v51 = vld [vmem:[%s11668_s0 + $0x760] sm:$0xff] }
 0x1d2   :  { %v987_v43 = vsel %vm278_vm0, %v258_v51, 0.0  ;;  %v263_v51 = vld [vmem:[%s11668_s0 + $0x788] sm:$0xff] }
 0x1d3   :  { %979 = vadd.xlane.f32.xlu1 %v978_v11  ;;  %976 = vadd.xlane.f32.xlu0 %v975_v55  ;;  %v990_v55 = vsel %vm278_vm0, %v259_v42, 0.0 }
 0x1d4   :  { %v9038_v6 = vpop.xlane.xlu1 %775  ;;  %v9042_v21 = vpop.xlane.xlu0 %772 }
 0x1d5   :  { %11956 = vst [vmem:[#allocation121_spill] sm:$0xff] %v9038_v6  ;;  %11957 = vst [vmem:[#allocation122_spill] sm:$0xff] %v9042_v21  ;;  %v260_v21 = vld [vmem:[%s11668_s0 + $0x770] sm:$0xff] }
 0x1d6   :  { %v993_v42 = vsel %vm278_vm0, %v260_v21, 0.0  ;;  %v265_v21 = vld [vmem:[%s11668_s0 + $0x798] sm:$0xff] }
 0x1d7   :  { %985 = vadd.xlane.f32.xlu1 %v984_v24  ;;  %982 = vadd.xlane.f32.xlu0 %v981_v15  ;;  %v996_v15 = vsel %vm278_vm0, %v261_v0, 0.0 }
 0x1d8   :  { %v9050_v11 = vpop.xlane.xlu1 %781  ;;  %v9054_v6 = vpop.xlane.xlu0 %778 }
 0x1d9   :  { %11958 = vst [vmem:[#allocation123_spill] sm:$0xff] %v9050_v11  ;;  %11959 = vst [vmem:[#allocation124_spill] sm:$0xff] %v9054_v6  ;;  %v262_v6 = vld [vmem:[%s11668_s0 + $0x780] sm:$0xff] }
 0x1da   :  { %v999_v0 = vsel %vm278_vm0, %v262_v6, 0.0  ;;  %v267_v6 = vld [vmem:[%s11668_s0 + $0x7a8] sm:$0xff] }
 0x1db   :  { %991 = vadd.xlane.f32.xlu1 %v990_v55  ;;  %988 = vadd.xlane.f32.xlu0 %v987_v43  ;;  %v1002_v43 = vsel %vm278_vm0, %v263_v51, 0.0 }
 0x1dc   :  { %v9062_v24 = vpop.xlane.xlu1 %787  ;;  %v9066_v11 = vpop.xlane.xlu0 %784 }
 0x1dd   :  { %11960 = vst [vmem:[#allocation125_spill] sm:$0xff] %v9062_v24  ;;  %11961 = vst [vmem:[#allocation126_spill] sm:$0xff] %v9066_v11  ;;  %v264_v11 = vld [vmem:[%s11668_s0 + $0x790] sm:$0xff] }
 0x1de   :  { %v1005_v51 = vsel %vm278_vm0, %v264_v11, 0.0  ;;  %v269_v11 = vld [vmem:[%s11668_s0 + $0x7b8] sm:$0xff] }
 0x1df   :  { %997 = vadd.xlane.f32.xlu1 %v996_v15  ;;  %994 = vadd.xlane.f32.xlu0 %v993_v42  ;;  %v1008_v42 = vsel %vm278_vm0, %v265_v21, 0.0 }
 0x1e0   :  { %v9074_v55 = vpop.xlane.xlu1 %793  ;;  %v9078_v24 = vpop.xlane.xlu0 %790 }
 0x1e1   :  { %11962 = vst [vmem:[#allocation127_spill] sm:$0xff] %v9074_v55  ;;  %11963 = vst [vmem:[#allocation128_spill] sm:$0xff] %v9078_v24  ;;  %v266_v24 = vld [vmem:[%s11668_s0 + $0x7a0] sm:$0xff] }
 0x1e2   :  { %v1011_v21 = vsel %vm278_vm0, %v266_v24, 0.0  ;;  %v271_v24 = vld [vmem:[%s11668_s0 + $0x7c8] sm:$0xff] }
 0x1e3   :  { %1003 = vadd.xlane.f32.xlu1 %v1002_v43  ;;  %1000 = vadd.xlane.f32.xlu0 %v999_v0  ;;  %v1014_v0 = vsel %vm278_vm0, %v267_v6, 0.0 }
 0x1e4   :  { %v9086_v15 = vpop.xlane.xlu1 %799  ;;  %v9090_v55 = vpop.xlane.xlu0 %796 }
 0x1e5   :  { %11964 = vst [vmem:[#allocation129_spill] sm:$0xff] %v9086_v15  ;;  %11965 = vst [vmem:[#allocation130_spill] sm:$0xff] %v9090_v55  ;;  %v268_v55 = vld [vmem:[%s11668_s0 + $0x7b0] sm:$0xff] }
 0x1e6   :  { %v1017_v6 = vsel %vm278_vm0, %v268_v55, 0.0  ;;  %v273_v55 = vld [vmem:[%s11668_s0 + $0x7d8] sm:$0xff] }
 0x1e7   :  { %1009 = vadd.xlane.f32.xlu1 %v1008_v42  ;;  %1006 = vadd.xlane.f32.xlu0 %v1005_v51  ;;  %v1020_v51 = vsel %vm278_vm0, %v269_v11, 0.0 }
 0x1e8   :  { %v9098_v43 = vpop.xlane.xlu1 %805  ;;  %v9102_v15 = vpop.xlane.xlu0 %802 }
 0x1e9   :  { %11966 = vst [vmem:[#allocation131_spill] sm:$0xff] %v9098_v43  ;;  %11967 = vst [vmem:[#allocation132_spill] sm:$0xff] %v9102_v15  ;;  %v270_v15 = vld [vmem:[%s11668_s0 + $0x7c0] sm:$0xff] }
 0x1ea   :  { %v1023_v11 = vsel %vm278_vm0, %v270_v15, 0.0  ;;  %v275_v15 = vld [vmem:[%s11668_s0 + $0x7e8] sm:$0xff] }
 0x1eb   :  { %1015 = vadd.xlane.f32.xlu1 %v1014_v0  ;;  %1012 = vadd.xlane.f32.xlu0 %v1011_v21  ;;  %v1026_v21 = vsel %vm278_vm0, %v271_v24, 0.0 }
 0x1ec   :  { %v9110_v42 = vpop.xlane.xlu1 %811  ;;  %v9114_v43 = vpop.xlane.xlu0 %808 }
 0x1ed   :  { %11968 = vst [vmem:[#allocation133_spill] sm:$0xff] %v9110_v42  ;;  %11969 = vst [vmem:[#allocation134_spill] sm:$0xff] %v9114_v43  ;;  %v272_v43 = vld [vmem:[%s11668_s0 + $0x7d0] sm:$0xff] }
 0x1ee   :  { %v1029_v24 = vsel %vm278_vm0, %v272_v43, 0.0  ;;  %v277_v43 = vld [vmem:[%s11668_s0 + $0x7f8] sm:$0xff] }
 0x1ef   :  { %1021 = vadd.xlane.f32.xlu1 %v1020_v51  ;;  %1018 = vadd.xlane.f32.xlu0 %v1017_v6  ;;  %v1032_v6 = vsel %vm278_vm0, %v273_v55, 0.0 }
 0x1f0   :  { %v9122_v0 = vpop.xlane.xlu1 %817  ;;  %v9126_v42 = vpop.xlane.xlu0 %814 }
 0x1f1   :  { %11970 = vst [vmem:[#allocation135_spill] sm:$0xff] %v9122_v0  ;;  %11971 = vst [vmem:[#allocation136_spill] sm:$0xff] %v9126_v42  ;;  %v274_v42 = vld [vmem:[%s11668_s0 + $0x7e0] sm:$0xff] }
 0x1f2   :  { %v1035_v55 = vsel %vm278_vm0, %v274_v42, 0.0  ;;  %v7745_v42 = vmov 839922192  }
 0x1f3   :  { %1027 = vadd.xlane.f32.xlu1 %v1026_v21  ;;  %1024 = vadd.xlane.f32.xlu0 %v1023_v11  ;;  %v1038_v11 = vsel %vm278_vm0, %v275_v15, 0.0 }
 0x1f4   :  { %v9134_v51 = vpop.xlane.xlu1 %823  ;;  %v9138_v0 = vpop.xlane.xlu0 %820 }
 0x1f5   :  { %11972 = vst [vmem:[#allocation137_spill] sm:$0xff] %v9134_v51  ;;  %11973 = vst [vmem:[#allocation138_spill] sm:$0xff] %v9138_v0  ;;  %v276_v0 = vld [vmem:[%s11668_s0 + $0x7f0] sm:$0xff] }
 0x1f6   :  { %v1041_v15 = vsel %vm278_vm0, %v276_v0, 0.0 }
 0x1f7   :  { %1033 = vadd.xlane.f32.xlu1 %v1032_v6  ;;  %1030 = vadd.xlane.f32.xlu0 %v1029_v24  ;;  %v1044_v24 = vsel %vm278_vm0, %v277_v43, 0.0  ;;  %v1314_v43 = vunpack.c.0.s8 %v1313_v37  ;;  %vm7209_vm0 = vcmask 1041409  }
 0x1f8   :  { %v9146_v21 = vpop.xlane.xlu1 %829  ;;  %v9150_v51 = vpop.xlane.xlu0 %826 }
 0x1f9   :  { %11974 = vst [vmem:[#allocation139_spill] sm:$0xff] %v9146_v21  ;;  %11975 = vst [vmem:[#allocation140_spill] sm:$0xff] %v9150_v51  ;;  %v1306_v51 = vunpack.c.l.s4 %v7745_v42 }
 0x1fb   :  { %1039 = vadd.xlane.f32.xlu1 %v1038_v11  ;;  %1036 = vadd.xlane.f32.xlu0 %v1035_v55  ;;  %v1307_v11 = vunpack.c.0.s8 %v1306_v51  ;;  %v9169_v55 = vshrl.u32 %v11808_v57, 7 }
 0x1fc   :  { %v9158_v6 = vpop.xlane.xlu1 %835  ;;  %v9162_v21 = vpop.xlane.xlu0 %832 }
 0x1fd   :  { %11976 = vst [vmem:[#allocation141_spill] sm:$0xff] %v9158_v6  ;;  %11977 = vst [vmem:[#allocation142_spill] sm:$0xff] %v9162_v21 }
 0x1fe   :  { %11980 = vst [vmem:[#allocation145_spill] sm:$0xff] %v9169_v55 }
 0x1ff   :  { %1045 = vadd.xlane.f32.xlu1 %v1044_v24  ;;  %1042 = vadd.xlane.f32.xlu0 %v1041_v15  ;;  %v9176_v24 = vsub.s32 %v1307_v11, %v9169_v55  ;;  %v9179_v15 = vsub.s32 %v1314_v43, %v9169_v55 }
 0x200   :  { %v9164_v61 = vpop.xlane.xlu1 %841  ;;  %v9166_v16 = vpop.xlane.xlu0 %838 }
 0x201   :  { %11978 = vst [vmem:[#allocation143_spill] sm:$0xff] %v9164_v61  ;;  %11979 = vst [vmem:[#allocation144_spill] sm:$0xff] %v9166_v16  ;;  %v1325_v51 = vrot.slane %v8070_v23, %v9176_v24  ;;  %v1332_v37 = vrot.slane %v8070_v23, %v9179_v15  ;;  %v1339_v11 = vrot.slane %v8054_v14, %v9176_v24 }
 0x202   :  { %v1346_v43 = vrot.slane %v8054_v14, %v9179_v15  ;;  %v1353_v21 = vrot.slane %v8066_v20, %v9176_v24  ;;  %v1360_v55 = vrot.slane %v8066_v20, %v9179_v15  ;;  %v1374_v20 = vrot.slane %v8082_v29, %v9179_v15 }
 0x204   :  { %v9171_v6 = vpop.xlane.xlu1 %847  ;;  %v9173_v0 = vpop.xlane.xlu0 %844  ;;  %v4891_v61 = vcombine.low %v1339_v11, %v1346_v43  ;;  %v4892_v11 = vcombine.low %v1353_v21, %v1360_v55  ;;  %v1367_v43 = vrot.slane %v8082_v29, %v9176_v24  ;;  %v1381_v21 = vrot.slane %v8078_v26, %v9176_v24 }
 0x205   :  { %11981 = vst [vmem:[#allocation146_spill] sm:$0xff] %v9171_v6  ;;  %11982 = vst [vmem:[#allocation147_spill] sm:$0xff] %v9173_v0  ;;  %v4890_v0 = vcombine.low %v1325_v51, %v1332_v37  ;;  %v1437_v51 = vrot.slane %v8102_v38, %v9176_v24  ;;  %v1444_v37 = vrot.slane %v8102_v38, %v9179_v15 }
 0x206   :  { %v1472_v38 = vrot.slane %v8114_v44, %v9179_v15  ;;  %v1388_v55 = vrot.slane %v8078_v26, %v9179_v15  ;;  %v4893_v29 = vcombine.low %v1367_v43, %v1374_v20  ;;  %v1402_v26 = vrot.slane %v8094_v35, %v9179_v15 }
 0x207   :  { %v1521_v20 = vrot.slane %v8138_v56, %v9176_v24 }
 0x208   :  { %v9181_v34 = vpop.xlane.xlu1 %853  ;;  %v9183_v42 = vpop.xlane.xlu0 %850 }
 0x209   :  { %11983 = vst [vmem:[#allocation148_spill] sm:$0xff] %v9181_v34  ;;  %11984 = vst [vmem:[#allocation149_spill] sm:$0xff] %v9183_v42  ;;  %v1311_v42 = vrot.slane %v8058_v17, %v9176_v24  ;;  %v1318_v34 = vrot.slane %v8058_v17, %v9179_v15 }
 0x20b   :  { %v4889_v14 = vcombine.low %v1311_v42, %v1318_v34  ;;  %v4898_v34 = vcombine.low %v1437_v51, %v1444_v37  ;;  %v1465_v42 = vrot.slane %v8114_v44, %v9176_v24  ;;  %v1493_v51 = vrot.slane %v8126_v50, %v9176_v24 }
 0x20c   :  { %v9189_v57 = vpop.xlane.xlu1 %859  ;;  %v9191_v6 = vpop.xlane.xlu0 %856  ;;  %v1500_v44 = vrot.slane %v8126_v50, %v9179_v15  ;;  %v1528_v50 = vrot.slane %v8138_v56, %v9179_v15  ;;  %v1556_v56 = vrot.slane %v8150_v62, %v9179_v15 }
 0x20d   :  { %11985 = vst [vmem:[#allocation150_spill] sm:$0xff] %v9191_v6 }
 0x20e   :  { %v4902_v43 = vcombine.low %v1493_v51, %v1500_v44 }
 0x210   :  { %v9201_v16 = vpop.xlane.xlu1 %865  ;;  %5149 = vperm.xlu1 %7689, %v4890_v0   ;;  %v9203_v23 = vpop.xlane.xlu0 %862 }
 0x214   :  { %v9213_v17 = vpop.xlane.xlu1 %871  ;;  %5152 = vperm.xlu1 %7689, %v4891_v61   ;;  %v9215_v0 = vpop.xlane.xlu0 %868 }
 0x215   :  { %5146 = vperm.xlu0 %7688, %v4889_v14   ;;  %v4900_v14 = vcombine.low %v1465_v42, %v1472_v38 }
 0x218   :  { %v9225_v6 = vpop.xlane.xlu1 %877  ;;  %5155 = vperm.xlu1 %7689, %v4892_v11   ;;  %v9227_v61 = vpop.xlane.xlu0 %874 }
 0x219   :  { %11986 = vst [vmem:[#allocation151_spill] sm:$0xff] %v9225_v6  ;;  %5173 = vperm.xlu0 %7688, %v4898_v34   ;;  %v4894_v34 = vcombine.low %v1381_v21, %v1388_v55  ;;  %v1395_v6 = vrot.slane %v8094_v35, %v9176_v24  ;;  %v1409_v21 = vrot.slane %v8090_v32, %v9176_v24 }
 0x21a   :  { %v1416_v55 = vrot.slane %v8090_v32, %v9179_v15  ;;  %v1430_v32 = vrot.slane %v8106_v41, %v9179_v15 }
 0x21b   :  { %v4895_v35 = vcombine.low %v1395_v6, %v1402_v26  ;;  %v1577_v26 = vrot.slane %v8162_v4, %v9176_v24 }
 0x21c   :  { %v9237_v37 = vpop.xlane.xlu1 %883  ;;  %5158 = vperm.xlu1 %7689, %v4893_v29   ;;  %v9239_v11 = vpop.xlane.xlu0 %880  ;;  %v4904_v29 = vcombine.low %v1521_v20, %v1528_v50 }
 0x21d   :  { %5179 = vperm.xlu0 %7688, %v4900_v14   ;;  %v1549_v14 = vrot.slane %v8150_v62, %v9176_v24  ;;  %v1584_v62 = vrot.slane %v8162_v4, %v9179_v15  ;;  %v1612_v4 = vrot.slane %v8174_v10, %v9179_v15 }
 0x21f   :  { %v4906_v6 = vcombine.low %v1549_v14, %v1556_v56 }
 0x220   :  { %v9249_v42 = vpop.xlane.xlu1 %889  ;;  %5161 = vperm.xlu1 %7689, %v4894_v34   ;;  %v9251_v38 = vpop.xlane.xlu0 %886  ;;  %v4896_v34 = vcombine.low %v1409_v21, %v1416_v55  ;;  %v1451_v55 = vrot.slane %v8118_v47, %v9176_v24 }
 0x221   :  { %5185 = vperm.xlu0 %7688, %v4902_v43   ;;  %v1423_v43 = vrot.slane %v8106_v41, %v9176_v24  ;;  %v1458_v41 = vrot.slane %v8118_v47, %v9179_v15  ;;  %v1486_v47 = vrot.slane %v8130_v53, %v9179_v15 }
 0x223   :  { %v4897_v21 = vcombine.low %v1423_v43, %v1430_v32  ;;  %v1479_v43 = vrot.slane %v8130_v53, %v9176_v24  ;;  %v1514_v53 = vrot.slane %v8142_v59, %v9179_v15 }
 0x224   :  { %v9261_v51 = vpop.xlane.xlu1 %895  ;;  %5164 = vperm.xlu1 %7689, %v4895_v35   ;;  %v9263_v44 = vpop.xlane.xlu0 %892  ;;  %v4908_v35 = vcombine.low %v1577_v26, %v1584_v62 }
 0x225   :  { %11987 = vst [vmem:[#allocation152_spill] sm:$0xff] %v9261_v51  ;;  %5191 = vperm.xlu0 %7688, %v4904_v29   ;;  %v1605_v29 = vrot.slane %v8174_v10, %v9176_v24  ;;  %v1640_v10 = vrot.slane %v8186_v18, %v9179_v15 }
 0x227   :  { %v4910_v32 = vcombine.low %v1605_v29, %v1612_v4 }
 0x228   :  { %v9273_v20 = vpop.xlane.xlu1 %901  ;;  %5167 = vperm.xlu1 %7689, %v4896_v34   ;;  %v9275_v50 = vpop.xlane.xlu0 %898  ;;  %v4899_v34 = vcombine.low %v1451_v55, %v1458_v41  ;;  %v1507_v55 = vrot.slane %v8142_v59, %v9176_v24  ;;  %v1542_v59 = vrot.slane %v8154_v1, %v9179_v15 }
 0x229   :  { %11988 = vst [vmem:[#allocation153_spill] sm:$0xff] %v9273_v20  ;;  %11989 = vst [vmem:[#allocation154_spill] sm:$0xff] %v9275_v50  ;;  %5197 = vperm.xlu0 %7688, %v4906_v6   ;;  %v1633_v6 = vrot.slane %v8186_v18, %v9176_v24  ;;  %v1668_v18 = vrot.slane %v8198_v27, %v9179_v15 }
 0x22b   :  { %v4912_v41 = vcombine.low %v1633_v6, %v1640_v10 }
 0x22c   :  { %v9285_v14 = vpop.xlane.xlu1 %907  ;;  %5170 = vperm.xlu1 %7689, %v4897_v21   ;;  %v9287_v56 = vpop.xlane.xlu0 %904  ;;  %v4901_v21 = vcombine.low %v1479_v43, %v1486_v47  ;;  %v1535_v43 = vrot.slane %v8154_v1, %v9176_v24  ;;  %v1570_v1 = vrot.slane %v8166_v7, %v9179_v15 }
 0x22d   :  { %5203 = vperm.xlu0 %7688, %v4908_v35   ;;  %v1661_v35 = vrot.slane %v8198_v27, %v9176_v24  ;;  %v1696_v27 = vrot.slane %v8210_v36, %v9179_v15 }
 0x22f   :  { %v4914_v47 = vcombine.low %v1661_v35, %v1668_v18 }
 0x230   :  { %v9297_v26 = vpop.xlane.xlu1 %913  ;;  %5176 = vperm.xlu1 %7689, %v4899_v34   ;;  %v9299_v62 = vpop.xlane.xlu0 %910  ;;  %v4903_v34 = vcombine.low %v1507_v55, %v1514_v53  ;;  %v1563_v55 = vrot.slane %v8166_v7, %v9176_v24  ;;  %v1598_v7 = vrot.slane %v8178_v13, %v9179_v15 }
 0x231   :  { %5209 = vperm.xlu0 %7688, %v4910_v32   ;;  %v1689_v32 = vrot.slane %v8210_v36, %v9176_v24  ;;  %v1724_v36 = vrot.slane %v8222_v45, %v9179_v15 }
 0x233   :  { %v4916_v53 = vcombine.low %v1689_v32, %v1696_v27 }
 0x234   :  { %v9309_v29 = vpop.xlane.xlu1 %919  ;;  %5182 = vperm.xlu1 %7689, %v4901_v21   ;;  %v9311_v4 = vpop.xlane.xlu0 %916  ;;  %v4905_v21 = vcombine.low %v1535_v43, %v1542_v59  ;;  %v1591_v43 = vrot.slane %v8178_v13, %v9176_v24  ;;  %v1626_v13 = vrot.slane %v8190_v22, %v9179_v15 }
 0x235   :  { %5215 = vperm.xlu0 %7688, %v4912_v41   ;;  %v1717_v41 = vrot.slane %v8222_v45, %v9176_v24  ;;  %v1752_v45 = vrot.slane %v8234_v54, %v9179_v15 }
 0x237   :  { %v4918_v59 = vcombine.low %v1717_v41, %v1724_v36 }
 0x238   :  { %v9321_v6 = vpop.xlane.xlu1 %925  ;;  %5188 = vperm.xlu1 %7689, %v4903_v34   ;;  %v9323_v10 = vpop.xlane.xlu0 %922  ;;  %v4907_v34 = vcombine.low %v1563_v55, %v1570_v1  ;;  %v1619_v55 = vrot.slane %v8190_v22, %v9176_v24  ;;  %v1654_v22 = vrot.slane %v8202_v31, %v9179_v15 }
 0x239   :  { %5221 = vperm.xlu0 %7688, %v4914_v47   ;;  %v1745_v47 = vrot.slane %v8234_v54, %v9176_v24  ;;  %v1780_v54 = vrot.slane %v8246_v63, %v9179_v15 }
 0x23b   :  { %v4920_v1 = vcombine.low %v1745_v47, %v1752_v45 }
 0x23c   :  { %v9333_v35 = vpop.xlane.xlu1 %931  ;;  %5194 = vperm.xlu1 %7689, %v4905_v21   ;;  %v9335_v18 = vpop.xlane.xlu0 %928  ;;  %v4909_v21 = vcombine.low %v1591_v43, %v1598_v7  ;;  %v1647_v43 = vrot.slane %v8202_v31, %v9176_v24  ;;  %v1682_v31 = vrot.slane %v8214_v40, %v9179_v15 }
 0x23d   :  { %5227 = vperm.xlu0 %7688, %v4916_v53   ;;  %v1773_v53 = vrot.slane %v8246_v63, %v9176_v24  ;;  %v1808_v63 = vrot.slane %v8258_v8, %v9179_v15 }
 0x23f   :  { %v4922_v7 = vcombine.low %v1773_v53, %v1780_v54 }
 0x240   :  { %v9345_v32 = vpop.xlane.xlu1 %937  ;;  %5200 = vperm.xlu1 %7689, %v4907_v34   ;;  %v9347_v27 = vpop.xlane.xlu0 %934  ;;  %v4911_v34 = vcombine.low %v1619_v55, %v1626_v13  ;;  %v1675_v55 = vrot.slane %v8214_v40, %v9176_v24  ;;  %v1710_v40 = vrot.slane %v8226_v49, %v9179_v15 }
 0x241   :  { %5233 = vperm.xlu0 %7688, %v4918_v59   ;;  %v1801_v59 = vrot.slane %v8258_v8, %v9176_v24  ;;  %v1836_v8 = vrot.slane %v8270_v19, %v9179_v15 }
 0x243   :  { %v4924_v13 = vcombine.low %v1801_v59, %v1808_v63 }
 0x244   :  { %v9357_v41 = vpop.xlane.xlu1 %943  ;;  %5206 = vperm.xlu1 %7689, %v4909_v21   ;;  %v9359_v36 = vpop.xlane.xlu0 %940  ;;  %v4913_v21 = vcombine.low %v1647_v43, %v1654_v22  ;;  %v1703_v43 = vrot.slane %v8226_v49, %v9176_v24  ;;  %v1738_v49 = vrot.slane %v8238_v58, %v9179_v15 }
 0x245   :  { %11990 = vst [vmem:[#allocation155_spill] sm:$0xff] %v9357_v41  ;;  %5239 = vperm.xlu0 %7688, %v4920_v1   ;;  %v1829_v1 = vrot.slane %v8270_v19, %v9176_v24  ;;  %v1864_v19 = vrot.slane %v8282_v33, %v9179_v15 }
 0x247   :  { %v4926_v22 = vcombine.low %v1829_v1, %v1836_v8 }
 0x248   :  { %v9369_v47 = vpop.xlane.xlu1 %949  ;;  %5212 = vperm.xlu1 %7689, %v4911_v34   ;;  %v9371_v45 = vpop.xlane.xlu0 %946  ;;  %v4915_v34 = vcombine.low %v1675_v55, %v1682_v31  ;;  %v1731_v55 = vrot.slane %v8238_v58, %v9176_v24  ;;  %v1766_v58 = vrot.slane %v8250_v3, %v9179_v15 }
 0x249   :  { %11991 = vst [vmem:[#allocation156_spill] sm:$0xff] %v9369_v47  ;;  %11992 = vst [vmem:[#allocation157_spill] sm:$0xff] %v9371_v45  ;;  %5245 = vperm.xlu0 %7688, %v4922_v7   ;;  %v1857_v7 = vrot.slane %v8282_v33, %v9176_v24  ;;  %v1892_v33 = vrot.slane %v8294_v46, %v9179_v15 }
 0x24b   :  { %v4928_v31 = vcombine.low %v1857_v7, %v1864_v19 }
 0x24c   :  { %v9381_v53 = vpop.xlane.xlu1 %955  ;;  %5218 = vperm.xlu1 %7689, %v4913_v21   ;;  %v9383_v54 = vpop.xlane.xlu0 %952  ;;  %v4917_v21 = vcombine.low %v1703_v43, %v1710_v40  ;;  %v1759_v43 = vrot.slane %v8250_v3, %v9176_v24  ;;  %v1794_v3 = vrot.slane %v8262_v12, %v9179_v15 }
 0x24d   :  { %5251 = vperm.xlu0 %7688, %v4924_v13   ;;  %v1885_v13 = vrot.slane %v8294_v46, %v9176_v24  ;;  %v1920_v46 = vrot.slane %v8306_v60, %v9179_v15 }
 0x24f   :  { %v4930_v40 = vcombine.low %v1885_v13, %v1892_v33 }
 0x250   :  { %v9393_v59 = vpop.xlane.xlu1 %961  ;;  %5224 = vperm.xlu1 %7689, %v4915_v34   ;;  %v9395_v63 = vpop.xlane.xlu0 %958  ;;  %v4919_v34 = vcombine.low %v1731_v55, %v1738_v49  ;;  %v1787_v55 = vrot.slane %v8262_v12, %v9176_v24  ;;  %v1822_v12 = vrot.slane %v8274_v25, %v9179_v15 }
 0x251   :  { %5257 = vperm.xlu0 %7688, %v4926_v22   ;;  %v1913_v22 = vrot.slane %v8306_v60, %v9176_v24  ;;  %v1948_v60 = vrot.slane %v8318_v9, %v9179_v15 }
 0x253   :  { %v4932_v49 = vcombine.low %v1913_v22, %v1920_v46 }
 0x254   :  { %v9405_v1 = vpop.xlane.xlu1 %967  ;;  %5230 = vperm.xlu1 %7689, %v4917_v21   ;;  %v9407_v8 = vpop.xlane.xlu0 %964  ;;  %v4921_v21 = vcombine.low %v1759_v43, %v1766_v58  ;;  %v1815_v43 = vrot.slane %v8274_v25, %v9176_v24  ;;  %v1850_v25 = vrot.slane %v8286_v39, %v9179_v15 }
 0x255   :  { %5263 = vperm.xlu0 %7688, %v4928_v31   ;;  %v1941_v31 = vrot.slane %v8318_v9, %v9176_v24  ;;  %v1976_v9 = vrot.slane %v8330_v28, %v9179_v15 }
 0x257   :  { %v4934_v58 = vcombine.low %v1941_v31, %v1948_v60 }
 0x258   :  { %v9417_v7 = vpop.xlane.xlu1 %973  ;;  %5236 = vperm.xlu1 %7689, %v4919_v34   ;;  %v9419_v19 = vpop.xlane.xlu0 %970  ;;  %v4923_v34 = vcombine.low %v1787_v55, %v1794_v3  ;;  %v1843_v55 = vrot.slane %v8286_v39, %v9176_v24  ;;  %v1878_v39 = vrot.slane %v8298_v52, %v9179_v15 }
 0x259   :  { %5269 = vperm.xlu0 %7688, %v4930_v40   ;;  %v1969_v40 = vrot.slane %v8330_v28, %v9176_v24  ;;  %v2004_v28 = vrot.slane %v8342_v48, %v9179_v15 }
 0x25b   :  { %v4936_v3 = vcombine.low %v1969_v40, %v1976_v9 }
 0x25c   :  { %v9429_v13 = vpop.xlane.xlu1 %979  ;;  %5242 = vperm.xlu1 %7689, %v4921_v21   ;;  %v9431_v33 = vpop.xlane.xlu0 %976  ;;  %v4925_v21 = vcombine.low %v1815_v43, %v1822_v12  ;;  %v1871_v43 = vrot.slane %v8298_v52, %v9176_v24  ;;  %v1906_v52 = vrot.slane %v8310_v2, %v9179_v15 }
 0x25d   :  { %11993 = vst [vmem:[#allocation158_spill] sm:$0xff] %v9429_v13  ;;  %5275 = vperm.xlu0 %7688, %v4932_v49   ;;  %v1997_v49 = vrot.slane %v8342_v48, %v9176_v24  ;;  %v2032_v48 = vrot.slane %v8354_v5, %v9179_v15 }
 0x25f   :  { %v4938_v12 = vcombine.low %v1997_v49, %v2004_v28 }
 0x260   :  { %v9441_v22 = vpop.xlane.xlu1 %985  ;;  %5248 = vperm.xlu1 %7689, %v4923_v34   ;;  %v9443_v46 = vpop.xlane.xlu0 %982  ;;  %v4927_v34 = vcombine.low %v1843_v55, %v1850_v25  ;;  %v1899_v55 = vrot.slane %v8310_v2, %v9176_v24 }
 0x261   :  { %11994 = vst [vmem:[#allocation159_spill] sm:$0xff] %v9441_v22  ;;  %5281 = vperm.xlu0 %7688, %v4934_v58   ;;  %v2025_v58 = vrot.slane %v8354_v5, %v9176_v24  ;;  %v2060_v5 = vrot.slane %v8366_v30, %v9179_v15 }
 0x263   :  { %v4940_v25 = vcombine.low %v2025_v58, %v2032_v48  ;;  %v12000_v58 = vld [vmem:[#allocation11_spill] sm:$0xff] }
 0x264   :  { %v9453_v31 = vpop.xlane.xlu1 %991  ;;  %5254 = vperm.xlu1 %7689, %v4925_v21   ;;  %v9455_v60 = vpop.xlane.xlu0 %988  ;;  %v4929_v21 = vcombine.low %v1871_v43, %v1878_v39  ;;  %v11999_v43 = vld [vmem:[#allocation6_spill] sm:$0xff]  ;;  %v2081_v48 = vrot.slane %v12000_v58, %v9176_v24 }
 0x265   :  { %11995 = vst [vmem:[#allocation160_spill] sm:$0xff] %v9453_v31  ;;  %11996 = vst [vmem:[#allocation161_spill] sm:$0xff] %v9455_v60  ;;  %5287 = vperm.xlu0 %7688, %v4936_v3   ;;  %v2053_v3 = vrot.slane %v8366_v30, %v9176_v24  ;;  %v1927_v39 = vrot.slane %v11999_v43, %v9176_v24  ;;  %v1934_v2 = vrot.slane %v11999_v43, %v9179_v15 }
 0x266   :  { %v2088_v30 = vrot.slane %v12000_v58, %v9179_v15 }
 0x268   :  { %v9465_v40 = vpop.xlane.xlu1 %997  ;;  %5260 = vperm.xlu1 %7689, %v4927_v34   ;;  %v9467_v9 = vpop.xlane.xlu0 %994  ;;  %v4931_v34 = vcombine.low %v1899_v55, %v1906_v52  ;;  %v4933_v55 = vcombine.low %v1927_v39, %v1934_v2  ;;  %v12001_v52 = vld [vmem:[#allocation7_spill] sm:$0xff]  ;;  %v12003_v2 = vld [vmem:[#allocation8_spill] sm:$0xff] }
 0x269   :  { %11997 = vst [vmem:[#allocation162_spill] sm:$0xff] %v9465_v40  ;;  %11998 = vst [vmem:[#allocation163_spill] sm:$0xff] %v9467_v9  ;;  %5293 = vperm.xlu0 %7688, %v4938_v12   ;;  %v4942_v12 = vcombine.low %v2053_v3, %v2060_v5  ;;  %v1962_v43 = vrot.slane %v12001_v52, %v9179_v15  ;;  %v4944_v3 = vcombine.low %v2081_v48, %v2088_v30  ;;  %v12002_v5 = vld [vmem:[#allocation13_spill] sm:$0xff]  ;;  %v12004_v30 = vld [vmem:[#allocation15_spill] sm:$0xff] }
 0x26a   :  { %v2109_v47 = vrot.slane %v12002_v5, %v9176_v24  ;;  %v2116_v58 = vrot.slane %v12002_v5, %v9179_v15  ;;  %v2137_v9 = vrot.slane %v12004_v30, %v9176_v24  ;;  %v2144_v5 = vrot.slane %v12004_v30, %v9179_v15 }
 0x26c   :  { %v9477_v49 = vpop.xlane.xlu1 %1003  ;;  %5266 = vperm.xlu1 %7689, %v4929_v21   ;;  %v9479_v28 = vpop.xlane.xlu0 %1000  ;;  %v4946_v48 = vcombine.low %v2109_v47, %v2116_v58  ;;  %v4948_v47 = vcombine.low %v2137_v9, %v2144_v5  ;;  %v12006_v58 = vld [vmem:[#allocation17_spill] sm:$0xff]  ;;  %v12008_v5 = vld [vmem:[#allocation19_spill] sm:$0xff] }
 0x26d   :  { %5299 = vperm.xlu0 %7688, %v4940_v25   ;;  %v1955_v25 = vrot.slane %v12001_v52, %v9176_v24  ;;  %v1990_v52 = vrot.slane %v12003_v2, %v9179_v15  ;;  %v2165_v31 = vrot.slane %v12006_v58, %v9176_v24  ;;  %v2172_v30 = vrot.slane %v12006_v58, %v9179_v15 }
 0x26e   :  { %v2193_v60 = vrot.slane %v12008_v5, %v9176_v24  ;;  %v2200_v58 = vrot.slane %v12008_v5, %v9179_v15 }
 0x26f   :  { %v4935_v39 = vcombine.low %v1955_v25, %v1962_v43  ;;  %v12005_v43 = vld [vmem:[#allocation9_spill] sm:$0xff]  ;;  %v4950_v9 = vcombine.low %v2165_v31, %v2172_v30 }
 0x270   :  { %v9489_v20 = vpop.xlane.xlu1 %1009  ;;  %5272 = vperm.xlu1 %7689, %v4931_v34   ;;  %v9491_v21 = vpop.xlane.xlu0 %1006  ;;  %v4952_v31 = vcombine.low %v2193_v60, %v2200_v58  ;;  %v12011_v30 = vld [vmem:[#allocation21_spill] sm:$0xff]  ;;  %v12015_v58 = vld [vmem:[#allocation23_spill] sm:$0xff] }
 0x271   :  { %5305 = vperm.xlu0 %7688, %v4942_v12   ;;  %v1983_v12 = vrot.slane %v12003_v2, %v9176_v24  ;;  %v2018_v2 = vrot.slane %v12005_v43, %v9179_v15  ;;  %v2221_v50 = vrot.slane %v12011_v30, %v9176_v24  ;;  %v2228_v5 = vrot.slane %v12011_v30, %v9179_v15 }
 0x272   :  { %v2256_v30 = vrot.slane %v12015_v58, %v9179_v15 }
 0x273   :  { %v4937_v25 = vcombine.low %v1983_v12, %v1990_v52  ;;  %v12007_v52 = vld [vmem:[#allocation10_spill] sm:$0xff]  ;;  %v4954_v60 = vcombine.low %v2221_v50, %v2228_v5  ;;  %v12019_v5 = vld [vmem:[#allocation25_spill] sm:$0xff] }
 0x274   :  { %v9501_v40 = vpop.xlane.xlu1 %1015  ;;  %5278 = vperm.xlu1 %7689, %v4933_v55   ;;  %v9503_v34 = vpop.xlane.xlu0 %1012 }
 0x275   :  { %5311 = vperm.xlu0 %7688, %v4944_v3   ;;  %v2011_v3 = vrot.slane %v12005_v43, %v9176_v24  ;;  %v2046_v43 = vrot.slane %v12007_v52, %v9179_v15 }
 0x277   :  { %v4939_v12 = vcombine.low %v2011_v3, %v2018_v2  ;;  %v12010_v2 = vld [vmem:[#allocation12_spill] sm:$0xff] }
 0x278   :  { %v9513_v22 = vpop.xlane.xlu1 %1021  ;;  %5284 = vperm.xlu1 %7689, %v4935_v39   ;;  %v9515_v55 = vpop.xlane.xlu0 %1018 }
 0x279   :  { %5317 = vperm.xlu0 %7688, %v4946_v48   ;;  %v2039_v48 = vrot.slane %v12007_v52, %v9176_v24  ;;  %v2074_v52 = vrot.slane %v12010_v2, %v9179_v15 }
 0x27b   :  { %v4941_v3 = vcombine.low %v2039_v48, %v2046_v43  ;;  %v12014_v43 = vld [vmem:[#allocation14_spill] sm:$0xff] }
 0x27c   :  { %v9525_v51 = vpop.xlane.xlu1 %1027  ;;  %5290 = vperm.xlu1 %7689, %v4937_v25   ;;  %v9527_v39 = vpop.xlane.xlu0 %1024 }
 0x27d   :  { %5323 = vperm.xlu0 %7688, %v4948_v47   ;;  %v2067_v47 = vrot.slane %v12010_v2, %v9176_v24  ;;  %v2102_v2 = vrot.slane %v12014_v43, %v9179_v15 }
 0x27f   :  { %v4943_v48 = vcombine.low %v2067_v47, %v2074_v52  ;;  %v12017_v47 = vld [vmem:[#allocation16_spill] sm:$0xff] }
 0x280   :  { %v9537_v41 = vpop.xlane.xlu1 %1033  ;;  %5296 = vperm.xlu1 %7689, %v4939_v12   ;;  %v9539_v25 = vpop.xlane.xlu0 %1030  ;;  %v2123_v52 = vrot.slane %v12017_v47, %v9176_v24 }
 0x281   :  { %12009 = vst [vmem:[#allocation6_spill] sm:$0xff] %v9537_v41  ;;  %5329 = vperm.xlu0 %7688, %v4950_v9   ;;  %v2095_v9 = vrot.slane %v12014_v43, %v9176_v24  ;;  %v2249_v41 = vrot.slane %v12015_v58, %v9176_v24  ;;  %v2277_v43 = vrot.slane %v12019_v5, %v9176_v24 }
 0x282   :  { %v2284_v58 = vrot.slane %v12019_v5, %v9179_v15 }
 0x283   :  { %v4956_v50 = vcombine.low %v2249_v41, %v2256_v30  ;;  %v12022_v41 = vld [vmem:[#allocation27_spill] sm:$0xff] }
 0x284   :  { %v9549_v13 = vpop.xlane.xlu1 %1039  ;;  %5302 = vperm.xlu1 %7689, %v4941_v3   ;;  %v9551_v12 = vpop.xlane.xlu0 %1036  ;;  %v4945_v3 = vcombine.low %v2095_v9, %v2102_v2  ;;  %v12021_v9 = vld [vmem:[#allocation18_spill] sm:$0xff]  ;;  %v2305_v30 = vrot.slane %v12022_v41, %v9176_v24 }
 0x285   :  { %12012 = vst [vmem:[#allocation11_spill] sm:$0xff] %v9549_v13  ;;  %12013 = vst [vmem:[#allocation7_spill] sm:$0xff] %v9551_v12  ;;  %5335 = vperm.xlu0 %7688, %v4952_v31   ;;  %v2130_v31 = vrot.slane %v12017_v47, %v9179_v15  ;;  %v2151_v2 = vrot.slane %v12021_v9, %v9176_v24  ;;  %v4958_v47 = vcombine.low %v2277_v43, %v2284_v58  ;;  %v12026_v58 = vld [vmem:[#allocation29_spill] sm:$0xff] }
 0x288   :  { %v9561_v45 = vpop.xlane.xlu1 %1045  ;;  %5308 = vperm.xlu1 %7689, %v4943_v48   ;;  %v9567_v13 = vpop.xlane.xlu0 %1042  ;;  %v4947_v48 = vcombine.low %v2123_v52, %v2130_v31  ;;  %v12025_v52 = vld [vmem:[#allocation20_spill] sm:$0xff] }
 0x289   :  { %12016 = vst [vmem:[#allocation13_spill] sm:$0xff] %v9561_v45  ;;  %5341 = vperm.xlu0 %7688, %v4954_v60   ;;  %12018 = vst [vmem:[#allocation8_spill] sm:$0xff] %v9567_v13  ;;  %v2158_v60 = vrot.slane %v12021_v9, %v9179_v15  ;;  %v2312_v45 = vrot.slane %v12022_v41, %v9179_v15  ;;  %v2179_v31 = vrot.slane %v12025_v52, %v9176_v24 }
 0x28a   :  { %v2333_v9 = vrot.slane %v12026_v58, %v9176_v24  ;;  %v2340_v41 = vrot.slane %v12026_v58, %v9179_v15 }
 0x28b   :  { %v4960_v43 = vcombine.low %v2305_v30, %v2312_v45  ;;  %v12030_v30 = vld [vmem:[#allocation31_spill] sm:$0xff] }
 0x28c   :  { %v9573_v12 = vpop.permute.xlu1 %5149  ;;  %5314 = vperm.xlu1 %7689, %v4945_v3   ;;  %v4949_v3 = vcombine.low %v2151_v2, %v2158_v60  ;;  %v12029_v60 = vld [vmem:[#allocation22_spill] sm:$0xff]  ;;  %v4962_v45 = vcombine.low %v2333_v9, %v2340_v41  ;;  %v2368_v58 = vrot.slane %v12030_v30, %v9179_v15  ;;  %v12034_v41 = vld [vmem:[#allocation33_spill] sm:$0xff] }
 0x28d   :  { %12020 = vst [vmem:[#allocation15_spill] sm:$0xff] %v9573_v12  ;;  %5347 = vperm.xlu0 %7688, %v4956_v50   ;;  %v2186_v50 = vrot.slane %v12025_v52, %v9179_v15  ;;  %v2214_v52 = vrot.slane %v12029_v60, %v9179_v15 }
 0x28f   :  { %v4951_v2 = vcombine.low %v2179_v31, %v2186_v50  ;;  %v12033_v50 = vld [vmem:[#allocation24_spill] sm:$0xff] }
 0x290   :  { %v9583_v13 = vpop.permute.xlu1 %5152  ;;  %5320 = vperm.xlu1 %7689, %v4947_v48   ;;  %v9585_v5 = vpop.permute.xlu0 %5146 }
 0x291   :  { %12023 = vst [vmem:[#allocation9_spill] sm:$0xff] %v9583_v13  ;;  %12024 = vst [vmem:[#allocation17_spill] sm:$0xff] %v9585_v5  ;;  %5353 = vperm.xlu0 %7688, %v4958_v47   ;;  %v2207_v47 = vrot.slane %v12029_v60, %v9176_v24  ;;  %v2361_v13 = vrot.slane %v12030_v30, %v9176_v24  ;;  %v2242_v60 = vrot.slane %v12033_v50, %v9179_v15 }
 0x292   :  { %v2396_v30 = vrot.slane %v12034_v41, %v9179_v15 }
 0x293   :  { %v4953_v31 = vcombine.low %v2207_v47, %v2214_v52  ;;  %v4964_v9 = vcombine.low %v2361_v13, %v2368_v58  ;;  %v12037_v52 = vld [vmem:[#allocation26_spill] sm:$0xff]  ;;  %v12038_v58 = vld [vmem:[#allocation35_spill] sm:$0xff] }
 0x294   :  { %v9595_v12 = vpop.permute.xlu1 %5155  ;;  %5326 = vperm.xlu1 %7689, %v4949_v3   ;;  %v9597_v48 = vpop.permute.xlu0 %5173 }
 0x295   :  { %12027 = vst [vmem:[#allocation10_spill] sm:$0xff] %v9595_v12  ;;  %12028 = vst [vmem:[#allocation19_spill] sm:$0xff] %v9597_v48  ;;  %5359 = vperm.xlu0 %7688, %v4960_v43   ;;  %v2235_v43 = vrot.slane %v12033_v50, %v9176_v24  ;;  %v2389_v48 = vrot.slane %v12034_v41, %v9176_v24  ;;  %v2270_v50 = vrot.slane %v12037_v52, %v9179_v15 }
 0x296   :  { %v2424_v41 = vrot.slane %v12038_v58, %v9179_v15 }
 0x297   :  { %v4955_v47 = vcombine.low %v2235_v43, %v2242_v60  ;;  %v4966_v13 = vcombine.low %v2389_v48, %v2396_v30  ;;  %v12041_v60 = vld [vmem:[#allocation28_spill] sm:$0xff]  ;;  %v12042_v30 = vld [vmem:[#allocation37_spill] sm:$0xff] }
 0x298   :  { %v9607_v5 = vpop.permute.xlu1 %5158  ;;  %5332 = vperm.xlu1 %7689, %v4951_v2   ;;  %v9609_v3 = vpop.permute.xlu0 %5179 }
 0x299   :  { %12031 = vst [vmem:[#allocation12_spill] sm:$0xff] %v9607_v5  ;;  %12032 = vst [vmem:[#allocation21_spill] sm:$0xff] %v9609_v3  ;;  %5365 = vperm.xlu0 %7688, %v4962_v45   ;;  %v2263_v45 = vrot.slane %v12037_v52, %v9176_v24  ;;  %v2417_v3 = vrot.slane %v12038_v58, %v9176_v24  ;;  %v2298_v52 = vrot.slane %v12041_v60, %v9179_v15 }
 0x29a   :  { %v2452_v58 = vrot.slane %v12042_v30, %v9179_v15 }
 0x29b   :  { %v4957_v43 = vcombine.low %v2263_v45, %v2270_v50  ;;  %v4968_v48 = vcombine.low %v2417_v3, %v2424_v41  ;;  %v12045_v50 = vld [vmem:[#allocation30_spill] sm:$0xff]  ;;  %v12046_v41 = vld [vmem:[#allocation39_spill] sm:$0xff] }
 0x29c   :  { %v9619_v12 = vpop.permute.xlu1 %5161  ;;  %5338 = vperm.xlu1 %7689, %v4953_v31   ;;  %v9621_v2 = vpop.permute.xlu0 %5185 }
 0x29d   :  { %12035 = vst [vmem:[#allocation14_spill] sm:$0xff] %v9619_v12  ;;  %12036 = vst [vmem:[#allocation23_spill] sm:$0xff] %v9621_v2  ;;  %5371 = vperm.xlu0 %7688, %v4964_v9   ;;  %v2291_v9 = vrot.slane %v12041_v60, %v9176_v24  ;;  %v2445_v2 = vrot.slane %v12042_v30, %v9176_v24  ;;  %v2326_v60 = vrot.slane %v12045_v50, %v9179_v15 }
 0x29e   :  { %v2480_v30 = vrot.slane %v12046_v41, %v9179_v15 }
 0x29f   :  { %v4959_v45 = vcombine.low %v2291_v9, %v2298_v52  ;;  %v4970_v3 = vcombine.low %v2445_v2, %v2452_v58  ;;  %v12049_v52 = vld [vmem:[#allocation32_spill] sm:$0xff]  ;;  %v12050_v58 = vld [vmem:[#allocation41_spill] sm:$0xff] }
 0x2a0   :  { %v9631_v5 = vpop.permute.xlu1 %5164  ;;  %5344 = vperm.xlu1 %7689, %v4955_v47   ;;  %v9633_v31 = vpop.permute.xlu0 %5191 }
 0x2a1   :  { %12039 = vst [vmem:[#allocation16_spill] sm:$0xff] %v9631_v5  ;;  %12040 = vst [vmem:[#allocation25_spill] sm:$0xff] %v9633_v31  ;;  %5377 = vperm.xlu0 %7688, %v4966_v13   ;;  %v2319_v13 = vrot.slane %v12045_v50, %v9176_v24  ;;  %v2473_v31 = vrot.slane %v12046_v41, %v9176_v24  ;;  %v2354_v50 = vrot.slane %v12049_v52, %v9179_v15 }
 0x2a2   :  { %v2508_v41 = vrot.slane %v12050_v58, %v9179_v15 }
 0x2a3   :  { %v4961_v9 = vcombine.low %v2319_v13, %v2326_v60  ;;  %v4972_v2 = vcombine.low %v2473_v31, %v2480_v30  ;;  %v12053_v60 = vld [vmem:[#allocation34_spill] sm:$0xff]  ;;  %v12054_v30 = vld [vmem:[#allocation43_spill] sm:$0xff] }
 0x2a4   :  { %v9643_v12 = vpop.permute.xlu1 %5167  ;;  %5350 = vperm.xlu1 %7689, %v4957_v43   ;;  %v9645_v47 = vpop.permute.xlu0 %5197 }
 0x2a5   :  { %12043 = vst [vmem:[#allocation18_spill] sm:$0xff] %v9643_v12  ;;  %12044 = vst [vmem:[#allocation27_spill] sm:$0xff] %v9645_v47  ;;  %5383 = vperm.xlu0 %7688, %v4968_v48   ;;  %v2347_v48 = vrot.slane %v12049_v52, %v9176_v24  ;;  %v2501_v47 = vrot.slane %v12050_v58, %v9176_v24  ;;  %v2382_v52 = vrot.slane %v12053_v60, %v9179_v15 }
 0x2a6   :  { %v2536_v58 = vrot.slane %v12054_v30, %v9179_v15 }
 0x2a7   :  { %v4963_v13 = vcombine.low %v2347_v48, %v2354_v50  ;;  %v4974_v31 = vcombine.low %v2501_v47, %v2508_v41  ;;  %v12057_v50 = vld [vmem:[#allocation36_spill] sm:$0xff]  ;;  %v12058_v41 = vld [vmem:[#allocation45_spill] sm:$0xff] }
 0x2a8   :  { %v9655_v5 = vpop.permute.xlu1 %5170  ;;  %5356 = vperm.xlu1 %7689, %v4959_v45   ;;  %v9657_v43 = vpop.permute.xlu0 %5203 }
 0x2a9   :  { %12047 = vst [vmem:[#allocation20_spill] sm:$0xff] %v9655_v5  ;;  %12048 = vst [vmem:[#allocation29_spill] sm:$0xff] %v9657_v43  ;;  %5389 = vperm.xlu0 %7688, %v4970_v3   ;;  %v2375_v3 = vrot.slane %v12053_v60, %v9176_v24  ;;  %v2529_v43 = vrot.slane %v12054_v30, %v9176_v24  ;;  %v2410_v60 = vrot.slane %v12057_v50, %v9179_v15 }
 0x2aa   :  { %v2564_v30 = vrot.slane %v12058_v41, %v9179_v15 }
 0x2ab   :  { %v4965_v48 = vcombine.low %v2375_v3, %v2382_v52  ;;  %v4976_v47 = vcombine.low %v2529_v43, %v2536_v58  ;;  %v12061_v52 = vld [vmem:[#allocation38_spill] sm:$0xff]  ;;  %v12062_v58 = vld [vmem:[#allocation47_spill] sm:$0xff] }
 0x2ac   :  { %v9667_v12 = vpop.permute.xlu1 %5176  ;;  %5362 = vperm.xlu1 %7689, %v4961_v9   ;;  %v9669_v45 = vpop.permute.xlu0 %5209 }
 0x2ad   :  { %12051 = vst [vmem:[#allocation22_spill] sm:$0xff] %v9667_v12  ;;  %12052 = vst [vmem:[#allocation31_spill] sm:$0xff] %v9669_v45  ;;  %5395 = vperm.xlu0 %7688, %v4972_v2   ;;  %v2403_v2 = vrot.slane %v12057_v50, %v9176_v24  ;;  %v2557_v45 = vrot.slane %v12058_v41, %v9176_v24  ;;  %v2438_v50 = vrot.slane %v12061_v52, %v9179_v15 }
 0x2ae   :  { %v2592_v41 = vrot.slane %v12062_v58, %v9179_v15 }
 0x2af   :  { %v4967_v3 = vcombine.low %v2403_v2, %v2410_v60  ;;  %v4978_v43 = vcombine.low %v2557_v45, %v2564_v30  ;;  %v12065_v60 = vld [vmem:[#allocation40_spill] sm:$0xff]  ;;  %v12066_v30 = vld [vmem:[#allocation49_spill] sm:$0xff] }
 0x2b0   :  { %v9679_v5 = vpop.permute.xlu1 %5182  ;;  %5368 = vperm.xlu1 %7689, %v4963_v13   ;;  %v9681_v9 = vpop.permute.xlu0 %5215 }
 0x2b1   :  { %12055 = vst [vmem:[#allocation24_spill] sm:$0xff] %v9679_v5  ;;  %12056 = vst [vmem:[#allocation33_spill] sm:$0xff] %v9681_v9  ;;  %5401 = vperm.xlu0 %7688, %v4974_v31   ;;  %v2431_v31 = vrot.slane %v12061_v52, %v9176_v24  ;;  %v2585_v9 = vrot.slane %v12062_v58, %v9176_v24  ;;  %v2466_v52 = vrot.slane %v12065_v60, %v9179_v15 }
 0x2b2   :  { %v2620_v58 = vrot.slane %v12066_v30, %v9179_v15 }
 0x2b3   :  { %v4969_v2 = vcombine.low %v2431_v31, %v2438_v50  ;;  %v4980_v45 = vcombine.low %v2585_v9, %v2592_v41  ;;  %v12069_v50 = vld [vmem:[#allocation42_spill] sm:$0xff]  ;;  %v12070_v41 = vld [vmem:[#allocation51_spill] sm:$0xff] }
 0x2b4   :  { %v9691_v12 = vpop.permute.xlu1 %5188  ;;  %5374 = vperm.xlu1 %7689, %v4965_v48   ;;  %v9693_v13 = vpop.permute.xlu0 %5221 }
 0x2b5   :  { %12059 = vst [vmem:[#allocation26_spill] sm:$0xff] %v9691_v12  ;;  %12060 = vst [vmem:[#allocation35_spill] sm:$0xff] %v9693_v13  ;;  %5407 = vperm.xlu0 %7688, %v4976_v47   ;;  %v2459_v47 = vrot.slane %v12065_v60, %v9176_v24  ;;  %v2613_v13 = vrot.slane %v12066_v30, %v9176_v24  ;;  %v2494_v60 = vrot.slane %v12069_v50, %v9179_v15 }
 0x2b6   :  { %v2648_v30 = vrot.slane %v12070_v41, %v9179_v15 }
 0x2b7   :  { %v4971_v31 = vcombine.low %v2459_v47, %v2466_v52  ;;  %v4982_v9 = vcombine.low %v2613_v13, %v2620_v58  ;;  %v12073_v52 = vld [vmem:[#allocation44_spill] sm:$0xff]  ;;  %v12074_v58 = vld [vmem:[#allocation53_spill] sm:$0xff] }
 0x2b8   :  { %v9703_v5 = vpop.permute.xlu1 %5194  ;;  %5380 = vperm.xlu1 %7689, %v4967_v3   ;;  %v9705_v48 = vpop.permute.xlu0 %5227 }
 0x2b9   :  { %12063 = vst [vmem:[#allocation28_spill] sm:$0xff] %v9703_v5  ;;  %12064 = vst [vmem:[#allocation37_spill] sm:$0xff] %v9705_v48  ;;  %5413 = vperm.xlu0 %7688, %v4978_v43   ;;  %v2487_v43 = vrot.slane %v12069_v50, %v9176_v24  ;;  %v2641_v48 = vrot.slane %v12070_v41, %v9176_v24  ;;  %v2522_v50 = vrot.slane %v12073_v52, %v9179_v15 }
 0x2ba   :  { %v2676_v41 = vrot.slane %v12074_v58, %v9179_v15 }
 0x2bb   :  { %v4973_v47 = vcombine.low %v2487_v43, %v2494_v60  ;;  %v4984_v13 = vcombine.low %v2641_v48, %v2648_v30  ;;  %v12077_v60 = vld [vmem:[#allocation46_spill] sm:$0xff]  ;;  %v12078_v30 = vld [vmem:[#allocation55_spill] sm:$0xff] }
 0x2bc   :  { %v9715_v12 = vpop.permute.xlu1 %5200  ;;  %5386 = vperm.xlu1 %7689, %v4969_v2   ;;  %v9717_v3 = vpop.permute.xlu0 %5233 }
 0x2bd   :  { %12067 = vst [vmem:[#allocation30_spill] sm:$0xff] %v9715_v12  ;;  %12068 = vst [vmem:[#allocation39_spill] sm:$0xff] %v9717_v3  ;;  %5419 = vperm.xlu0 %7688, %v4980_v45   ;;  %v2515_v45 = vrot.slane %v12073_v52, %v9176_v24  ;;  %v2669_v3 = vrot.slane %v12074_v58, %v9176_v24  ;;  %v2550_v52 = vrot.slane %v12077_v60, %v9179_v15 }
 0x2be   :  { %v2704_v58 = vrot.slane %v12078_v30, %v9179_v15 }
 0x2bf   :  { %v4975_v43 = vcombine.low %v2515_v45, %v2522_v50  ;;  %v4986_v48 = vcombine.low %v2669_v3, %v2676_v41  ;;  %v12081_v50 = vld [vmem:[#allocation48_spill] sm:$0xff]  ;;  %v12082_v41 = vld [vmem:[#allocation57_spill] sm:$0xff] }
 0x2c0   :  { %v9727_v5 = vpop.permute.xlu1 %5206  ;;  %5392 = vperm.xlu1 %7689, %v4971_v31   ;;  %v9729_v2 = vpop.permute.xlu0 %5239 }
 0x2c1   :  { %12071 = vst [vmem:[#allocation32_spill] sm:$0xff] %v9727_v5  ;;  %12072 = vst [vmem:[#allocation41_spill] sm:$0xff] %v9729_v2  ;;  %5425 = vperm.xlu0 %7688, %v4982_v9   ;;  %v2543_v9 = vrot.slane %v12077_v60, %v9176_v24  ;;  %v2697_v2 = vrot.slane %v12078_v30, %v9176_v24  ;;  %v2578_v60 = vrot.slane %v12081_v50, %v9179_v15 }
 0x2c2   :  { %v2732_v30 = vrot.slane %v12082_v41, %v9179_v15 }
 0x2c3   :  { %v4977_v45 = vcombine.low %v2543_v9, %v2550_v52  ;;  %v4988_v3 = vcombine.low %v2697_v2, %v2704_v58  ;;  %v12085_v52 = vld [vmem:[#allocation50_spill] sm:$0xff]  ;;  %v12086_v58 = vld [vmem:[#allocation59_spill] sm:$0xff] }
 0x2c4   :  { %v9739_v12 = vpop.permute.xlu1 %5212  ;;  %5398 = vperm.xlu1 %7689, %v4973_v47   ;;  %v9741_v31 = vpop.permute.xlu0 %5245 }
 0x2c5   :  { %12075 = vst [vmem:[#allocation34_spill] sm:$0xff] %v9739_v12  ;;  %12076 = vst [vmem:[#allocation43_spill] sm:$0xff] %v9741_v31  ;;  %5431 = vperm.xlu0 %7688, %v4984_v13   ;;  %v2571_v13 = vrot.slane %v12081_v50, %v9176_v24  ;;  %v2725_v12 = vrot.slane %v12082_v41, %v9176_v24  ;;  %v2606_v50 = vrot.slane %v12085_v52, %v9179_v15 }
 0x2c6   :  { %v2760_v41 = vrot.slane %v12086_v58, %v9179_v15 }
 0x2c7   :  { %v4979_v9 = vcombine.low %v2571_v13, %v2578_v60  ;;  %v4990_v2 = vcombine.low %v2725_v12, %v2732_v30  ;;  %v12089_v60 = vld [vmem:[#allocation52_spill] sm:$0xff]  ;;  %v12090_v30 = vld [vmem:[#allocation61_spill] sm:$0xff] }
 0x2c8   :  { %v9751_v5 = vpop.permute.xlu1 %5218  ;;  %5404 = vperm.xlu1 %7689, %v4975_v43   ;;  %v9753_v47 = vpop.permute.xlu0 %5251 }
 0x2c9   :  { %12079 = vst [vmem:[#allocation36_spill] sm:$0xff] %v9751_v5  ;;  %12080 = vst [vmem:[#allocation45_spill] sm:$0xff] %v9753_v47  ;;  %5437 = vperm.xlu0 %7688, %v4986_v48   ;;  %v2599_v48 = vrot.slane %v12085_v52, %v9176_v24  ;;  %v2753_v5 = vrot.slane %v12086_v58, %v9176_v24  ;;  %v2634_v52 = vrot.slane %v12089_v60, %v9179_v15 }
 0x2ca   :  { %v2788_v58 = vrot.slane %v12090_v30, %v9179_v15 }
 0x2cb   :  { %v4981_v13 = vcombine.low %v2599_v48, %v2606_v50  ;;  %v4992_v12 = vcombine.low %v2753_v5, %v2760_v41  ;;  %v12093_v50 = vld [vmem:[#allocation54_spill] sm:$0xff]  ;;  %v12094_v41 = vld [vmem:[#allocation63_spill] sm:$0xff] }
 0x2cc   :  { %v9763_v31 = vpop.permute.xlu1 %5224  ;;  %5410 = vperm.xlu1 %7689, %v4977_v45   ;;  %v9765_v43 = vpop.permute.xlu0 %5257 }
 0x2cd   :  { %12083 = vst [vmem:[#allocation38_spill] sm:$0xff] %v9763_v31  ;;  %12084 = vst [vmem:[#allocation47_spill] sm:$0xff] %v9765_v43  ;;  %5443 = vperm.xlu0 %7688, %v4988_v3   ;;  %v2627_v3 = vrot.slane %v12089_v60, %v9176_v24  ;;  %v2781_v31 = vrot.slane %v12090_v30, %v9176_v24  ;;  %v2662_v60 = vrot.slane %v12093_v50, %v9179_v15 }
 0x2ce   :  { %v2816_v30 = vrot.slane %v12094_v41, %v9179_v15 }
 0x2cf   :  { %v4983_v48 = vcombine.low %v2627_v3, %v2634_v52  ;;  %v4994_v5 = vcombine.low %v2781_v31, %v2788_v58  ;;  %v12097_v52 = vld [vmem:[#allocation56_spill] sm:$0xff]  ;;  %v12098_v58 = vld [vmem:[#allocation65_spill] sm:$0xff] }
 0x2d0   :  { %v9775_v47 = vpop.permute.xlu1 %5230  ;;  %5416 = vperm.xlu1 %7689, %v4979_v9   ;;  %v9777_v45 = vpop.permute.xlu0 %5263 }
 0x2d1   :  { %12087 = vst [vmem:[#allocation40_spill] sm:$0xff] %v9775_v47  ;;  %12088 = vst [vmem:[#allocation49_spill] sm:$0xff] %v9777_v45  ;;  %5449 = vperm.xlu0 %7688, %v4990_v2   ;;  %v2655_v2 = vrot.slane %v12093_v50, %v9176_v24  ;;  %v2809_v47 = vrot.slane %v12094_v41, %v9176_v24  ;;  %v2690_v50 = vrot.slane %v12097_v52, %v9179_v15 }
 0x2d2   :  { %v2844_v41 = vrot.slane %v12098_v58, %v9179_v15 }
 0x2d3   :  { %v4985_v3 = vcombine.low %v2655_v2, %v2662_v60  ;;  %v4996_v31 = vcombine.low %v2809_v47, %v2816_v30  ;;  %v12101_v60 = vld [vmem:[#allocation58_spill] sm:$0xff]  ;;  %v12102_v30 = vld [vmem:[#allocation67_spill] sm:$0xff] }
 0x2d4   :  { %v9787_v43 = vpop.permute.xlu1 %5236  ;;  %5422 = vperm.xlu1 %7689, %v4981_v13   ;;  %v9789_v9 = vpop.permute.xlu0 %5269 }
 0x2d5   :  { %12091 = vst [vmem:[#allocation42_spill] sm:$0xff] %v9787_v43  ;;  %12092 = vst [vmem:[#allocation51_spill] sm:$0xff] %v9789_v9  ;;  %5455 = vperm.xlu0 %7688, %v4992_v12   ;;  %v2683_v12 = vrot.slane %v12097_v52, %v9176_v24  ;;  %v2837_v43 = vrot.slane %v12098_v58, %v9176_v24  ;;  %v2718_v52 = vrot.slane %v12101_v60, %v9179_v15 }
 0x2d6   :  { %v2872_v58 = vrot.slane %v12102_v30, %v9179_v15 }
 0x2d7   :  { %v4987_v2 = vcombine.low %v2683_v12, %v2690_v50  ;;  %v4998_v47 = vcombine.low %v2837_v43, %v2844_v41  ;;  %v12105_v50 = vld [vmem:[#allocation60_spill] sm:$0xff]  ;;  %v12106_v41 = vld [vmem:[#allocation69_spill] sm:$0xff] }
 0x2d8   :  { %v9799_v45 = vpop.permute.xlu1 %5242  ;;  %5428 = vperm.xlu1 %7689, %v4983_v48   ;;  %v9801_v13 = vpop.permute.xlu0 %5275 }
 0x2d9   :  { %12095 = vst [vmem:[#allocation44_spill] sm:$0xff] %v9799_v45  ;;  %12096 = vst [vmem:[#allocation53_spill] sm:$0xff] %v9801_v13  ;;  %5461 = vperm.xlu0 %7688, %v4994_v5   ;;  %v2711_v5 = vrot.slane %v12101_v60, %v9176_v24  ;;  %v2865_v13 = vrot.slane %v12102_v30, %v9176_v24  ;;  %v2746_v60 = vrot.slane %v12105_v50, %v9179_v15 }
 0x2da   :  { %v2900_v30 = vrot.slane %v12106_v41, %v9179_v15 }
 0x2db   :  { %v4989_v12 = vcombine.low %v2711_v5, %v2718_v52  ;;  %v5000_v43 = vcombine.low %v2865_v13, %v2872_v58  ;;  %v12109_v52 = vld [vmem:[#allocation62_spill] sm:$0xff]  ;;  %v12110_v58 = vld [vmem:[#allocation71_spill] sm:$0xff] }
 0x2dc   :  { %v9811_v9 = vpop.permute.xlu1 %5248  ;;  %5434 = vperm.xlu1 %7689, %v4985_v3   ;;  %v9813_v48 = vpop.permute.xlu0 %5281 }
 0x2dd   :  { %12099 = vst [vmem:[#allocation46_spill] sm:$0xff] %v9811_v9  ;;  %12100 = vst [vmem:[#allocation55_spill] sm:$0xff] %v9813_v48  ;;  %5467 = vperm.xlu0 %7688, %v4996_v31   ;;  %v2739_v31 = vrot.slane %v12105_v50, %v9176_v24  ;;  %v2893_v48 = vrot.slane %v12106_v41, %v9176_v24  ;;  %v2774_v50 = vrot.slane %v12109_v52, %v9179_v15 }
 0x2de   :  { %v2928_v41 = vrot.slane %v12110_v58, %v9179_v15 }
 0x2df   :  { %v4991_v5 = vcombine.low %v2739_v31, %v2746_v60  ;;  %v5002_v13 = vcombine.low %v2893_v48, %v2900_v30  ;;  %v12113_v60 = vld [vmem:[#allocation64_spill] sm:$0xff]  ;;  %v12114_v30 = vld [vmem:[#allocation73_spill] sm:$0xff] }
 0x2e0   :  { %v9823_v45 = vpop.permute.xlu1 %5254  ;;  %5440 = vperm.xlu1 %7689, %v4987_v2   ;;  %v9825_v3 = vpop.permute.xlu0 %5287 }
 0x2e1   :  { %12103 = vst [vmem:[#allocation48_spill] sm:$0xff] %v9823_v45  ;;  %12104 = vst [vmem:[#allocation57_spill] sm:$0xff] %v9825_v3  ;;  %5473 = vperm.xlu0 %7688, %v4998_v47   ;;  %v2767_v47 = vrot.slane %v12109_v52, %v9176_v24  ;;  %v2921_v3 = vrot.slane %v12110_v58, %v9176_v24  ;;  %v2802_v52 = vrot.slane %v12113_v60, %v9179_v15 }
 0x2e2   :  { %v2956_v58 = vrot.slane %v12114_v30, %v9179_v15 }
 0x2e3   :  { %v4993_v31 = vcombine.low %v2767_v47, %v2774_v50  ;;  %v5004_v48 = vcombine.low %v2921_v3, %v2928_v41  ;;  %v12117_v50 = vld [vmem:[#allocation66_spill] sm:$0xff]  ;;  %v12118_v41 = vld [vmem:[#allocation75_spill] sm:$0xff] }
 0x2e4   :  { %v9835_v9 = vpop.permute.xlu1 %5260  ;;  %5446 = vperm.xlu1 %7689, %v4989_v12   ;;  %v9837_v2 = vpop.permute.xlu0 %5293 }
 0x2e5   :  { %12107 = vst [vmem:[#allocation50_spill] sm:$0xff] %v9835_v9  ;;  %12108 = vst [vmem:[#allocation59_spill] sm:$0xff] %v9837_v2  ;;  %5479 = vperm.xlu0 %7688, %v5000_v43   ;;  %v2795_v43 = vrot.slane %v12113_v60, %v9176_v24  ;;  %v2949_v2 = vrot.slane %v12114_v30, %v9176_v24  ;;  %v2830_v60 = vrot.slane %v12117_v50, %v9179_v15 }
 0x2e6   :  { %v2984_v30 = vrot.slane %v12118_v41, %v9179_v15 }
 0x2e7   :  { %v4995_v47 = vcombine.low %v2795_v43, %v2802_v52  ;;  %v5006_v3 = vcombine.low %v2949_v2, %v2956_v58  ;;  %v12121_v52 = vld [vmem:[#allocation68_spill] sm:$0xff]  ;;  %v12122_v58 = vld [vmem:[#allocation77_spill] sm:$0xff] }
 0x2e8   :  { %v9847_v45 = vpop.permute.xlu1 %5266  ;;  %5452 = vperm.xlu1 %7689, %v4991_v5   ;;  %v9849_v12 = vpop.permute.xlu0 %5299 }
 0x2e9   :  { %12111 = vst [vmem:[#allocation52_spill] sm:$0xff] %v9847_v45  ;;  %12112 = vst [vmem:[#allocation61_spill] sm:$0xff] %v9849_v12  ;;  %5485 = vperm.xlu0 %7688, %v5002_v13   ;;  %v2823_v13 = vrot.slane %v12117_v50, %v9176_v24  ;;  %v2977_v12 = vrot.slane %v12118_v41, %v9176_v24  ;;  %v2858_v50 = vrot.slane %v12121_v52, %v9179_v15 }
 0x2ea   :  { %v3012_v41 = vrot.slane %v12122_v58, %v9179_v15 }
 0x2eb   :  { %v4997_v43 = vcombine.low %v2823_v13, %v2830_v60  ;;  %v5008_v2 = vcombine.low %v2977_v12, %v2984_v30  ;;  %v12125_v60 = vld [vmem:[#allocation70_spill] sm:$0xff]  ;;  %v12126_v30 = vld [vmem:[#allocation79_spill] sm:$0xff] }
 0x2ec   :  { %v9859_v9 = vpop.permute.xlu1 %5272  ;;  %5458 = vperm.xlu1 %7689, %v4993_v31   ;;  %v9861_v5 = vpop.permute.xlu0 %5305 }
 0x2ed   :  { %12115 = vst [vmem:[#allocation54_spill] sm:$0xff] %v9859_v9  ;;  %12116 = vst [vmem:[#allocation63_spill] sm:$0xff] %v9861_v5  ;;  %5491 = vperm.xlu0 %7688, %v5004_v48   ;;  %v2851_v48 = vrot.slane %v12121_v52, %v9176_v24  ;;  %v3005_v5 = vrot.slane %v12122_v58, %v9176_v24  ;;  %v2886_v52 = vrot.slane %v12125_v60, %v9179_v15 }
 0x2ee   :  { %v3040_v58 = vrot.slane %v12126_v30, %v9179_v15 }
 0x2ef   :  { %v4999_v13 = vcombine.low %v2851_v48, %v2858_v50  ;;  %v5010_v12 = vcombine.low %v3005_v5, %v3012_v41  ;;  %v12129_v50 = vld [vmem:[#allocation72_spill] sm:$0xff]  ;;  %v12130_v41 = vld [vmem:[#allocation81_spill] sm:$0xff] }
 0x2f0   :  { %v9871_v45 = vpop.permute.xlu1 %5278  ;;  %5464 = vperm.xlu1 %7689, %v4995_v47   ;;  %v9873_v31 = vpop.permute.xlu0 %5311 }
 0x2f1   :  { %12119 = vst [vmem:[#allocation56_spill] sm:$0xff] %v9871_v45  ;;  %12120 = vst [vmem:[#allocation65_spill] sm:$0xff] %v9873_v31  ;;  %5497 = vperm.xlu0 %7688, %v5006_v3   ;;  %v2879_v3 = vrot.slane %v12125_v60, %v9176_v24  ;;  %v3033_v31 = vrot.slane %v12126_v30, %v9176_v24  ;;  %v2914_v60 = vrot.slane %v12129_v50, %v9179_v15 }
 0x2f2   :  { %v3068_v30 = vrot.slane %v12130_v41, %v9179_v15 }
 0x2f3   :  { %v5001_v48 = vcombine.low %v2879_v3, %v2886_v52  ;;  %v5012_v5 = vcombine.low %v3033_v31, %v3040_v58  ;;  %v12133_v52 = vld [vmem:[#allocation74_spill] sm:$0xff]  ;;  %v12134_v58 = vld [vmem:[#allocation83_spill] sm:$0xff] }
 0x2f4   :  { %v9883_v9 = vpop.permute.xlu1 %5284  ;;  %5470 = vperm.xlu1 %7689, %v4997_v43   ;;  %v9885_v47 = vpop.permute.xlu0 %5317 }
 0x2f5   :  { %12123 = vst [vmem:[#allocation58_spill] sm:$0xff] %v9883_v9  ;;  %12124 = vst [vmem:[#allocation67_spill] sm:$0xff] %v9885_v47  ;;  %5503 = vperm.xlu0 %7688, %v5008_v2   ;;  %v2907_v2 = vrot.slane %v12129_v50, %v9176_v24  ;;  %v3061_v47 = vrot.slane %v12130_v41, %v9176_v24  ;;  %v2942_v50 = vrot.slane %v12133_v52, %v9179_v15 }
 0x2f6   :  { %v3096_v41 = vrot.slane %v12134_v58, %v9179_v15 }
 0x2f7   :  { %v5003_v3 = vcombine.low %v2907_v2, %v2914_v60  ;;  %v5014_v31 = vcombine.low %v3061_v47, %v3068_v30  ;;  %v12137_v60 = vld [vmem:[#allocation76_spill] sm:$0xff]  ;;  %v12138_v30 = vld [vmem:[#allocation85_spill] sm:$0xff] }
 0x2f8   :  { %v9895_v45 = vpop.permute.xlu1 %5290  ;;  %5476 = vperm.xlu1 %7689, %v4999_v13   ;;  %v9897_v43 = vpop.permute.xlu0 %5323 }
 0x2f9   :  { %12127 = vst [vmem:[#allocation60_spill] sm:$0xff] %v9895_v45  ;;  %12128 = vst [vmem:[#allocation69_spill] sm:$0xff] %v9897_v43  ;;  %5509 = vperm.xlu0 %7688, %v5010_v12   ;;  %v2935_v12 = vrot.slane %v12133_v52, %v9176_v24  ;;  %v3089_v43 = vrot.slane %v12134_v58, %v9176_v24  ;;  %v2970_v52 = vrot.slane %v12137_v60, %v9179_v15 }
 0x2fa   :  { %v3124_v58 = vrot.slane %v12138_v30, %v9179_v15 }
 0x2fb   :  { %v5005_v2 = vcombine.low %v2935_v12, %v2942_v50  ;;  %v5016_v47 = vcombine.low %v3089_v43, %v3096_v41  ;;  %v12141_v50 = vld [vmem:[#allocation78_spill] sm:$0xff]  ;;  %v12142_v41 = vld [vmem:[#allocation87_spill] sm:$0xff] }
 0x2fc   :  { %v9907_v9 = vpop.permute.xlu1 %5296  ;;  %5482 = vperm.xlu1 %7689, %v5001_v48   ;;  %v9909_v13 = vpop.permute.xlu0 %5329 }
 0x2fd   :  { %12131 = vst [vmem:[#allocation62_spill] sm:$0xff] %v9907_v9  ;;  %12132 = vst [vmem:[#allocation71_spill] sm:$0xff] %v9909_v13  ;;  %5515 = vperm.xlu0 %7688, %v5012_v5   ;;  %v2963_v5 = vrot.slane %v12137_v60, %v9176_v24  ;;  %v3117_v13 = vrot.slane %v12138_v30, %v9176_v24  ;;  %v2998_v60 = vrot.slane %v12141_v50, %v9179_v15 }
 0x2fe   :  { %v3152_v30 = vrot.slane %v12142_v41, %v9179_v15 }
 0x2ff   :  { %v5007_v12 = vcombine.low %v2963_v5, %v2970_v52  ;;  %v5018_v43 = vcombine.low %v3117_v13, %v3124_v58  ;;  %v12145_v52 = vld [vmem:[#allocation80_spill] sm:$0xff]  ;;  %v12146_v58 = vld [vmem:[#allocation89_spill] sm:$0xff] }
 0x300   :  { %v9919_v45 = vpop.permute.xlu1 %5302  ;;  %5488 = vperm.xlu1 %7689, %v5003_v3   ;;  %v9921_v48 = vpop.permute.xlu0 %5335 }
 0x301   :  { %12135 = vst [vmem:[#allocation64_spill] sm:$0xff] %v9919_v45  ;;  %12136 = vst [vmem:[#allocation73_spill] sm:$0xff] %v9921_v48  ;;  %5521 = vperm.xlu0 %7688, %v5014_v31   ;;  %v2991_v31 = vrot.slane %v12141_v50, %v9176_v24  ;;  %v3145_v48 = vrot.slane %v12142_v41, %v9176_v24  ;;  %v3026_v50 = vrot.slane %v12145_v52, %v9179_v15 }
 0x302   :  { %v3180_v41 = vrot.slane %v12146_v58, %v9179_v15 }
 0x303   :  { %v5009_v5 = vcombine.low %v2991_v31, %v2998_v60  ;;  %v5020_v13 = vcombine.low %v3145_v48, %v3152_v30  ;;  %v12149_v60 = vld [vmem:[#allocation82_spill] sm:$0xff]  ;;  %v12150_v30 = vld [vmem:[#allocation91_spill] sm:$0xff] }
 0x304   :  { %v9931_v9 = vpop.permute.xlu1 %5308  ;;  %5494 = vperm.xlu1 %7689, %v5005_v2   ;;  %v9933_v3 = vpop.permute.xlu0 %5341 }
 0x305   :  { %12139 = vst [vmem:[#allocation66_spill] sm:$0xff] %v9931_v9  ;;  %12140 = vst [vmem:[#allocation75_spill] sm:$0xff] %v9933_v3  ;;  %5527 = vperm.xlu0 %7688, %v5016_v47   ;;  %v3019_v47 = vrot.slane %v12145_v52, %v9176_v24  ;;  %v3173_v9 = vrot.slane %v12146_v58, %v9176_v24  ;;  %v3054_v52 = vrot.slane %v12149_v60, %v9179_v15 }
 0x306   :  { %v3208_v58 = vrot.slane %v12150_v30, %v9179_v15 }
 0x307   :  { %v5011_v31 = vcombine.low %v3019_v47, %v3026_v50  ;;  %v5022_v48 = vcombine.low %v3173_v9, %v3180_v41  ;;  %v12153_v50 = vld [vmem:[#allocation84_spill] sm:$0xff]  ;;  %v12154_v41 = vld [vmem:[#allocation93_spill] sm:$0xff] }
 0x308   :  { %v9943_v45 = vpop.permute.xlu1 %5314  ;;  %5500 = vperm.xlu1 %7689, %v5007_v12   ;;  %v9945_v2 = vpop.permute.xlu0 %5347 }
 0x309   :  { %12143 = vst [vmem:[#allocation68_spill] sm:$0xff] %v9943_v45  ;;  %12144 = vst [vmem:[#allocation77_spill] sm:$0xff] %v9945_v2  ;;  %5533 = vperm.xlu0 %7688, %v5018_v43   ;;  %v3047_v43 = vrot.slane %v12149_v60, %v9176_v24  ;;  %v3201_v45 = vrot.slane %v12150_v30, %v9176_v24  ;;  %v3082_v60 = vrot.slane %v12153_v50, %v9179_v15 }
 0x30a   :  { %v3236_v30 = vrot.slane %v12154_v41, %v9179_v15 }
 0x30b   :  { %v5013_v47 = vcombine.low %v3047_v43, %v3054_v52  ;;  %v5024_v9 = vcombine.low %v3201_v45, %v3208_v58  ;;  %v12157_v52 = vld [vmem:[#allocation86_spill] sm:$0xff]  ;;  %v12158_v58 = vld [vmem:[#allocation95_spill] sm:$0xff] }
 0x30c   :  { %v9955_v3 = vpop.permute.xlu1 %5320  ;;  %5506 = vperm.xlu1 %7689, %v5009_v5   ;;  %v9957_v12 = vpop.permute.xlu0 %5353 }
 0x30d   :  { %12147 = vst [vmem:[#allocation70_spill] sm:$0xff] %v9955_v3  ;;  %12148 = vst [vmem:[#allocation79_spill] sm:$0xff] %v9957_v12  ;;  %5539 = vperm.xlu0 %7688, %v5020_v13   ;;  %v3075_v13 = vrot.slane %v12153_v50, %v9176_v24  ;;  %v3229_v3 = vrot.slane %v12154_v41, %v9176_v24  ;;  %v3110_v50 = vrot.slane %v12157_v52, %v9179_v15 }
 0x30e   :  { %v3264_v41 = vrot.slane %v12158_v58, %v9179_v15 }
 0x30f   :  { %v5015_v43 = vcombine.low %v3075_v13, %v3082_v60  ;;  %v5026_v45 = vcombine.low %v3229_v3, %v3236_v30  ;;  %v12161_v60 = vld [vmem:[#allocation88_spill] sm:$0xff]  ;;  %v12162_v30 = vld [vmem:[#allocation97_spill] sm:$0xff] }
 0x310   :  { %v9967_v2 = vpop.permute.xlu1 %5326  ;;  %5512 = vperm.xlu1 %7689, %v5011_v31   ;;  %v9969_v5 = vpop.permute.xlu0 %5359 }
 0x311   :  { %12151 = vst [vmem:[#allocation72_spill] sm:$0xff] %v9967_v2  ;;  %12152 = vst [vmem:[#allocation81_spill] sm:$0xff] %v9969_v5  ;;  %5545 = vperm.xlu0 %7688, %v5022_v48   ;;  %v3103_v48 = vrot.slane %v12157_v52, %v9176_v24  ;;  %v3257_v2 = vrot.slane %v12158_v58, %v9176_v24  ;;  %v3138_v52 = vrot.slane %v12161_v60, %v9179_v15 }
 0x312   :  { %v3292_v58 = vrot.slane %v12162_v30, %v9179_v15 }
 0x313   :  { %v5017_v13 = vcombine.low %v3103_v48, %v3110_v50  ;;  %v5028_v3 = vcombine.low %v3257_v2, %v3264_v41  ;;  %v12165_v50 = vld [vmem:[#allocation90_spill] sm:$0xff]  ;;  %v12166_v41 = vld [vmem:[#allocation99_spill] sm:$0xff] }
 0x314   :  { %v9979_v12 = vpop.permute.xlu1 %5332  ;;  %5518 = vperm.xlu1 %7689, %v5013_v47   ;;  %v9981_v31 = vpop.permute.xlu0 %5365 }
 0x315   :  { %12155 = vst [vmem:[#allocation74_spill] sm:$0xff] %v9979_v12  ;;  %12156 = vst [vmem:[#allocation83_spill] sm:$0xff] %v9981_v31  ;;  %5551 = vperm.xlu0 %7688, %v5024_v9   ;;  %v3131_v9 = vrot.slane %v12161_v60, %v9176_v24  ;;  %v3285_v12 = vrot.slane %v12162_v30, %v9176_v24  ;;  %v3166_v60 = vrot.slane %v12165_v50, %v9179_v15 }
 0x316   :  { %v3320_v30 = vrot.slane %v12166_v41, %v9179_v15 }
 0x317   :  { %v5019_v48 = vcombine.low %v3131_v9, %v3138_v52  ;;  %v5030_v2 = vcombine.low %v3285_v12, %v3292_v58  ;;  %v12169_v52 = vld [vmem:[#allocation92_spill] sm:$0xff]  ;;  %v12170_v58 = vld [vmem:[#allocation101_spill] sm:$0xff] }
 0x318   :  { %v9991_v5 = vpop.permute.xlu1 %5338  ;;  %5524 = vperm.xlu1 %7689, %v5015_v43   ;;  %v9993_v47 = vpop.permute.xlu0 %5371 }
 0x319   :  { %12159 = vst [vmem:[#allocation76_spill] sm:$0xff] %v9991_v5  ;;  %12160 = vst [vmem:[#allocation85_spill] sm:$0xff] %v9993_v47  ;;  %5557 = vperm.xlu0 %7688, %v5026_v45   ;;  %v3159_v45 = vrot.slane %v12165_v50, %v9176_v24  ;;  %v3313_v47 = vrot.slane %v12166_v41, %v9176_v24  ;;  %v3194_v50 = vrot.slane %v12169_v52, %v9179_v15 }
 0x31a   :  { %v3348_v41 = vrot.slane %v12170_v58, %v9179_v15 }
 0x31b   :  { %v5021_v9 = vcombine.low %v3159_v45, %v3166_v60  ;;  %v5032_v12 = vcombine.low %v3313_v47, %v3320_v30  ;;  %v12173_v60 = vld [vmem:[#allocation94_spill] sm:$0xff]  ;;  %v12174_v30 = vld [vmem:[#allocation103_spill] sm:$0xff] }
 0x31c   :  { %v10003_v31 = vpop.permute.xlu1 %5344  ;;  %5530 = vperm.xlu1 %7689, %v5017_v13   ;;  %v10005_v43 = vpop.permute.xlu0 %5377 }
 0x31d   :  { %12163 = vst [vmem:[#allocation78_spill] sm:$0xff] %v10003_v31  ;;  %12164 = vst [vmem:[#allocation87_spill] sm:$0xff] %v10005_v43  ;;  %5563 = vperm.xlu0 %7688, %v5028_v3   ;;  %v3187_v3 = vrot.slane %v12169_v52, %v9176_v24  ;;  %v3341_v43 = vrot.slane %v12170_v58, %v9176_v24  ;;  %v3222_v52 = vrot.slane %v12173_v60, %v9179_v15 }
 0x31e   :  { %v3376_v58 = vrot.slane %v12174_v30, %v9179_v15 }
 0x31f   :  { %v5023_v45 = vcombine.low %v3187_v3, %v3194_v50  ;;  %v5034_v47 = vcombine.low %v3341_v43, %v3348_v41  ;;  %v12177_v50 = vld [vmem:[#allocation96_spill] sm:$0xff]  ;;  %v12178_v41 = vld [vmem:[#allocation105_spill] sm:$0xff] }
 0x320   :  { %v10015_v5 = vpop.permute.xlu1 %5350  ;;  %5536 = vperm.xlu1 %7689, %v5019_v48   ;;  %v10017_v13 = vpop.permute.xlu0 %5383 }
 0x321   :  { %12167 = vst [vmem:[#allocation80_spill] sm:$0xff] %v10015_v5  ;;  %12168 = vst [vmem:[#allocation89_spill] sm:$0xff] %v10017_v13  ;;  %5569 = vperm.xlu0 %7688, %v5030_v2   ;;  %v3215_v2 = vrot.slane %v12173_v60, %v9176_v24  ;;  %v3369_v13 = vrot.slane %v12174_v30, %v9176_v24  ;;  %v3250_v60 = vrot.slane %v12177_v50, %v9179_v15 }
 0x322   :  { %v3404_v30 = vrot.slane %v12178_v41, %v9179_v15 }
 0x323   :  { %v5025_v3 = vcombine.low %v3215_v2, %v3222_v52  ;;  %v5036_v43 = vcombine.low %v3369_v13, %v3376_v58  ;;  %v12181_v52 = vld [vmem:[#allocation98_spill] sm:$0xff]  ;;  %v12182_v58 = vld [vmem:[#allocation107_spill] sm:$0xff] }
 0x324   :  { %v10027_v31 = vpop.permute.xlu1 %5356  ;;  %5542 = vperm.xlu1 %7689, %v5021_v9   ;;  %v10029_v48 = vpop.permute.xlu0 %5389 }
 0x325   :  { %12171 = vst [vmem:[#allocation82_spill] sm:$0xff] %v10027_v31  ;;  %12172 = vst [vmem:[#allocation91_spill] sm:$0xff] %v10029_v48  ;;  %5575 = vperm.xlu0 %7688, %v5032_v12   ;;  %v3243_v12 = vrot.slane %v12177_v50, %v9176_v24  ;;  %v3397_v48 = vrot.slane %v12178_v41, %v9176_v24  ;;  %v3278_v50 = vrot.slane %v12181_v52, %v9179_v15 }
 0x326   :  { %v3432_v41 = vrot.slane %v12182_v58, %v9179_v15 }
 0x327   :  { %v5027_v2 = vcombine.low %v3243_v12, %v3250_v60  ;;  %v5038_v13 = vcombine.low %v3397_v48, %v3404_v30  ;;  %v12185_v60 = vld [vmem:[#allocation100_spill] sm:$0xff]  ;;  %v12186_v30 = vld [vmem:[#allocation109_spill] sm:$0xff] }
 0x328   :  { %v10039_v5 = vpop.permute.xlu1 %5362  ;;  %5548 = vperm.xlu1 %7689, %v5023_v45   ;;  %v10041_v9 = vpop.permute.xlu0 %5395 }
 0x329   :  { %12175 = vst [vmem:[#allocation84_spill] sm:$0xff] %v10039_v5  ;;  %12176 = vst [vmem:[#allocation93_spill] sm:$0xff] %v10041_v9  ;;  %5581 = vperm.xlu0 %7688, %v5034_v47   ;;  %v3271_v47 = vrot.slane %v12181_v52, %v9176_v24  ;;  %v3425_v9 = vrot.slane %v12182_v58, %v9176_v24  ;;  %v3306_v52 = vrot.slane %v12185_v60, %v9179_v15 }
 0x32a   :  { %v3460_v58 = vrot.slane %v12186_v30, %v9179_v15 }
 0x32b   :  { %v5029_v12 = vcombine.low %v3271_v47, %v3278_v50  ;;  %v5040_v48 = vcombine.low %v3425_v9, %v3432_v41  ;;  %v12189_v50 = vld [vmem:[#allocation102_spill] sm:$0xff]  ;;  %v12190_v41 = vld [vmem:[#allocation111_spill] sm:$0xff] }
 0x32c   :  { %v10051_v31 = vpop.permute.xlu1 %5368  ;;  %5554 = vperm.xlu1 %7689, %v5025_v3   ;;  %v10053_v45 = vpop.permute.xlu0 %5401 }
 0x32d   :  { %12179 = vst [vmem:[#allocation86_spill] sm:$0xff] %v10051_v31  ;;  %12180 = vst [vmem:[#allocation95_spill] sm:$0xff] %v10053_v45  ;;  %5587 = vperm.xlu0 %7688, %v5036_v43   ;;  %v3299_v43 = vrot.slane %v12185_v60, %v9176_v24  ;;  %v3453_v45 = vrot.slane %v12186_v30, %v9176_v24  ;;  %v3334_v60 = vrot.slane %v12189_v50, %v9179_v15 }
 0x32e   :  { %v3488_v30 = vrot.slane %v12190_v41, %v9179_v15 }
 0x32f   :  { %v5031_v47 = vcombine.low %v3299_v43, %v3306_v52  ;;  %v5042_v9 = vcombine.low %v3453_v45, %v3460_v58  ;;  %v12193_v52 = vld [vmem:[#allocation104_spill] sm:$0xff]  ;;  %v12194_v58 = vld [vmem:[#allocation113_spill] sm:$0xff] }
 0x330   :  { %v10063_v5 = vpop.permute.xlu1 %5374  ;;  %5560 = vperm.xlu1 %7689, %v5027_v2   ;;  %v10065_v3 = vpop.permute.xlu0 %5407 }
 0x331   :  { %12183 = vst [vmem:[#allocation88_spill] sm:$0xff] %v10063_v5  ;;  %12184 = vst [vmem:[#allocation97_spill] sm:$0xff] %v10065_v3  ;;  %5593 = vperm.xlu0 %7688, %v5038_v13   ;;  %v3327_v13 = vrot.slane %v12189_v50, %v9176_v24  ;;  %v3481_v3 = vrot.slane %v12190_v41, %v9176_v24  ;;  %v3362_v50 = vrot.slane %v12193_v52, %v9179_v15 }
 0x332   :  { %v3516_v41 = vrot.slane %v12194_v58, %v9179_v15 }
 0x333   :  { %v5033_v43 = vcombine.low %v3327_v13, %v3334_v60  ;;  %v5044_v45 = vcombine.low %v3481_v3, %v3488_v30  ;;  %v12197_v60 = vld [vmem:[#allocation106_spill] sm:$0xff]  ;;  %v12198_v30 = vld [vmem:[#allocation115_spill] sm:$0xff] }
 0x334   :  { %v10075_v31 = vpop.permute.xlu1 %5380  ;;  %5566 = vperm.xlu1 %7689, %v5029_v12   ;;  %v10077_v2 = vpop.permute.xlu0 %5413 }
 0x335   :  { %12187 = vst [vmem:[#allocation90_spill] sm:$0xff] %v10075_v31  ;;  %12188 = vst [vmem:[#allocation99_spill] sm:$0xff] %v10077_v2  ;;  %5599 = vperm.xlu0 %7688, %v5040_v48   ;;  %v3355_v48 = vrot.slane %v12193_v52, %v9176_v24  ;;  %v3509_v31 = vrot.slane %v12194_v58, %v9176_v24  ;;  %v3390_v52 = vrot.slane %v12197_v60, %v9179_v15 }
 0x336   :  { %v3544_v58 = vrot.slane %v12198_v30, %v9179_v15 }
 0x337   :  { %v5035_v13 = vcombine.low %v3355_v48, %v3362_v50  ;;  %v5046_v3 = vcombine.low %v3509_v31, %v3516_v41  ;;  %v12201_v50 = vld [vmem:[#allocation108_spill] sm:$0xff]  ;;  %v12202_v41 = vld [vmem:[#allocation117_spill] sm:$0xff] }
 0x338   :  { %v10087_v5 = vpop.permute.xlu1 %5386  ;;  %5572 = vperm.xlu1 %7689, %v5031_v47   ;;  %v10089_v12 = vpop.permute.xlu0 %5419 }
 0x339   :  { %12191 = vst [vmem:[#allocation92_spill] sm:$0xff] %v10087_v5  ;;  %12192 = vst [vmem:[#allocation101_spill] sm:$0xff] %v10089_v12  ;;  %5605 = vperm.xlu0 %7688, %v5042_v9   ;;  %v3383_v9 = vrot.slane %v12197_v60, %v9176_v24  ;;  %v3537_v12 = vrot.slane %v12198_v30, %v9176_v24  ;;  %v3418_v60 = vrot.slane %v12201_v50, %v9179_v15 }
 0x33a   :  { %v3572_v30 = vrot.slane %v12202_v41, %v9179_v15 }
 0x33b   :  { %v5037_v48 = vcombine.low %v3383_v9, %v3390_v52  ;;  %v5048_v31 = vcombine.low %v3537_v12, %v3544_v58  ;;  %v12205_v52 = vld [vmem:[#allocation110_spill] sm:$0xff]  ;;  %v12206_v58 = vld [vmem:[#allocation119_spill] sm:$0xff] }
 0x33c   :  { %v10099_v2 = vpop.permute.xlu1 %5392  ;;  %5578 = vperm.xlu1 %7689, %v5033_v43   ;;  %v10101_v47 = vpop.permute.xlu0 %5425 }
 0x33d   :  { %12195 = vst [vmem:[#allocation94_spill] sm:$0xff] %v10099_v2  ;;  %12196 = vst [vmem:[#allocation103_spill] sm:$0xff] %v10101_v47  ;;  %5611 = vperm.xlu0 %7688, %v5044_v45   ;;  %v3411_v45 = vrot.slane %v12201_v50, %v9176_v24  ;;  %v3565_v47 = vrot.slane %v12202_v41, %v9176_v24  ;;  %v3446_v50 = vrot.slane %v12205_v52, %v9179_v15 }
 0x33e   :  { %v3600_v41 = vrot.slane %v12206_v58, %v9179_v15 }
 0x33f   :  { %v5039_v9 = vcombine.low %v3411_v45, %v3418_v60  ;;  %v5050_v12 = vcombine.low %v3565_v47, %v3572_v30  ;;  %v12209_v60 = vld [vmem:[#allocation112_spill] sm:$0xff]  ;;  %v12210_v30 = vld [vmem:[#allocation121_spill] sm:$0xff] }
 0x340   :  { %v10111_v5 = vpop.permute.xlu1 %5398  ;;  %5584 = vperm.xlu1 %7689, %v5035_v13   ;;  %v10113_v43 = vpop.permute.xlu0 %5431 }
 0x341   :  { %12199 = vst [vmem:[#allocation96_spill] sm:$0xff] %v10111_v5  ;;  %12200 = vst [vmem:[#allocation105_spill] sm:$0xff] %v10113_v43  ;;  %5617 = vperm.xlu0 %7688, %v5046_v3   ;;  %v3439_v3 = vrot.slane %v12205_v52, %v9176_v24  ;;  %v3593_v43 = vrot.slane %v12206_v58, %v9176_v24  ;;  %v3474_v52 = vrot.slane %v12209_v60, %v9179_v15 }
 0x342   :  { %v3628_v58 = vrot.slane %v12210_v30, %v9179_v15 }
 0x343   :  { %v5041_v45 = vcombine.low %v3439_v3, %v3446_v50  ;;  %v5052_v47 = vcombine.low %v3593_v43, %v3600_v41  ;;  %v12213_v50 = vld [vmem:[#allocation114_spill] sm:$0xff]  ;;  %v12214_v41 = vld [vmem:[#allocation123_spill] sm:$0xff] }
 0x344   :  { %v10123_v2 = vpop.permute.xlu1 %5404  ;;  %5590 = vperm.xlu1 %7689, %v5037_v48   ;;  %v10125_v13 = vpop.permute.xlu0 %5437 }
 0x345   :  { %12203 = vst [vmem:[#allocation98_spill] sm:$0xff] %v10123_v2  ;;  %12204 = vst [vmem:[#allocation107_spill] sm:$0xff] %v10125_v13  ;;  %5623 = vperm.xlu0 %7688, %v5048_v31   ;;  %v3467_v31 = vrot.slane %v12209_v60, %v9176_v24  ;;  %v3621_v2 = vrot.slane %v12210_v30, %v9176_v24  ;;  %v3502_v60 = vrot.slane %v12213_v50, %v9179_v15 }
 0x346   :  { %v3656_v30 = vrot.slane %v12214_v41, %v9179_v15 }
 0x347   :  { %v5043_v3 = vcombine.low %v3467_v31, %v3474_v52  ;;  %v5054_v43 = vcombine.low %v3621_v2, %v3628_v58  ;;  %v12217_v52 = vld [vmem:[#allocation116_spill] sm:$0xff]  ;;  %v12218_v58 = vld [vmem:[#allocation125_spill] sm:$0xff] }
 0x348   :  { %v10135_v5 = vpop.permute.xlu1 %5410  ;;  %5596 = vperm.xlu1 %7689, %v5039_v9   ;;  %v10137_v48 = vpop.permute.xlu0 %5443 }
 0x349   :  { %12207 = vst [vmem:[#allocation100_spill] sm:$0xff] %v10135_v5  ;;  %12208 = vst [vmem:[#allocation109_spill] sm:$0xff] %v10137_v48  ;;  %5629 = vperm.xlu0 %7688, %v5050_v12   ;;  %v3495_v12 = vrot.slane %v12213_v50, %v9176_v24  ;;  %v3649_v5 = vrot.slane %v12214_v41, %v9176_v24  ;;  %v3530_v50 = vrot.slane %v12217_v52, %v9179_v15 }
 0x34a   :  { %v3684_v41 = vrot.slane %v12218_v58, %v9179_v15 }
 0x34b   :  { %v5045_v31 = vcombine.low %v3495_v12, %v3502_v60  ;;  %v5056_v2 = vcombine.low %v3649_v5, %v3656_v30  ;;  %v12221_v60 = vld [vmem:[#allocation118_spill] sm:$0xff]  ;;  %v12222_v30 = vld [vmem:[#allocation127_spill] sm:$0xff] }
 0x34c   :  { %v10147_v13 = vpop.permute.xlu1 %5416  ;;  %5602 = vperm.xlu1 %7689, %v5041_v45   ;;  %v10149_v9 = vpop.permute.xlu0 %5449 }
 0x34d   :  { %12211 = vst [vmem:[#allocation102_spill] sm:$0xff] %v10147_v13  ;;  %12212 = vst [vmem:[#allocation111_spill] sm:$0xff] %v10149_v9  ;;  %5635 = vperm.xlu0 %7688, %v5052_v47   ;;  %v3523_v47 = vrot.slane %v12217_v52, %v9176_v24  ;;  %v3677_v13 = vrot.slane %v12218_v58, %v9176_v24  ;;  %v3558_v52 = vrot.slane %v12221_v60, %v9179_v15 }
 0x34e   :  { %v3712_v58 = vrot.slane %v12222_v30, %v9179_v15 }
 0x34f   :  { %v5047_v12 = vcombine.low %v3523_v47, %v3530_v50  ;;  %v5058_v5 = vcombine.low %v3677_v13, %v3684_v41  ;;  %v12225_v50 = vld [vmem:[#allocation120_spill] sm:$0xff]  ;;  %v12226_v41 = vld [vmem:[#allocation129_spill] sm:$0xff] }
 0x350   :  { %v10159_v48 = vpop.permute.xlu1 %5422  ;;  %5608 = vperm.xlu1 %7689, %v5043_v3   ;;  %v10161_v45 = vpop.permute.xlu0 %5455 }
 0x351   :  { %12215 = vst [vmem:[#allocation104_spill] sm:$0xff] %v10159_v48  ;;  %12216 = vst [vmem:[#allocation113_spill] sm:$0xff] %v10161_v45  ;;  %5641 = vperm.xlu0 %7688, %v5054_v43   ;;  %v3551_v43 = vrot.slane %v12221_v60, %v9176_v24  ;;  %v3705_v48 = vrot.slane %v12222_v30, %v9176_v24  ;;  %v3586_v60 = vrot.slane %v12225_v50, %v9179_v15 }
 0x352   :  { %v3740_v30 = vrot.slane %v12226_v41, %v9179_v15 }
 0x353   :  { %v5049_v47 = vcombine.low %v3551_v43, %v3558_v52  ;;  %v5060_v13 = vcombine.low %v3705_v48, %v3712_v58  ;;  %v12229_v52 = vld [vmem:[#allocation122_spill] sm:$0xff]  ;;  %v12230_v58 = vld [vmem:[#allocation131_spill] sm:$0xff] }
 0x354   :  { %v10171_v9 = vpop.permute.xlu1 %5428  ;;  %5614 = vperm.xlu1 %7689, %v5045_v31   ;;  %v10173_v3 = vpop.permute.xlu0 %5461 }
 0x355   :  { %12219 = vst [vmem:[#allocation106_spill] sm:$0xff] %v10171_v9  ;;  %12220 = vst [vmem:[#allocation115_spill] sm:$0xff] %v10173_v3  ;;  %5647 = vperm.xlu0 %7688, %v5056_v2   ;;  %v3579_v2 = vrot.slane %v12225_v50, %v9176_v24  ;;  %v3733_v9 = vrot.slane %v12226_v41, %v9176_v24  ;;  %v3614_v50 = vrot.slane %v12229_v52, %v9179_v15 }
 0x356   :  { %v3768_v41 = vrot.slane %v12230_v58, %v9179_v15 }
 0x357   :  { %v5051_v43 = vcombine.low %v3579_v2, %v3586_v60  ;;  %v5062_v48 = vcombine.low %v3733_v9, %v3740_v30  ;;  %v12233_v60 = vld [vmem:[#allocation124_spill] sm:$0xff]  ;;  %v12234_v30 = vld [vmem:[#allocation133_spill] sm:$0xff] }
 0x358   :  { %v10183_v45 = vpop.permute.xlu1 %5434  ;;  %5620 = vperm.xlu1 %7689, %v5047_v12   ;;  %v10185_v31 = vpop.permute.xlu0 %5467 }
 0x359   :  { %12223 = vst [vmem:[#allocation108_spill] sm:$0xff] %v10183_v45  ;;  %12224 = vst [vmem:[#allocation117_spill] sm:$0xff] %v10185_v31  ;;  %5653 = vperm.xlu0 %7688, %v5058_v5   ;;  %v3607_v5 = vrot.slane %v12229_v52, %v9176_v24  ;;  %v3761_v31 = vrot.slane %v12230_v58, %v9176_v24  ;;  %v3642_v52 = vrot.slane %v12233_v60, %v9179_v15 }
 0x35a   :  { %v3796_v58 = vrot.slane %v12234_v30, %v9179_v15 }
 0x35b   :  { %v5053_v2 = vcombine.low %v3607_v5, %v3614_v50  ;;  %v5064_v9 = vcombine.low %v3761_v31, %v3768_v41  ;;  %v12237_v50 = vld [vmem:[#allocation126_spill] sm:$0xff]  ;;  %v12238_v41 = vld [vmem:[#allocation135_spill] sm:$0xff] }
 0x35c   :  { %v10195_v3 = vpop.permute.xlu1 %5440  ;;  %5626 = vperm.xlu1 %7689, %v5049_v47   ;;  %v10197_v12 = vpop.permute.xlu0 %5473 }
 0x35d   :  { %12227 = vst [vmem:[#allocation110_spill] sm:$0xff] %v10195_v3  ;;  %12228 = vst [vmem:[#allocation119_spill] sm:$0xff] %v10197_v12  ;;  %5659 = vperm.xlu0 %7688, %v5060_v13   ;;  %v3635_v13 = vrot.slane %v12233_v60, %v9176_v24  ;;  %v3789_v12 = vrot.slane %v12234_v30, %v9176_v24  ;;  %v3670_v60 = vrot.slane %v12237_v50, %v9179_v15 }
 0x35e   :  { %v3824_v30 = vrot.slane %v12238_v41, %v9179_v15 }
 0x35f   :  { %v5055_v5 = vcombine.low %v3635_v13, %v3642_v52  ;;  %v5066_v31 = vcombine.low %v3789_v12, %v3796_v58  ;;  %v12241_v52 = vld [vmem:[#allocation128_spill] sm:$0xff]  ;;  %v12242_v58 = vld [vmem:[#allocation137_spill] sm:$0xff] }
 0x360   :  { %v10207_v45 = vpop.permute.xlu1 %5446  ;;  %5632 = vperm.xlu1 %7689, %v5051_v43   ;;  %v10209_v47 = vpop.permute.xlu0 %5479 }
 0x361   :  { %12231 = vst [vmem:[#allocation112_spill] sm:$0xff] %v10207_v45  ;;  %12232 = vst [vmem:[#allocation121_spill] sm:$0xff] %v10209_v47  ;;  %5665 = vperm.xlu0 %7688, %v5062_v48   ;;  %v3663_v48 = vrot.slane %v12237_v50, %v9176_v24  ;;  %v3817_v47 = vrot.slane %v12238_v41, %v9176_v24  ;;  %v3698_v50 = vrot.slane %v12241_v52, %v9179_v15 }
 0x362   :  { %v3852_v41 = vrot.slane %v12242_v58, %v9179_v15 }
 0x363   :  { %v5057_v13 = vcombine.low %v3663_v48, %v3670_v60  ;;  %v5068_v12 = vcombine.low %v3817_v47, %v3824_v30  ;;  %v12244_v60 = vld [vmem:[#allocation130_spill] sm:$0xff]  ;;  %v12245_v30 = vld [vmem:[#allocation139_spill] sm:$0xff] }
 0x364   :  { %v10219_v3 = vpop.permute.xlu1 %5452  ;;  %5638 = vperm.xlu1 %7689, %v5053_v2   ;;  %v10221_v43 = vpop.permute.xlu0 %5485 }
 0x365   :  { %12235 = vst [vmem:[#allocation114_spill] sm:$0xff] %v10219_v3  ;;  %12236 = vst [vmem:[#allocation123_spill] sm:$0xff] %v10221_v43  ;;  %5671 = vperm.xlu0 %7688, %v5064_v9   ;;  %v3691_v9 = vrot.slane %v12241_v52, %v9176_v24  ;;  %v3845_v43 = vrot.slane %v12242_v58, %v9176_v24  ;;  %v3726_v52 = vrot.slane %v12244_v60, %v9179_v15 }
 0x366   :  { %v3880_v58 = vrot.slane %v12245_v30, %v9179_v15 }
 0x367   :  { %v5059_v48 = vcombine.low %v3691_v9, %v3698_v50  ;;  %v5070_v47 = vcombine.low %v3845_v43, %v3852_v41  ;;  %v12247_v50 = vld [vmem:[#allocation132_spill] sm:$0xff]  ;;  %v4237_v41 = vrot.slane %v9285_v14, %v9176_v24 }
 0x368   :  { %v10231_v45 = vpop.permute.xlu1 %5458  ;;  %5644 = vperm.xlu1 %7689, %v5055_v5   ;;  %v10233_v2 = vpop.permute.xlu0 %5491 }
 0x369   :  { %12239 = vst [vmem:[#allocation116_spill] sm:$0xff] %v10231_v45  ;;  %12240 = vst [vmem:[#allocation125_spill] sm:$0xff] %v10233_v2  ;;  %5677 = vperm.xlu0 %7688, %v5066_v31   ;;  %v3719_v31 = vrot.slane %v12244_v60, %v9176_v24  ;;  %v3873_v2 = vrot.slane %v12245_v30, %v9176_v24  ;;  %v3754_v60 = vrot.slane %v12247_v50, %v9179_v15 }
 0x36a   :  { %v4244_v30 = vrot.slane %v9285_v14, %v9179_v15 }
 0x36b   :  { %v5061_v9 = vcombine.low %v3719_v31, %v3726_v52  ;;  %v5072_v43 = vcombine.low %v3873_v2, %v3880_v58  ;;  %v12250_v52 = vld [vmem:[#allocation134_spill] sm:$0xff]  ;;  %v4013_v2 = vrot.slane %v9189_v57, %v9176_v24  ;;  %v4020_v58 = vrot.slane %v9189_v57, %v9179_v15 }
 0x36c   :  { %v10243_v3 = vpop.permute.xlu1 %5464  ;;  %5650 = vperm.xlu1 %7689, %v5057_v13   ;;  %v10245_v5 = vpop.permute.xlu0 %5497  ;;  %v5098_v14 = vcombine.low %v4237_v41, %v4244_v30  ;;  %v4034_v57 = vrot.slane %v9203_v23, %v9179_v15 }
 0x36d   :  { %12243 = vst [vmem:[#allocation118_spill] sm:$0xff] %v10245_v5  ;;  %5683 = vperm.xlu0 %7688, %v5068_v12   ;;  %v3747_v12 = vrot.slane %v12247_v50, %v9176_v24  ;;  %v3782_v50 = vrot.slane %v12250_v52, %v9179_v15 }
 0x36f   :  { %v5063_v31 = vcombine.low %v3747_v12, %v3754_v60  ;;  %v12252_v60 = vld [vmem:[#allocation136_spill] sm:$0xff] }
 0x370   :  { %v10255_v45 = vpop.permute.xlu1 %5470  ;;  %5656 = vperm.xlu1 %7689, %v5059_v48   ;;  %v10257_v13 = vpop.permute.xlu0 %5503 }
 0x371   :  { %12246 = vst [vmem:[#allocation127_spill] sm:$0xff] %v10257_v13  ;;  %5689 = vperm.xlu0 %7688, %v5070_v47   ;;  %v3775_v47 = vrot.slane %v12250_v52, %v9176_v24  ;;  %v3810_v52 = vrot.slane %v12252_v60, %v9179_v15 }
 0x373   :  { %v5065_v12 = vcombine.low %v3775_v47, %v3782_v50  ;;  %v12254_v47 = vld [vmem:[#allocation138_spill] sm:$0xff] }
 0x374   :  { %v10267_v5 = vpop.permute.xlu1 %5476  ;;  %5662 = vperm.xlu1 %7689, %v5061_v9   ;;  %v10269_v48 = vpop.permute.xlu0 %5509  ;;  %v3831_v50 = vrot.slane %v12254_v47, %v9176_v24 }
 0x375   :  { %12248 = vst [vmem:[#allocation120_spill] sm:$0xff] %v10267_v5  ;;  %12249 = vst [vmem:[#allocation129_spill] sm:$0xff] %v10269_v48  ;;  %5695 = vperm.xlu0 %7688, %v5072_v43   ;;  %v3803_v43 = vrot.slane %v12252_v60, %v9176_v24  ;;  %v5082_v48 = vcombine.low %v4013_v2, %v4020_v58  ;;  %v4027_v5 = vrot.slane %v9203_v23, %v9176_v24 }
 0x376   :  { %v4671_v58 = vrot.slane %v9479_v28, %v9176_v24  ;;  %v4678_v23 = vrot.slane %v9479_v28, %v9179_v15 }
 0x377   :  { %v5083_v2 = vcombine.low %v4027_v5, %v4034_v57  ;;  %v4041_v5 = vrot.slane %v9201_v16, %v9176_v24  ;;  %v4048_v57 = vrot.slane %v9201_v16, %v9179_v15  ;;  %v4454_v16 = vrot.slane %v9383_v54, %v9179_v15 }
 0x378   :  { %v10279_v13 = vpop.permute.xlu1 %5482  ;;  %5668 = vperm.xlu1 %7689, %v5063_v31   ;;  %v10281_v9 = vpop.permute.xlu0 %5515  ;;  %v5067_v31 = vcombine.low %v3803_v43, %v3810_v52  ;;  %v12256_v43 = vld [vmem:[#allocation140_spill] sm:$0xff]  ;;  %v5129_v28 = vcombine.low %v4671_v58, %v4678_v23 }
 0x379   :  { %12251 = vst [vmem:[#allocation122_spill] sm:$0xff] %v10281_v9  ;;  %5773 = vperm.xlu0 %7688, %v5098_v14   ;;  %v3838_v14 = vrot.slane %v12254_v47, %v9179_v15  ;;  %v3859_v52 = vrot.slane %v12256_v43, %v9176_v24  ;;  %v3866_v47 = vrot.slane %v12256_v43, %v9179_v15 }
 0x37a   :  { %v5084_v43 = vcombine.low %v4041_v5, %v4048_v57  ;;  %v4699_v57 = vrot.slane %v9491_v21, %v9176_v24  ;;  %v4251_v9 = vrot.slane %v9299_v62, %v9176_v24 }
 0x37c   :  { %v10291_v41 = vpop.permute.xlu1 %5488  ;;  %5674 = vperm.xlu1 %7689, %v5065_v12   ;;  %v10293_v30 = vpop.permute.xlu0 %5521 }
 0x37d   :  { %12253 = vst [vmem:[#allocation131_spill] sm:$0xff] %v10293_v30  ;;  %5725 = vperm.xlu0 %7688, %v5082_v48   ;;  %v5069_v48 = vcombine.low %v3831_v50, %v3838_v14  ;;  %v5071_v50 = vcombine.low %v3859_v52, %v3866_v47  ;;  %v4223_v14 = vrot.slane %v9287_v56, %v9176_v24 }
 0x380   :  { %v10303_v60 = vpop.permute.xlu1 %5494  ;;  %5680 = vperm.xlu1 %7689, %v5067_v31   ;;  %v10305_v12 = vpop.permute.xlu0 %5527 }
 0x381   :  { %12255 = vst [vmem:[#allocation124_spill] sm:$0xff] %v10305_v12  ;;  %5728 = vperm.xlu0 %7688, %v5083_v2   ;;  %v4230_v2 = vrot.slane %v9287_v56, %v9179_v15  ;;  %v4447_v12 = vrot.slane %v9383_v54, %v9176_v24  ;;  %v4706_v54 = vrot.slane %v9491_v21, %v9179_v15 }
 0x383   :  { %v5097_v56 = vcombine.low %v4223_v14, %v4230_v2  ;;  %v5113_v5 = vcombine.low %v4447_v12, %v4454_v16  ;;  %v4258_v14 = vrot.slane %v9299_v62, %v9179_v15  ;;  %v4293_v12 = vrot.slane %v9309_v29, %v9176_v24 }
 0x384   :  { %v10315_v30 = vpop.permute.xlu1 %5500  ;;  %5686 = vperm.xlu1 %7689, %v5069_v48   ;;  %v10317_v31 = vpop.permute.xlu0 %5533  ;;  %v12258_v48 = vld [vmem:[#allocation150_spill] sm:$0xff]  ;;  %v4300_v2 = vrot.slane %v9309_v29, %v9179_v15  ;;  %v5131_v21 = vcombine.low %v4699_v57, %v4706_v54  ;;  %v4720_v29 = vrot.slane %v9489_v20, %v9179_v15 }
 0x385   :  { %5866 = vperm.xlu0 %7688, %v5129_v28   ;;  %v3999_v52 = vrot.slane %v12258_v48, %v9176_v24  ;;  %v4006_v47 = vrot.slane %v12258_v48, %v9179_v15  ;;  %v5099_v62 = vcombine.low %v4251_v9, %v4258_v14  ;;  %v4307_v9 = vrot.slane %v9323_v10, %v9176_v24 }
 0x386   :  { %v4314_v14 = vrot.slane %v9323_v10, %v9179_v15  ;;  %v4734_v10 = vrot.slane %v9503_v34, %v9179_v15 }
 0x388   :  { %v10327_v58 = vpop.permute.xlu1 %5506  ;;  %5692 = vperm.xlu1 %7689, %v5071_v50   ;;  %v10329_v23 = vpop.permute.xlu0 %5539 }
 0x389   :  { %12257 = vst [vmem:[#allocation133_spill] sm:$0xff] %v10327_v58  ;;  %5731 = vperm.xlu0 %7688, %v5084_v43   ;;  %v5081_v43 = vcombine.low %v3999_v52, %v4006_v47  ;;  %v4265_v52 = vrot.slane %v9297_v26, %v9176_v24  ;;  %v4272_v47 = vrot.slane %v9297_v26, %v9179_v15 }
 0x38a   :  { %v4692_v26 = vrot.slane %v9477_v49, %v9179_v15 }
 0x38c   :  { %v10339_v28 = vpop.permute.xlu1 %5512  ;;  %5770 = vperm.xlu1 %7689, %v5097_v56   ;;  %v10341_v50 = vpop.permute.xlu0 %5545  ;;  %v5102_v56 = vcombine.low %v4293_v12, %v4300_v2 }
 0x38d   :  { %12259 = vst [vmem:[#allocation126_spill] sm:$0xff] %v10339_v28  ;;  %12260 = vst [vmem:[#allocation135_spill] sm:$0xff] %v10341_v50  ;;  %5818 = vperm.xlu0 %7688, %v5113_v5   ;;  %v4713_v5 = vrot.slane %v9489_v20, %v9176_v24  ;;  %v4370_v28 = vrot.slane %v9347_v27, %v9179_v15 }
 0x38f   :  { %v5132_v20 = vcombine.low %v4713_v5, %v4720_v29 }
 0x390   :  { %v10351_v16 = vpop.permute.xlu1 %5518  ;;  %5722 = vperm.xlu1 %7689, %v5081_v43   ;;  %v10353_v48 = vpop.permute.xlu0 %5551  ;;  %v5100_v43 = vcombine.low %v4265_v52, %v4272_v47  ;;  %v4279_v52 = vrot.slane %v9311_v4, %v9176_v24  ;;  %v4286_v47 = vrot.slane %v9311_v4, %v9179_v15  ;;  %v4468_v4 = vrot.slane %v9381_v53, %v9179_v15 }
 0x391   :  { %12261 = vst [vmem:[#allocation128_spill] sm:$0xff] %v10351_v16  ;;  %12262 = vst [vmem:[#allocation137_spill] sm:$0xff] %v10353_v48  ;;  %5872 = vperm.xlu0 %7688, %v5131_v21   ;;  %v4685_v21 = vrot.slane %v9477_v49, %v9176_v24  ;;  %v12275_v16 = vld [vmem:[#allocation151_spill] sm:$0xff] }
 0x393   :  { %v5130_v49 = vcombine.low %v4685_v21, %v4692_v26  ;;  %v4321_v21 = vrot.slane %v9321_v6, %v9176_v24  ;;  %v4328_v26 = vrot.slane %v9321_v6, %v9179_v15  ;;  %v4748_v6 = vrot.slane %v9501_v40, %v9179_v15 }
 0x394   :  { %v10363_v57 = vpop.permute.xlu1 %5524  ;;  %5776 = vperm.xlu1 %7689, %v5099_v62   ;;  %v10365_v54 = vpop.permute.xlu0 %5557  ;;  %v5103_v62 = vcombine.low %v4307_v9, %v4314_v14 }
 0x395   :  { %12263 = vst [vmem:[#allocation130_spill] sm:$0xff] %v10363_v57  ;;  %12264 = vst [vmem:[#allocation139_spill] sm:$0xff] %v10365_v54  ;;  %5785 = vperm.xlu0 %7688, %v5102_v56   ;;  %v4727_v56 = vrot.slane %v9503_v34, %v9176_v24 }
 0x397   :  { %v5133_v34 = vcombine.low %v4727_v56, %v4734_v10 }
 0x398   :  { %v10375_v12 = vpop.permute.xlu1 %5530  ;;  %5779 = vperm.xlu1 %7689, %v5100_v43   ;;  %v10377_v2 = vpop.permute.xlu0 %5563  ;;  %v5101_v43 = vcombine.low %v4279_v52, %v4286_v47  ;;  %v4055_v52 = vrot.slane %v9215_v0, %v9176_v24  ;;  %v4062_v47 = vrot.slane %v9215_v0, %v9179_v15  ;;  %v4482_v0 = vrot.slane %v9395_v63, %v9179_v15 }
 0x399   :  { %12265 = vst [vmem:[#allocation132_spill] sm:$0xff] %v10377_v2  ;;  %5875 = vperm.xlu0 %7688, %v5132_v20   ;;  %v4461_v20 = vrot.slane %v9381_v53, %v9176_v24 }
 0x39b   :  { %v5114_v53 = vcombine.low %v4461_v20, %v4468_v4  ;;  %v4335_v20 = vrot.slane %v9335_v18, %v9176_v24  ;;  %v4342_v4 = vrot.slane %v9335_v18, %v9179_v15  ;;  %v4762_v18 = vrot.slane %v9515_v55, %v9179_v15 }
 0x39c   :  { %v10387_v5 = vpop.permute.xlu1 %5536  ;;  %5869 = vperm.xlu1 %7689, %v5130_v49   ;;  %v10389_v29 = vpop.permute.xlu0 %5569  ;;  %v5104_v49 = vcombine.low %v4321_v21, %v4328_v26 }
 0x39d   :  { %12266 = vst [vmem:[#allocation134_spill] sm:$0xff] %v10389_v29  ;;  %5788 = vperm.xlu0 %7688, %v5103_v62   ;;  %v4741_v62 = vrot.slane %v9501_v40, %v9176_v24  ;;  %v4104_v29 = vrot.slane %v12275_v16, %v9179_v15 }
 0x39f   :  { %v5134_v40 = vcombine.low %v4741_v62, %v4748_v6 }
 0x3a0   :  { %v10399_v9 = vpop.permute.xlu1 %5542  ;;  %5782 = vperm.xlu1 %7689, %v5101_v43   ;;  %v10401_v14 = vpop.permute.xlu0 %5575  ;;  %v5085_v43 = vcombine.low %v4055_v52, %v4062_v47  ;;  %v4069_v52 = vrot.slane %v9213_v17, %v9176_v24  ;;  %v4076_v47 = vrot.slane %v9213_v17, %v9179_v15  ;;  %v4496_v17 = vrot.slane %v9393_v59, %v9179_v15 }
 0x3a1   :  { %12267 = vst [vmem:[#allocation136_spill] sm:$0xff] %v10401_v14  ;;  %5878 = vperm.xlu0 %7688, %v5133_v34   ;;  %v4475_v34 = vrot.slane %v9395_v63, %v9176_v24  ;;  %v12274_v14 = vld [vmem:[#allocation145_spill] sm:$0xff] }
 0x3a3   :  { %v5115_v63 = vcombine.low %v4475_v34, %v4482_v0  ;;  %v4111_v34 = vrot.slane %v9239_v11, %v9176_v24  ;;  %v4118_v0 = vrot.slane %v9239_v11, %v9179_v15  ;;  %v4531_v11 = vrot.slane %v9419_v19, %v9176_v24 }
 0x3a4   :  { %v10411_v56 = vpop.permute.xlu1 %5548  ;;  %5821 = vperm.xlu1 %7689, %v5114_v53   ;;  %v10413_v10 = vpop.permute.xlu0 %5581  ;;  %v5105_v53 = vcombine.low %v4335_v20, %v4342_v4 }
 0x3a5   :  { %5791 = vperm.xlu0 %7688, %v5104_v49   ;;  %v4755_v49 = vrot.slane %v9515_v55, %v9176_v24  ;;  %v5089_v57 = vcombine.low %v4111_v34, %v4118_v0  ;;  %v12273_v34 = vld [vmem:[#allocation141_spill] sm:$0xff] }
 0x3a6   :  { %v3901_v0 = vrot.slane %v12273_v34, %v9176_v24 }
 0x3a7   :  { %v5135_v55 = vcombine.low %v4755_v49, %v4762_v18  ;;  %v4538_v49 = vrot.slane %v9419_v19, %v9179_v15  ;;  %v3908_v19 = vrot.slane %v12273_v34, %v9179_v15 }
 0x3a8   :  { %v10423_v21 = vpop.permute.xlu1 %5554  ;;  %5734 = vperm.xlu1 %7689, %v5085_v43   ;;  %v10425_v26 = vpop.permute.xlu0 %5587  ;;  %v5086_v43 = vcombine.low %v4069_v52, %v4076_v47  ;;  %v4083_v52 = vrot.slane %v9227_v61, %v9176_v24  ;;  %v4090_v47 = vrot.slane %v9227_v61, %v9179_v15  ;;  %v4503_v61 = vrot.slane %v9407_v8, %v9176_v24 }
 0x3a9   :  { %12268 = vst [vmem:[#allocation138_spill] sm:$0xff] %v10423_v21  ;;  %5881 = vperm.xlu0 %7688, %v5134_v40   ;;  %v4489_v40 = vrot.slane %v9393_v59, %v9176_v24  ;;  %v5074_v54 = vcombine.low %v3901_v0, %v3908_v19 }
 0x3ab   :  { %v5116_v59 = vcombine.low %v4489_v40, %v4496_v17  ;;  %v4510_v40 = vrot.slane %v9407_v8, %v9179_v15 }
 0x3ac   :  { %v10435_v62 = vpop.permute.xlu1 %5560  ;;  %5824 = vperm.xlu1 %7689, %v5115_v63   ;;  %v10437_v6 = vpop.permute.xlu0 %5593  ;;  %v12271_v63 = vlaneseq }
 0x3ad   :  { %12269 = vst [vmem:[#allocation140_spill] sm:$0xff] %v10435_v62  ;;  %5794 = vperm.xlu0 %7688, %v5105_v53   ;;  %v4363_v62 = vrot.slane %v9347_v27, %v9176_v24 }
 0x3ae   :  { %v10456_v53 = vand.u32 127, %v12271_v63  ;;  %v5119_v63 = vcombine.low %v4531_v11, %v4538_v49  ;;  %v12276_v49 = vld [vmem:[#allocation142_spill] sm:$0xff] }
 0x3af   :  { %v3887_v34 = vrot.slane %v12276_v49, %v9176_v24  ;;  %v5107_v48 = vcombine.low %v4363_v62, %v4370_v28  ;;  %v4139_v28 = vrot.slane %v9251_v38, %v9176_v24 }
 0x3b0   :  { %v10447_v20 = vpop.permute.xlu1 %5566  ;;  %5737 = vperm.xlu1 %7689, %v5086_v43   ;;  %v10449_v4 = vpop.permute.xlu0 %5599  ;;  %v5919_v17 = vadd.s32 4294967288, %v10456_v53  ;;  %v5940_v11 = vadd.s32 4294967264, %v10456_v53  ;;  %v5947_v27 = vadd.s32 4294967256, %v10456_v53  ;;  %v5961_v62 = vadd.s32 4294967240, %v10456_v53 }
 0x3b1   :  { %12270 = vst [vmem:[#allocation150_spill] sm:$0xff] %v10447_v20  ;;  %5884 = vperm.xlu0 %7688, %v5135_v55   ;;  %v5087_v55 = vcombine.low %v4083_v52, %v4090_v47  ;;  %v5933_v52 = vadd.s32 4294967272, %v10456_v53  ;;  %v5117_v20 = vcombine.low %v4503_v61, %v4510_v40  ;;  %v5975_v50 = vadd.s32 4294967224, %v10456_v53 }
 0x3b2   :  { %v10491_v2 = vsub.s32 %v5919_v17, %v12274_v14  ;;  %v10509_v19 = vsub.s32 %v5940_v11, %v12274_v14 }
 0x3b4   :  { %v10462_v18 = vpop.permute.xlu1 %5572  ;;  %5827 = vperm.xlu1 %7689, %v5116_v59   ;;  %v10464_v43 = vpop.permute.xlu0 %5605  ;;  %v5926_v59 = vadd.s32 4294967280, %v10456_v53  ;;  %v6663_v61 = vrot.slane %v10413_v10, %v10491_v2  ;;  %v5954_v10 = vadd.s32 4294967248, %v10456_v53 }
 0x3b5   :  { %12272 = vst [vmem:[#allocation164_spill] sm:$0xff] %v10462_v18  ;;  %5746 = vperm.xlu0 %7688, %v5089_v57   ;;  %v10478_v57 = vsub.s32 %v10456_v53, %v12274_v14  ;;  %v4097_v18 = vrot.slane %v12275_v16, %v9176_v24 }
 0x3b6   :  { %v10499_v16 = vsub.s32 %v5926_v59, %v12274_v14  ;;  %v10542_v21 = vsub.s32 %v5954_v10, %v12274_v14 }
 0x3b7   :  { %v5088_v0 = vcombine.low %v4097_v18, %v4104_v29  ;;  %v4783_v29 = vrot.slane %v9527_v39, %v9176_v24  ;;  %v4790_v18 = vrot.slane %v9527_v39, %v9179_v15  ;;  %v4146_v39 = vrot.slane %v9251_v38, %v9179_v15 }
 0x3b8   :  { %v5579_v47 = vpop.permute.xlu1 %5578  ;;  %5740 = vperm.xlu1 %7689, %v5087_v55   ;;  %v10481_v8 = vpop.permute.xlu0 %5611 }
 0x3b9   :  { %5836 = vperm.xlu0 %7688, %v5119_v63   ;;  %v6659_v55 = vrot.slane %v5579_v47, %v10478_v57  ;;  %v10502_v63 = vsub.s32 %v5933_v52, %v12274_v14  ;;  %v4517_v52 = vrot.slane %v9405_v1, %v9176_v24  ;;  %v4524_v47 = vrot.slane %v9405_v1, %v9179_v15 }
 0x3bb   :  { %v6673_v1 = vrot.slane %v10425_v26, %v10502_v63  ;;  %v5968_v26 = vadd.s32 4294967232, %v10456_v53 }
 0x3bc   :  { %v5585_v40 = vpop.permute.xlu1 %5584  ;;  %5830 = vperm.xlu1 %7689, %v5117_v20   ;;  %v10506_v17 = vpop.permute.xlu0 %5617  ;;  %v6664_v20 = vsel %vm5924_vm1, %v6663_v61, %v6659_v55 }
 0x3bd   :  { %v6668_v59 = vrot.slane %v5585_v40, %v10499_v16  ;;  %5701 = vperm.xlu0 %7688, %v5074_v54   ;;  %v3894_v54 = vrot.slane %v12276_v49, %v9179_v15  ;;  %v5118_v49 = vcombine.low %v4517_v52, %v4524_v47  ;;  %v5091_v47 = vcombine.low %v4139_v28, %v4146_v39  ;;  %v12277_v39 = vld [vmem:[#allocation143_spill] sm:$0xff] }
 0x3bf   :  { %v6669_v11 = vsel %vm5931_vm2, %v6668_v59, %v6664_v20  ;;  %v10537_v59 = vsub.s32 %v5947_v27, %v12274_v14  ;;  %v5137_v20 = vcombine.low %v4783_v29, %v4790_v18  ;;  %v5073_v38 = vcombine.low %v3887_v34, %v3894_v54 }
 0x3c0   :  { %v5591_v40 = vpop.permute.xlu1 %5590  ;;  %5743 = vperm.xlu1 %7689, %v5088_v0   ;;  %v10528_v55 = vpop.permute.xlu0 %5623  ;;  %v6674_v0 = vsel %vm5938_vm3, %v6673_v1, %v6669_v11  ;;  %v10551_v29 = vsub.s32 %v5961_v62, %v12274_v14  ;;  %v4349_v34 = vrot.slane %v9333_v35, %v9176_v24  ;;  %v4356_v18 = vrot.slane %v9333_v35, %v9179_v15 }
 0x3c1   :  { %v6678_v61 = vrot.slane %v5591_v40, %v10509_v19  ;;  %5800 = vperm.xlu0 %7688, %v5107_v48   ;;  %v6683_v48 = vrot.slane %v10437_v6, %v10537_v59  ;;  %v10559_v6 = vsub.s32 %v5968_v26, %v12274_v14  ;;  %v4559_v54 = vrot.slane %v9431_v33, %v9176_v24 }
 0x3c2   :  { %v4566_v1 = vrot.slane %v9431_v33, %v9179_v15  ;;  %v5982_v40 = vadd.s32 4294967216, %v10456_v53  ;;  %v3929_v62 = vrot.slane %v12277_v39, %v9176_v24  ;;  %v3936_v35 = vrot.slane %v12277_v39, %v9179_v15 }
 0x3c3   :  { %v6679_v58 = vsel %vm5945_vm4, %v6678_v61, %v6674_v0  ;;  %v5989_v61 = vadd.s32 4294967208, %v10456_v53  ;;  %v10578_v33 = vsub.s32 %v5975_v50, %v12274_v14  ;;  %v5996_v50 = vadd.s32 4294967200, %v10456_v53 }
 0x3c4   :  { %v5597_v52 = vpop.permute.xlu1 %5596  ;;  %5833 = vperm.xlu1 %7689, %v5118_v49   ;;  %v10548_v27 = vpop.permute.xlu0 %5629  ;;  %v6684_v11 = vsel %vm5952_vm5, %v6683_v48, %v6679_v58  ;;  %v6693_v58 = vrot.slane %v10449_v4, %v10551_v29  ;;  %v4769_v48 = vrot.slane %v9513_v22, %v9176_v24  ;;  %v5076_v39 = vcombine.low %v3929_v62, %v3936_v35 }
 0x3c5   :  { %v6688_v10 = vrot.slane %v5597_v52, %v10542_v21  ;;  %5890 = vperm.xlu0 %7688, %v5137_v20   ;;  %v5106_v20 = vcombine.low %v4349_v34, %v4356_v18  ;;  %v4776_v52 = vrot.slane %v9513_v22, %v9179_v15  ;;  %v6003_v34 = vadd.s32 4294967192, %v10456_v53 }
 0x3c6   :  { %v6703_v18 = vrot.slane %v10464_v43, %v10578_v33  ;;  %v6010_v35 = vadd.s32 4294967184, %v10456_v53 }
 0x3c7   :  { %v6689_v28 = vsel %vm5959_vm6, %v6688_v10, %v6684_v11  ;;  %v10587_v10 = vsub.s32 %v5982_v40, %v12274_v14  ;;  %v5136_v62 = vcombine.low %v4769_v48, %v4776_v52 }
 0x3c8   :  { %v5603_v49 = vpop.permute.xlu1 %5602  ;;  %5698 = vperm.xlu1 %7689, %v5073_v38   ;;  %v10575_v26 = vpop.permute.xlu0 %5635  ;;  %v6694_v4 = vsel %vm5966_vm7, %v6693_v58, %v6689_v28  ;;  %v5121_v38 = vcombine.low %v4559_v54, %v4566_v1  ;;  %v4125_v54 = vrot.slane %v9237_v37, %v9176_v24  ;;  %v4132_v1 = vrot.slane %v9237_v37, %v9179_v15 }
 0x3c9   :  { %v6698_v0 = vrot.slane %v5603_v49, %v10559_v6  ;;  %5752 = vperm.xlu0 %7688, %v5091_v47   ;;  %v10592_v47 = vsub.s32 %v5989_v61, %v12274_v14  ;;  %v4391_v61 = vrot.slane %v9359_v36, %v9176_v24  ;;  %v4398_v58 = vrot.slane %v9359_v36, %v9179_v15 }
 0x3ca   :  { %v10611_v49 = vsub.s32 %v5996_v50, %v12274_v14  ;;  %v4545_v50 = vrot.slane %v9417_v7, %v9176_v24 }
 0x3cb   :  { %v6699_v11 = vsel %vm5973_vm8, %v6698_v0, %v6694_v4  ;;  %v10615_v0 = vsub.s32 %v6003_v34, %v12274_v14  ;;  %v6713_v48 = vrot.slane %v10481_v8, %v10592_v47  ;;  %v5109_v34 = vcombine.low %v4391_v61, %v4398_v58 }
 0x3cc   :  { %v5609_v22 = vpop.permute.xlu1 %5608  ;;  %5797 = vperm.xlu1 %7689, %v5106_v20   ;;  %v10597_v28 = vpop.permute.xlu0 %5641  ;;  %v6704_v43 = vsel %vm5980_vm9, %v6703_v18, %v6699_v11  ;;  %v6017_v20 = vadd.s32 4294967176, %v10456_v53  ;;  %v4552_v11 = vrot.slane %v9417_v7, %v9179_v15  ;;  %v10628_v53 = vsub.s32 %v6010_v35, %v12274_v14 }
 0x3cd   :  { %v6708_v40 = vrot.slane %v5609_v22, %v10587_v10  ;;  %5842 = vperm.xlu0 %7688, %v5121_v38   ;;  %v5090_v38 = vcombine.low %v4125_v54, %v4132_v1  ;;  %v4811_v18 = vrot.slane %v9539_v25, %v9176_v24  ;;  %v4818_v22 = vrot.slane %v9539_v25, %v9179_v15  ;;  %v12278_v54 = vld [vmem:[#allocation144_spill] sm:$0xff] }
 0x3ce   :  { %v3915_v1 = vrot.slane %v12278_v54, %v9176_v24  ;;  %v6723_v7 = vrot.slane %v10506_v17, %v10615_v0  ;;  %v4167_v25 = vrot.slane %v9263_v44, %v9176_v24  ;;  %v5120_v58 = vcombine.low %v4545_v50, %v4552_v11 }
 0x3cf   :  { %v6709_v37 = vsel %vm5987_vm10, %v6708_v40, %v6704_v43  ;;  %v10639_v40 = vsub.s32 %v6017_v20, %v12274_v14  ;;  %v3922_v43 = vrot.slane %v12278_v54, %v9179_v15  ;;  %v5139_v20 = vcombine.low %v4811_v18, %v4818_v22 }
 0x3d0   :  { %v5615_v52 = vpop.permute.xlu1 %5614  ;;  %5887 = vperm.xlu1 %7689, %v5136_v62   ;;  %v10620_v4 = vpop.permute.xlu0 %5647  ;;  %v6714_v8 = vsel %vm5994_vm11, %v6713_v48, %v6709_v37  ;;  %v4174_v37 = vrot.slane %v9263_v44, %v9179_v15  ;;  %v6742_v50 = vrot.slane %v10548_v27, %v10491_v2  ;;  %v4377_v44 = vrot.slane %v9345_v32, %v9176_v24 }
 0x3d1   :  { %v6718_v36 = vrot.slane %v5615_v52, %v10611_v49  ;;  %5707 = vperm.xlu0 %7688, %v5076_v39   ;;  %v6733_v14 = vrot.slane %v10528_v55, %v10639_v40  ;;  %v5075_v11 = vcombine.low %v3915_v1, %v3922_v43  ;;  %v4587_v18 = vrot.slane %v9443_v46, %v9176_v24 }
 0x3d2   :  { %v4594_v22 = vrot.slane %v9443_v46, %v9179_v15  ;;  %v6752_v43 = vrot.slane %v10575_v26, %v10502_v63  ;;  %v12280_v46 = vld [vmem:[#allocation146_spill] sm:$0xff]  ;;  %v4153_v26 = vrot.slane %v9249_v42, %v9176_v24 }
 0x3d3   :  { %v6719_v39 = vsel %vm6001_vm12, %v6718_v36, %v6714_v8  ;;  %v4384_v8 = vrot.slane %v9345_v32, %v9179_v15  ;;  %v4797_v32 = vrot.slane %v9525_v51, %v9176_v24 }
 0x3d4   :  { %v5621_v62 = vpop.permute.xlu1 %5620  ;;  %5749 = vperm.xlu1 %7689, %v5090_v38   ;;  %v10643_v35 = vpop.permute.xlu0 %5653  ;;  %v6724_v17 = vsel %vm6008_vm13, %v6723_v7, %v6719_v39 }
 0x3d5   :  { %v6728_v61 = vrot.slane %v5621_v62, %v10628_v53  ;;  %5806 = vperm.xlu0 %7688, %v5109_v34   ;;  %v5093_v34 = vcombine.low %v4167_v25, %v4174_v37  ;;  %v5108_v7 = vcombine.low %v4377_v44, %v4384_v8  ;;  %v4804_v62 = vrot.slane %v9525_v51, %v9179_v15 }
 0x3d6   :  { %v3957_v25 = vrot.slane %v12280_v46, %v9176_v24 }
 0x3d7   :  { %v6729_v48 = vsel %vm6015_vm14, %v6728_v61, %v6724_v17  ;;  %v3964_v61 = vrot.slane %v12280_v46, %v9179_v15 }
 0x3d8   :  { %v5627_v52 = vpop.permute.xlu1 %5626  ;;  %5839 = vperm.xlu1 %7689, %v5120_v58   ;;  %v10656_v38 = vpop.permute.xlu0 %5659  ;;  %v10659_v36 = vsel %vm6022_vm15, %v6733_v14, %v6729_v48  ;;  %v5123_v58 = vcombine.low %v4587_v18, %v4594_v22  ;;  %v4160_v48 = vrot.slane %v9249_v42, %v9179_v15 }
 0x3d9   :  { %12279 = vst [vmem:[#allocation141_spill] sm:$0xff] %v10659_v36  ;;  %v6738_v55 = vrot.slane %v5627_v52, %v10478_v57  ;;  %5896 = vperm.xlu0 %7688, %v5139_v20   ;;  %v5138_v52 = vcombine.low %v4797_v32, %v4804_v62  ;;  %v6772_v32 = vrot.slane %v10620_v4, %v10551_v29  ;;  %v12284_v4 = vld [vmem:[#allocation147_spill] sm:$0xff] }
 0x3db   :  { %v6743_v39 = vsel %vm5924_vm1, %v6742_v50, %v6738_v55  ;;  %v6762_v50 = vrot.slane %v10597_v28, %v10537_v59  ;;  %v5078_v55 = vcombine.low %v3957_v25, %v3964_v61  ;;  %v12282_v28 = vld [vmem:[#allocation158_spill] sm:$0xff] }
 0x3dc   :  { %v5633_v27 = vpop.permute.xlu1 %5632  ;;  %5704 = vperm.xlu1 %7689, %v5075_v11   ;;  %v10673_v54 = vpop.permute.xlu0 %5665  ;;  %v12281_v11 = vld [vmem:[#allocation157_spill] sm:$0xff] }
 0x3dd   :  { %v6747_v1 = vrot.slane %v5633_v27, %v10499_v16  ;;  %5758 = vperm.xlu0 %7688, %v5093_v34   ;;  %v4419_v44 = vrot.slane %v12281_v11, %v9176_v24  ;;  %v4426_v8 = vrot.slane %v12281_v11, %v9179_v15  ;;  %v5092_v27 = vcombine.low %v4153_v26, %v4160_v48 }
 0x3de   :  { %v3950_v26 = vrot.slane %v12284_v4, %v9179_v15 }
 0x3df   :  { %v6748_v14 = vsel %vm5931_vm2, %v6747_v1, %v6743_v39  ;;  %v4573_v1 = vrot.slane %v12282_v28, %v9176_v24  ;;  %v5111_v62 = vcombine.low %v4419_v44, %v4426_v8 }
 0x3e0   :  { %v5639_v17 = vpop.permute.xlu1 %5638  ;;  %v6753_v37 = vsel %vm5938_vm3, %v6752_v43, %v6748_v14  ;;  %5803 = vperm.xlu1 %7689, %v5108_v7   ;;  %v10688_v20 = vpop.permute.xlu0 %5671  ;;  %v4580_v7 = vrot.slane %v12282_v28, %v9179_v15  ;;  %v12283_v43 = vld [vmem:[#allocation7_spill] sm:$0xff] }
 0x3e1   :  { %v6757_v51 = vrot.slane %v5639_v17, %v10509_v19  ;;  %5848 = vperm.xlu0 %7688, %v5123_v58   ;;  %v4839_v46 = vrot.slane %v12283_v43, %v9176_v24  ;;  %v4846_v25 = vrot.slane %v12283_v43, %v9179_v15 }
 0x3e2   :  { %v5122_v48 = vcombine.low %v4573_v1, %v4580_v7  ;;  %v6792_v7 = vrot.slane %v10656_v38, %v10592_v47  ;;  %v12288_v38 = vld [vmem:[#allocation6_spill] sm:$0xff] }
 0x3e3   :  { %v6758_v34 = vsel %vm5945_vm4, %v6757_v51, %v6753_v37  ;;  %v3943_v51 = vrot.slane %v12284_v4, %v9176_v24  ;;  %v5141_v44 = vcombine.low %v4839_v46, %v4846_v25 }
 0x3e4   :  { %v5645_v18 = vpop.permute.xlu1 %5644  ;;  %v6763_v22 = vsel %vm5952_vm5, %v6762_v50, %v6758_v34  ;;  %5893 = vperm.xlu1 %7689, %v5138_v52   ;;  %v10703_v39 = vpop.permute.xlu0 %5677  ;;  %v6782_v52 = vrot.slane %v10643_v35, %v10578_v33  ;;  %v12285_v50 = vld [vmem:[#allocation154_spill] sm:$0xff]  ;;  %v12286_v35 = vld [vmem:[#allocation155_spill] sm:$0xff] }
 0x3e5   :  { %v6767_v42 = vrot.slane %v5645_v18, %v10542_v21  ;;  %5713 = vperm.xlu0 %7688, %v5078_v55   ;;  %v4195_v55 = vrot.slane %v12285_v50, %v9176_v24  ;;  %v4202_v11 = vrot.slane %v12285_v50, %v9179_v15  ;;  %v4405_v28 = vrot.slane %v12286_v35, %v9176_v24 }
 0x3e6   :  { %v4412_v1 = vrot.slane %v12286_v35, %v9179_v15  ;;  %v12290_v35 = vld [vmem:[#allocation152_spill] sm:$0xff] }
 0x3e7   :  { %v6768_v61 = vsel %vm5959_vm6, %v6767_v42, %v6763_v22 }
 0x3e8   :  { %v5651_v58 = vpop.permute.xlu1 %5650  ;;  %v6773_v14 = vsel %vm5966_vm7, %v6772_v32, %v6768_v61  ;;  %5755 = vperm.xlu1 %7689, %v5092_v27   ;;  %v10718_v17 = vpop.permute.xlu0 %5683  ;;  %v5077_v27 = vcombine.low %v3943_v51, %v3950_v26  ;;  %v5095_v32 = vcombine.low %v4195_v55, %v4202_v11  ;;  %v5110_v4 = vcombine.low %v4405_v28, %v4412_v1 }
 0x3e9   :  { %v6777_v37 = vrot.slane %v5651_v58, %v10559_v6  ;;  %5812 = vperm.xlu0 %7688, %v5111_v62   ;;  %v12287_v62 = vld [vmem:[#allocation161_spill] sm:$0xff]  ;;  %v4825_v51 = vrot.slane %v12288_v38, %v9176_v24  ;;  %v4832_v26 = vrot.slane %v12288_v38, %v9179_v15  ;;  %v4181_v28 = vrot.slane %v12290_v35, %v9176_v24  ;;  %v7693_v38 = vld [vmem:[%s11669_s1 + $0x30] sm:$0xff]  }
 0x3ea   :  { %v4615_v43 = vrot.slane %v12287_v62, %v9176_v24  ;;  %v4622_v46 = vrot.slane %v12287_v62, %v9179_v15  ;;  %v4188_v1 = vrot.slane %v12290_v35, %v9179_v15  ;;  %v7695_v35 = vld [vmem:[%s11669_s1 + $0x28] sm:$0xff]  }
 0x3eb   :  { %v6778_v8 = vsel %vm5973_vm8, %v6777_v37, %v6773_v14 }
 0x3ec   :  { %v5657_v34 = vpop.permute.xlu1 %5656  ;;  %v6783_v18 = vsel %vm5980_vm9, %v6782_v52, %v6778_v8  ;;  %5845 = vperm.xlu1 %7689, %v5122_v48   ;;  %v10733_v22 = vpop.permute.xlu0 %5689  ;;  %v6802_v48 = vrot.slane %v10673_v54, %v10615_v0  ;;  %v12289_v52 = vld [vmem:[#allocation148_spill] sm:$0xff]  ;;  %v5125_v11 = vcombine.low %v4615_v43, %v4622_v46 }
 0x3ed   :  { %v6787_v42 = vrot.slane %v5657_v34, %v10587_v10  ;;  %5902 = vperm.xlu0 %7688, %v5141_v44   ;;  %v3985_v50 = vrot.slane %v12289_v52, %v9176_v24  ;;  %v3992_v55 = vrot.slane %v12289_v52, %v9179_v15  ;;  %v7690_v8 = vld [vmem:[%s11669_s1 + $0x78] sm:$0xff]   ;;  %v12293_v52 = vld [vmem:[#allocation159_spill] sm:$0xff] }
 0x3ee   :  { %v7691_v54 = vld [vmem:[%s11669_s1 + $0x38] sm:$0xff]   ;;  %7640 = vmatprep.subr.bf16.mxu0 %v7690_v8 }
 0x3ef   :  { %v6788_v25 = vsel %vm5987_vm10, %v6787_v42, %v6783_v18  ;;  %7641 = vmatpush3.bf16.msra.mxu0 %v7691_v54  ;;  %v5080_v62 = vcombine.low %v3985_v50, %v3992_v55  ;;  %v12291_v43 = vld [vmem:[#allocation160_spill] sm:$0xff]  ;;  %v4601_v50 = vrot.slane %v12293_v52, %v9176_v24  ;;  %v4608_v55 = vrot.slane %v12293_v52, %v9179_v15 }
 0x3f0   :  { %v5663_v61 = vpop.permute.xlu1 %5662  ;;  %v6793_v58 = vsel %vm5994_vm11, %v6792_v7, %v6788_v25  ;;  %5710 = vperm.xlu1 %7689, %v5077_v27   ;;  %v10748_v14 = vpop.permute.xlu0 %5695  ;;  %v5140_v7 = vcombine.low %v4825_v51, %v4832_v26  ;;  %v4629_v46 = vrot.slane %v12291_v43, %v9176_v24  ;;  %v4636_v25 = vrot.slane %v12291_v43, %v9179_v15 }
 0x3f1   :  { %v6797_v37 = vrot.slane %v5663_v61, %v10611_v49  ;;  %5764 = vperm.xlu0 %7688, %v5095_v32   ;;  %v6812_v32 = vrot.slane %v10688_v20, %v10639_v40  ;;  %v6821_v51 = vrot.slane %v10703_v39, %v10491_v2 }
 0x3f3   :  { %v6798_v44 = vsel %vm6001_vm12, %v6797_v37, %v6793_v58  ;;  %v7692_v58 = vld [vmem:[%s11669_s1 + $0x70] sm:$0xff]  }
 0x3f4   :  { %v5669_v34 = vpop.permute.xlu1 %5668  ;;  %v6803_v18 = vsel %vm6008_vm13, %v6802_v48, %v6798_v44  ;;  %5809 = vperm.xlu1 %7689, %v5110_v4   ;;  %v10766_v42 = vpop.permute.xlu0 %5773  ;;  %7642 = vmatprep.subr.bf16.mxu0 %v7692_v58  ;;  %v5094_v48 = vcombine.low %v4181_v28, %v4188_v1  ;;  %v12294_v44 = vld [vmem:[#allocation163_spill] sm:$0xff]  ;;  %v7696_v28 = vld [vmem:[%s11669_s1 + $0xf8] sm:$0xff]  }
 0x3f5   :  { %v6807_v27 = vrot.slane %v5669_v34, %v10628_v53  ;;  %5854 = vperm.xlu0 %7688, %v5125_v11   ;;  %7643 = vmatpush3.bf16.msra.mxu0 %v7693_v38  ;;  %v5126_v11 = vcombine.low %v4629_v46, %v4636_v25  ;;  %v4643_v8 = vrot.slane %v12294_v44, %v9176_v24  ;;  %v12295_v1 = vld [vmem:[#allocation149_spill] sm:$0xff] }
 0x3f6   :  { %v4650_v34 = vrot.slane %v12294_v44, %v9179_v15  ;;  %v3978_v43 = vrot.slane %v12295_v1, %v9179_v15  ;;  %v5124_v46 = vcombine.low %v4601_v50, %v4608_v55  ;;  %v6831_v25 = vrot.slane %v10718_v17, %v10502_v63  ;;  %7662 = vmatprep.subr.bf16.mxu1 %v7696_v28  ;;  %v7699_v50 = vld [vmem:[%s11669_s1 + $0x20] sm:$0xff]   ;;  %v7700_v55 = vld [vmem:[%s11669_s1 + $0xf0] sm:$0xff]  }
 0x3f7   :  { %v6808_v61 = vsel %vm6015_vm14, %v6807_v27, %v6803_v18  ;;  %v7694_v18 = vld [vmem:[%s11669_s1 + $0x68] sm:$0xff]  }
 0x3f8   :  { %v10787_v37 = vsel %vm6022_vm15, %v6812_v32, %v6808_v61  ;;  %v5675_v4 = vpop.permute.xlu1 %5674  ;;  %5899 = vperm.xlu1 %7689, %v5140_v7   ;;  %v10789_v20 = vpop.permute.xlu0 %5725  ;;  %v3971_v7 = vrot.slane %v12295_v1, %v9176_v24  ;;  %7644 = vmatprep.subr.bf16.mxu0 %v7694_v18  ;;  %v12296_v61 = vld [vmem:[#allocation162_spill] sm:$0xff]  ;;  %v5127_v38 = vcombine.low %v4643_v8, %v4650_v34  ;;  %v7702_v1 = vld [vmem:[%s11669_s1 + $0x58] sm:$0xff]  }
 0x3f9   :  { %12292 = vst [vmem:[#allocation145_spill] sm:$0xff] %v10787_v37  ;;  %v6817_v26 = vrot.slane %v5675_v4, %v10478_v57  ;;  %5719 = vperm.xlu0 %7688, %v5080_v62   ;;  %v7697_v62 = vld [vmem:[%s11669_s1 + $0xb8] sm:$0xff]   ;;  %7645 = vmatpush3.bf16.msra.mxu0 %v7695_v35  ;;  %v4657_v58 = vrot.slane %v12296_v61, %v9176_v24 }
 0x3fa   :  { %v4664_v4 = vrot.slane %v12296_v61, %v9179_v15  ;;  %7663 = vmatpush3.bf16.msra.mxu1 %v7697_v62  ;;  %v5079_v18 = vcombine.low %v3971_v7, %v3978_v43  ;;  %v7703_v7 = vld [vmem:[%s11669_s1 + $0x18] sm:$0xff]   ;;  %v7705_v61 = vld [vmem:[%s11669_s1 + $0xa8] sm:$0xff]  }
 0x3fb   :  { %v6822_v39 = vsel %vm5924_vm1, %v6821_v51, %v6817_v26  ;;  %v7698_v26 = vld [vmem:[%s11669_s1 + $0x60] sm:$0xff]   ;;  %7664 = vmatprep.subr.bf16.mxu1 %v7700_v55 }
 0x3fc   :  { %v5681_v54 = vpop.permute.xlu1 %5680  ;;  %5761 = vperm.xlu1 %7689, %v5094_v48   ;;  %v10809_v27 = vpop.permute.xlu0 %5728  ;;  %7646 = vmatprep.subr.bf16.mxu0 %v7698_v26  ;;  %v5128_v35 = vcombine.low %v4657_v58, %v4664_v4  ;;  %v12298_v58 = vld [vmem:[#allocation11_spill] sm:$0xff] }
 0x3fd   :  { %v6826_v32 = vrot.slane %v5681_v54, %v10499_v16  ;;  %5857 = vperm.xlu0 %7688, %v5126_v11   ;;  %v12297_v11 = vld [vmem:[#allocation156_spill] sm:$0xff]  ;;  %v6841_v54 = vrot.slane %v10733_v22, %v10537_v59  ;;  %7647 = vmatpush3.bf16.msra.mxu0 %v7699_v50  ;;  %v7704_v22 = vld [vmem:[%s11669_s1 + $0xe8] sm:$0xff]   ;;  %v4853_v4 = vrot.slane %v12298_v58, %v9176_v24 }
 0x3fe   :  { %v4433_v44 = vrot.slane %v12297_v11, %v9176_v24  ;;  %v4440_v8 = vrot.slane %v12297_v11, %v9179_v15  ;;  %7648 = vmatprep.subr.bf16.mxu0 %v7702_v1  ;;  %v7708_v11 = vld [vmem:[%s11669_s1 + $0xe0] sm:$0xff]   ;;  %v7710_v1 = vld [vmem:[%s11669_s1 + $0x48] sm:$0xff]  }
 0x3ff   :  { %v6827_v51 = vsel %vm5931_vm2, %v6826_v32, %v6822_v39  ;;  %v7701_v39 = vld [vmem:[%s11669_s1 + $0xb0] sm:$0xff]  }
 0x400   :  { %v5687_v48 = vpop.permute.xlu1 %5686  ;;  %v6832_v52 = vsel %vm5938_vm3, %v6831_v25, %v6827_v51  ;;  %5851 = vperm.xlu1 %7689, %v5124_v46   ;;  %v10836_v17 = vpop.permute.xlu0 %5866  ;;  %7665 = vmatpush3.bf16.msra.mxu1 %v7701_v39  ;;  %v5112_v43 = vcombine.low %v4433_v44, %v4440_v8  ;;  %v6851_v51 = vrot.slane %v10748_v14, %v10551_v29  ;;  %v7707_v14 = vld [vmem:[%s11669_s1 + $0x10] sm:$0xff]   ;;  %v12299_v44 = vld [vmem:[#allocation153_spill] sm:$0xff] }
 0x401   :  { %v6836_v34 = vrot.slane %v5687_v48, %v10509_v19  ;;  %5860 = vperm.xlu0 %7688, %v5127_v38   ;;  %v4860_v38 = vrot.slane %v12298_v58, %v9179_v15  ;;  %7649 = vmatpush3.bf16.msra.mxu0 %v7703_v7  ;;  %v7706_v48 = vld [vmem:[%s11669_s1 + $0x50] sm:$0xff]   ;;  %v4209_v8 = vrot.slane %v12299_v44, %v9176_v24  ;;  %v7712_v7 = vld [vmem:[%s11669_s1 + $0xd8] sm:$0xff]  }
 0x402   :  { %7666 = vmatprep.subr.bf16.mxu1 %v7704_v22  ;;  %v6979_v39 = vrot.slane %v10766_v42, %v10491_v2  ;;  %7650 = vmatprep.subr.bf16.mxu0 %v7706_v48  ;;  %v12300_v58 = vld [vmem:[#allocation8_spill] sm:$0xff]  ;;  %v7714_v48 = vld [vmem:[%s11669_s1 + $0x40] sm:$0xff]  }
 0x403   :  { %v6837_v28 = vsel %vm5945_vm4, %v6836_v34, %v6832_v52  ;;  %v4216_v34 = vrot.slane %v12299_v44, %v9179_v15 }
 0x404   :  { %v5693_v32 = vpop.permute.xlu1 %5692  ;;  %v6842_v62 = vsel %vm5952_vm5, %v6841_v54, %v6837_v28  ;;  %5716 = vperm.xlu1 %7689, %v5079_v18   ;;  %v5732_v46 = vpop.permute.xlu0 %5731  ;;  %7667 = vmatpush3.bf16.msra.mxu1 %v7705_v61  ;;  %v7709_v54 = vld [vmem:[%s11669_s1 + $0xa0] sm:$0xff]   ;;  %v7713_v61 = vld [vmem:[%s11669_s1 + $0x98] sm:$0xff]  }
 0x405   :  { %v6846_v25 = vrot.slane %v5693_v32, %v10542_v21  ;;  %5863 = vperm.xlu0 %7688, %v5128_v35   ;;  %v5142_v35 = vcombine.low %v4853_v4, %v4860_v38  ;;  %7651 = vmatpush3.bf16.msra.mxu0 %v7707_v14  ;;  %v5096_v22 = vcombine.low %v4209_v8, %v4216_v34  ;;  %v7717_v34 = vld [vmem:[%s11669_s1 + $0x90] sm:$0xff]  }
 0x406   :  { %7668 = vmatprep.subr.bf16.mxu1 %v7708_v11  ;;  %7652 = vmatprep.subr.bf16.mxu0 %v7710_v1  ;;  %v4867_v4 = vrot.slane %v12300_v58, %v9176_v24  ;;  %v4874_v38 = vrot.slane %v12300_v58, %v9179_v15 }
 0x407   :  { %v6847_v26 = vsel %vm5959_vm6, %v6846_v25, %v6842_v62  ;;  %v7711_v62 = vld [vmem:[%s11669_s1 + $0x8] sm:$0xff]  }
 0x408   :  { %v5771_v52 = vpop.permute.xlu1 %5770  ;;  %5815 = vperm.xlu1 %7689, %v5112_v43   ;;  %v10879_v50 = vpop.permute.xlu0 %5818  ;;  %v10882_v55 = vsel %vm5966_vm7, %v6851_v51, %v6847_v26  ;;  %7669 = vmatpush3.bf16.msra.mxu1 %v7709_v54  ;;  %v6900_v43 = vrot.slane %v10789_v20, %v10491_v2  ;;  %v6905_v51 = vrot.slane %v10809_v27, %v10499_v16  ;;  %v7715_v27 = vld [vmem:[%s11669_s1] sm:$0xff]  }
 0x409   :  { %v6975_v18 = vrot.slane %v5771_v52, %v10478_v57  ;;  %7653 = vmatpush3.bf16.msra.mxu0 %v7711_v62  ;;  %7670 = vmatprep.subr.bf16.mxu1 %v7712_v7  ;;  %v6910_v20 = vrot.slane %v5732_v46, %v10502_v63  ;;  %v7716_v46 = vld [vmem:[%s11669_s1 + $0xd0] sm:$0xff]   ;;  %v7718_v7 = vld [vmem:[%s11669_s1 + $0xc8] sm:$0xff]  }
 0x40a   :  { %7654 = vmatprep.subr.bf16.mxu0 %v7714_v48 }
 0x40b   :  { %v6980_v28 = vsel %vm5924_vm1, %v6979_v39, %v6975_v18  ;;  %v12301_v39 = vld [vmem:[#allocation13_spill] sm:$0xff] }
 0x40c   :  { %v5723_v32 = vpop.permute.xlu1 %5722  ;;  %5905 = vperm.xlu1 %7689, %v5142_v35   ;;  %v5873_v42 = vpop.permute.xlu0 %5872  ;;  %7671 = vmatpush3.bf16.msra.mxu1 %v7713_v61  ;;  %v4881_v18 = vrot.slane %v12301_v39, %v9176_v24  ;;  %v4888_v54 = vrot.slane %v12301_v39, %v9179_v15  ;;  %v5143_v35 = vcombine.low %v4867_v4, %v4874_v38  ;;  %v7719_v24 = vld [vmem:[%s11669_s1 + $0x88] sm:$0xff]   ;;  %v7720_v15 = vld [vmem:[%s11669_s1 + $0xc0] sm:$0xff]  }
 0x40d   :  { %v6896_v25 = vrot.slane %v5723_v32, %v10478_v57  ;;  %7655 = vmatpush3.bf16.msra.mxu0 %v7715_v27  ;;  %7672 = vmatprep.subr.bf16.mxu1 %v7716_v46  ;;  %v7133_v4 = vrot.slane %v10836_v17, %v10478_v57 }
 0x40f   :  { %v6901_v26 = vsel %vm5924_vm1, %v6900_v43, %v6896_v25  ;;  %v5144_v43 = vcombine.low %v4881_v18, %v4888_v54  ;;  %v7721_v25 = vld [vmem:[%s11669_s1 + $0x80] sm:$0xff]  }
 0x410   :  { %v6906_v52 = vsel %vm5931_vm2, %v6905_v51, %v6901_v26  ;;  %v5777_v14 = vpop.permute.xlu1 %5776  ;;  %5767 = vperm.xlu1 %7689, %v5096_v22   ;;  %v5786_v11 = vpop.permute.xlu0 %5785  ;;  %7673 = vmatpush3.bf16.msra.mxu1 %v7717_v34  ;;  %v7142_v51 = vrot.slane %v5873_v42, %v10499_v16 }
 0x411   :  { %v6984_v44 = vrot.slane %v5777_v14, %v10499_v16  ;;  %v6911_v8 = vsel %vm5938_vm3, %v6910_v20, %v6906_v52  ;;  %7674 = vmatprep.subr.bf16.mxu1 %v7718_v7  ;;  %v6999_v17 = vrot.slane %v5786_v11, %v10537_v59 }
 0x413   :  { %v6985_v1 = vsel %vm5931_vm2, %v6984_v44, %v6980_v28 }
 0x414   :  { %v5780_v32 = vpop.permute.xlu1 %5779  ;;  %5908 = vperm.xlu1 %7689, %v5143_v35   ;;  %v5876_v62 = vpop.permute.xlu0 %5875  ;;  %7675 = vmatpush3.bf16.msra.mxu1 %v7719_v24 }
 0x415   :  { %v6989_v22 = vrot.slane %v5780_v32, %v10502_v63  ;;  %7676 = vmatprep.subr.bf16.mxu1 %v7720_v15  ;;  %v7147_v20 = vrot.slane %v5876_v62, %v10502_v63 }
 0x417   :  { %v6990_v28 = vsel %vm5938_vm3, %v6989_v22, %v6985_v1  ;;  %v7054_v1 = vrot.slane %v10879_v50, %v10478_v57 }
 0x418   :  { %v5870_v61 = vpop.permute.xlu1 %5869  ;;  %5911 = vperm.xlu1 %7689, %v5144_v43   ;;  %v5789_v58 = vpop.permute.xlu0 %5788  ;;  %7677 = vmatpush3.bf16.msra.mxu1 %v7721_v25 }
 0x419   :  { %v7137_v38 = vrot.slane %v5870_v61, %v10491_v2  ;;  %v7004_v34 = vrot.slane %v5789_v58, %v10542_v21 }
 0x41b   :  { %v7138_v26 = vsel %vm5924_vm1, %v7137_v38, %v7133_v4 }
 0x41c   :  { %v7143_v48 = vsel %vm5931_vm2, %v7142_v51, %v7138_v26  ;;  %v5783_v52 = vpop.permute.xlu1 %5782  ;;  %v5879_v14 = vpop.permute.xlu0 %5878  ;;  %v12302_v51 = vld [vmem:[#allocation17_spill] sm:$0xff] }
 0x41d   :  { %v6994_v27 = vrot.slane %v5783_v52, %v10509_v19  ;;  %v7148_v46 = vsel %vm5938_vm3, %v7147_v20, %v7143_v48  ;;  %v7152_v44 = vrot.slane %v5879_v14, %v10509_v19  ;;  %v5918_v20 = vrot.slane %v12302_v51, %v10478_v57 }
 0x41f   :  { %v6995_v42 = vsel %vm5945_vm4, %v6994_v27, %v6990_v28  ;;  %v7153_v39 = vsel %vm5945_vm4, %v7152_v44, %v7148_v46 }
 0x420   :  { %v7000_v18 = vsel %vm5952_vm5, %v6999_v17, %v6995_v42  ;;  %v5822_v54 = vpop.permute.xlu1 %5821  ;;  %v5792_v35 = vpop.permute.xlu0 %5791  ;;  %v12304_v17 = vld [vmem:[#allocation9_spill] sm:$0xff] }
 0x421   :  { %v7058_v32 = vrot.slane %v5822_v54, %v10491_v2  ;;  %v7005_v62 = vsel %vm5959_vm6, %v7004_v34, %v7000_v18  ;;  %v7009_v7 = vrot.slane %v5792_v35, %v10551_v29  ;;  %v5930_v34 = vrot.slane %v12304_v17, %v10499_v16  ;;  %v12312_v17 = vld [vmem:[#allocation30_spill] sm:$0xff] }
 0x423   :  { %v7059_v11 = vsel %vm5924_vm1, %v7058_v32, %v7054_v1  ;;  %v7010_v22 = vsel %vm5966_vm7, %v7009_v7, %v7005_v62  ;;  %v12306_v1 = vld [vmem:[#allocation12_spill] sm:$0xff] }
 0x424   :  { %v5735_v24 = vpop.permute.xlu1 %5734  ;;  %v5882_v15 = vpop.permute.xlu0 %5881  ;;  %v5944_v32 = vrot.slane %v12306_v1, %v10509_v19 }
 0x425   :  { %v6915_v43 = vrot.slane %v5735_v24, %v10509_v19  ;;  %v7157_v28 = vrot.slane %v5882_v15, %v10537_v59 }
 0x427   :  { %v6916_v25 = vsel %vm5945_vm4, %v6915_v43, %v6911_v8  ;;  %v7158_v50 = vsel %vm5952_vm5, %v7157_v28, %v7153_v39  ;;  %v12303_v8 = vld [vmem:[#allocation15_spill] sm:$0xff]  ;;  %v12305_v39 = vld [vmem:[#allocation10_spill] sm:$0xff]  ;;  %v12308_v43 = vld [vmem:[#allocation16_spill] sm:$0xff] }
 0x428   :  { %v5825_v61 = vpop.permute.xlu1 %5824  ;;  %v5795_v58 = vpop.permute.xlu0 %5794  ;;  %v5923_v27 = vrot.slane %v12303_v8, %v10491_v2  ;;  %v5937_v18 = vrot.slane %v12305_v39, %v10502_v63  ;;  %v5958_v28 = vrot.slane %v12308_v43, %v10542_v21  ;;  %v12311_v8 = vld [vmem:[#allocation28_spill] sm:$0xff] }
 0x429   :  { %v7063_v4 = vrot.slane %v5825_v61, %v10499_v16  ;;  %v7014_v38 = vrot.slane %v5795_v58, %v10559_v6 }
 0x42a   :  { %v5925_v42 = vsel %vm5924_vm1, %v5923_v27, %v5918_v20  ;;  %v6027_v27 = vrot.slane %v12311_v8, %v10478_v57 }
 0x42b   :  { %v7064_v26 = vsel %vm5931_vm2, %v7063_v4, %v7059_v11  ;;  %v10990_v48 = vsel %vm5973_vm8, %v7014_v38, %v7010_v22  ;;  %v12307_v11 = vld [vmem:[#allocation14_spill] sm:$0xff]  ;;  %v5932_v15 = vsel %vm5931_vm2, %v5930_v34, %v5925_v42  ;;  %v12310_v38 = vld [vmem:[#allocation20_spill] sm:$0xff]  ;;  %v6036_v34 = vrot.slane %v12312_v17, %v10499_v16  ;;  %v12313_v42 = vld [vmem:[#allocation27_spill] sm:$0xff] }
 0x42c   :  { %v5738_v52 = vpop.permute.xlu1 %5737  ;;  %v5885_v14 = vpop.permute.xlu0 %5884  ;;  %v5951_v22 = vrot.slane %v12307_v11, %v10537_v59  ;;  %v5972_v51 = vrot.slane %v12310_v38, %v10559_v6  ;;  %v6031_v39 = vrot.slane %v12313_v42, %v10491_v2 }
 0x42d   :  { %v6920_v46 = vrot.slane %v5738_v52, %v10537_v59  ;;  %v7162_v44 = vrot.slane %v5885_v14, %v10542_v21 }
 0x42e   :  { %v6032_v43 = vsel %vm5924_vm1, %v6031_v39, %v6027_v27  ;;  %v12319_v27 = vld [vmem:[#allocation46_spill] sm:$0xff]  ;;  %v12321_v39 = vld [vmem:[#allocation43_spill] sm:$0xff] }
 0x42f   :  { %v6921_v54 = vsel %vm5952_vm5, %v6920_v46, %v6916_v25  ;;  %v11003_v35 = vsel %vm5959_vm6, %v7162_v44, %v7158_v50  ;;  %v5939_v25 = vsel %vm5938_vm3, %v5937_v18, %v5932_v15  ;;  %v12309_v50 = vld [vmem:[#allocation18_spill] sm:$0xff] }
 0x430   :  { %v5828_v62 = vpop.permute.xlu1 %5827  ;;  %v5747_v7 = vpop.permute.xlu0 %5746  ;;  %v5965_v61 = vrot.slane %v12309_v50, %v10551_v29  ;;  %v5946_v4 = vsel %vm5945_vm4, %v5944_v32, %v5939_v25  ;;  %v12314_v32 = vld [vmem:[#allocation22_spill] sm:$0xff]  ;;  %v6037_v25 = vsel %vm5931_vm2, %v6036_v34, %v6032_v43  ;;  %v12316_v50 = vld [vmem:[#allocation32_spill] sm:$0xff] }
 0x431   :  { %v7068_v24 = vrot.slane %v5828_v62, %v10502_v63  ;;  %v5953_v14 = vsel %vm5952_vm5, %v5951_v22, %v5946_v4  ;;  %v5986_v62 = vrot.slane %v12314_v32, %v10587_v10  ;;  %v12320_v34 = vld [vmem:[#allocation24_spill] sm:$0xff]  ;;  %v6935_v43 = vrot.slane %v5747_v7, %v10559_v6 }
 0x432   :  { %v5960_v44 = vsel %vm5959_vm6, %v5958_v28, %v5953_v14 }
 0x433   :  { %v7069_v58 = vsel %vm5938_vm3, %v7068_v24, %v7064_v26  ;;  %v5967_v26 = vsel %vm5966_vm7, %v5965_v61, %v5960_v44  ;;  %v12315_v24 = vld [vmem:[#allocation19_spill] sm:$0xff]  ;;  %v12317_v61 = vld [vmem:[#allocation29_spill] sm:$0xff] }
 0x434   :  { %v5741_v20 = vpop.permute.xlu1 %5740  ;;  %v5837_v52 = vpop.permute.xlu0 %5836  ;;  %v5974_v1 = vsel %vm5973_vm8, %v5972_v51, %v5967_v26  ;;  %v5979_v15 = vrot.slane %v12315_v24, %v10578_v33  ;;  %v6041_v4 = vrot.slane %v12317_v61, %v10502_v63  ;;  %v12318_v51 = vld [vmem:[#allocation44_spill] sm:$0xff]  ;;  %v6000_v26 = vrot.slane %v12320_v34, %v10611_v49  ;;  %v12323_v24 = vld [vmem:[#allocation34_spill] sm:$0xff] }
 0x435   :  { %v6925_v46 = vrot.slane %v5741_v20, %v10542_v21  ;;  %v6106_v20 = vrot.slane %v12318_v51, %v10478_v57  ;;  %v12325_v51 = vld [vmem:[#allocation48_spill] sm:$0xff] }
 0x436   :  { %v5981_v38 = vsel %vm5980_vm9, %v5979_v15, %v5974_v1  ;;  %v6042_v42 = vsel %vm5938_vm3, %v6041_v4, %v6037_v25  ;;  %v6110_v1 = vrot.slane %v12321_v39, %v10491_v2  ;;  %v6056_v15 = vrot.slane %v12323_v24, %v10542_v21  ;;  %v12331_v24 = vld [vmem:[#allocation23_spill] sm:$0xff] }
 0x437   :  { %v6926_v18 = vsel %vm5959_vm6, %v6925_v46, %v6921_v54  ;;  %v6046_v54 = vrot.slane %v12316_v50, %v10509_v19  ;;  %v5988_v8 = vsel %vm5987_vm10, %v5986_v62, %v5981_v38  ;;  %v6115_v46 = vrot.slane %v12319_v27, %v10499_v16 }
 0x438   :  { %v5831_v11 = vpop.permute.xlu1 %5830  ;;  %v11034_v22 = vpop.permute.xlu0 %5701  ;;  %v6111_v25 = vsel %vm5924_vm1, %v6110_v1, %v6106_v20  ;;  %v6125_v27 = vrot.slane %v12325_v51, %v10509_v19  ;;  %v12328_v20 = vld [vmem:[#allocation45_spill] sm:$0xff] }
 0x439   :  { %v7073_v28 = vrot.slane %v5831_v11, %v10509_v19  ;;  %v6047_v62 = vsel %vm5945_vm4, %v6046_v54, %v6042_v42  ;;  %v6116_v38 = vsel %vm5931_vm2, %v6115_v46, %v6111_v25  ;;  %v12329_v46 = vld [vmem:[#allocation26_spill] sm:$0xff] }
 0x43a   :  { %v6014_v39 = vrot.slane %v12329_v46, %v10628_v53 }
 0x43b   :  { %v7074_v14 = vsel %vm5945_vm4, %v7073_v28, %v7069_v58  ;;  %v12322_v58 = vld [vmem:[#allocation21_spill] sm:$0xff]  ;;  %v12324_v28 = vld [vmem:[#allocation31_spill] sm:$0xff] }
 0x43c   :  { %v5744_v44 = vpop.permute.xlu1 %5743  ;;  %v11052_v17 = vpop.permute.xlu0 %5800  ;;  %v5993_v11 = vrot.slane %v12322_v58, %v10592_v47  ;;  %v6051_v50 = vrot.slane %v12324_v28, %v10537_v59 }
 0x43d   :  { %v6930_v32 = vrot.slane %v5744_v44, %v10551_v29 }
 0x43e   :  { %v5995_v4 = vsel %vm5994_vm11, %v5993_v11, %v5988_v8  ;;  %v6052_v42 = vsel %vm5952_vm5, %v6051_v50, %v6047_v62  ;;  %v7083_v11 = vrot.slane %v5837_v52, %v10542_v21  ;;  %v12332_v62 = vld [vmem:[#allocation33_spill] sm:$0xff] }
 0x43f   :  { %v6931_v61 = vsel %vm5966_vm7, %v6930_v32, %v6926_v18  ;;  %v6002_v7 = vsel %vm6001_vm12, %v6000_v26, %v5995_v4  ;;  %v6120_v18 = vrot.slane %v12328_v20, %v10502_v63  ;;  %v6057_v1 = vsel %vm5959_vm6, %v6056_v15, %v6052_v42  ;;  %v12330_v32 = vld [vmem:[#allocation36_spill] sm:$0xff]  ;;  %v12335_v20 = vld [vmem:[#allocation47_spill] sm:$0xff] }
 0x440   :  { %v5834_v54 = vpop.permute.xlu1 %5833  ;;  %v11074_v44 = vpop.permute.xlu0 %5890  ;;  %v11077_v34 = vsel %vm5973_vm8, %v6935_v43, %v6931_v61  ;;  %v6066_v58 = vrot.slane %v12330_v32, %v10559_v6  ;;  %v6007_v26 = vrot.slane %v12331_v24, %v10615_v0  ;;  %v6061_v43 = vrot.slane %v12332_v62, %v10551_v29  ;;  %v12333_v61 = vld [vmem:[#allocation50_spill] sm:$0xff]  ;;  %v12338_v24 = vld [vmem:[#allocation60_spill] sm:$0xff] }
 0x441   :  { %12326 = vst [vmem:[#allocation151_spill] sm:$0xff] %v11074_v44  ;;  %12327 = vst [vmem:[#allocation142_spill] sm:$0xff] %v11077_v34  ;;  %v7078_v8 = vrot.slane %v5834_v54, %v10537_v59  ;;  %v6121_v28 = vsel %vm5938_vm3, %v6120_v18, %v6116_v38  ;;  %v6135_v15 = vrot.slane %v12333_v61, %v10542_v21 }
 0x442   :  { %v6126_v25 = vsel %vm5945_vm4, %v6125_v27, %v6121_v28  ;;  %v6009_v54 = vsel %vm6008_vm13, %v6007_v26, %v6002_v7  ;;  %v6062_v42 = vsel %vm5966_vm7, %v6061_v43, %v6057_v1  ;;  %v6130_v38 = vrot.slane %v12335_v20, %v10537_v59  ;;  %v12336_v27 = vld [vmem:[#allocation25_spill] sm:$0xff]  ;;  %v12339_v43 = vld [vmem:[#allocation35_spill] sm:$0xff]  ;;  %v12344_v20 = vld [vmem:[#allocation52_spill] sm:$0xff] }
 0x443   :  { %v7079_v50 = vsel %vm5952_vm5, %v7078_v8, %v7074_v14  ;;  %v6021_v18 = vrot.slane %v12336_v27, %v10639_v40  ;;  %v6016_v8 = vsel %vm6015_vm14, %v6014_v39, %v6009_v54  ;;  %v6067_v46 = vsel %vm5973_vm8, %v6066_v58, %v6062_v42  ;;  %v12340_v58 = vld [vmem:[#allocation62_spill] sm:$0xff] }
 0x444   :  { %v5699_v4 = vpop.permute.xlu1 %5698  ;;  %v11099_v51 = vpop.permute.xlu0 %5752  ;;  %v11102_v52 = vsel %vm5959_vm6, %v7083_v11, %v7079_v50  ;;  %v6861_v32 = vrot.slane %v11034_v22, %v10578_v33  ;;  %v12337_v11 = vld [vmem:[#allocation38_spill] sm:$0xff]  ;;  %v6131_v1 = vsel %vm5952_vm5, %v6130_v38, %v6126_v25  ;;  %v6185_v26 = vrot.slane %v12338_v24, %v10478_v57 }
 0x445   :  { %12334 = vst [vmem:[#allocation143_spill] sm:$0xff] %v11099_v51  ;;  %v6856_v14 = vrot.slane %v5699_v4, %v10559_v6  ;;  %v6076_v7 = vrot.slane %v12337_v11, %v10587_v10  ;;  %v6071_v28 = vrot.slane %v12339_v43, %v10578_v33  ;;  %v6136_v39 = vsel %vm5959_vm6, %v6135_v15, %v6131_v1  ;;  %v12342_v4 = vld [vmem:[#allocation49_spill] sm:$0xff]  ;;  %v12347_v11 = vld [vmem:[#allocation39_spill] sm:$0xff] }
 0x446   :  { %v6194_v50 = vrot.slane %v12340_v58, %v10499_v16  ;;  %v6140_v54 = vrot.slane %v12342_v4, %v10551_v29  ;;  %v6145_v38 = vrot.slane %v12344_v20, %v10559_v6  ;;  %v11141_v15 = vsel %vm6022_vm15, %v6021_v18, %v6016_v8  ;;  %v12349_v18 = vld [vmem:[#allocation61_spill] sm:$0xff]  ;;  %v12350_v20 = vld [vmem:[#allocation64_spill] sm:$0xff] }
 0x447   :  { %v6857_v62 = vsel %vm5973_vm8, %v6856_v14, %v10882_v55  ;;  %v12343_v55 = vld [vmem:[#allocation59_spill] sm:$0xff]  ;;  %12345 = vst [vmem:[#allocation146_spill] sm:$0xff] %v11141_v15  ;;  %v12346_v14 = vld [vmem:[#allocation37_spill] sm:$0xff]  ;;  %v6091_v1 = vrot.slane %v12347_v11, %v10615_v0  ;;  %v6199_v8 = vrot.slane %v12349_v18, %v10502_v63  ;;  %v12351_v11 = vld [vmem:[#allocation76_spill] sm:$0xff] }
 0x448   :  { %v11127_v22 = vpop.permute.xlu1 %5797  ;;  %v11129_v61 = vpop.permute.xlu0 %5842  ;;  %v11132_v25 = vsel %vm5980_vm9, %v6861_v32, %v6857_v62  ;;  %v6189_v42 = vrot.slane %v12343_v55, %v10491_v2  ;;  %v6081_v27 = vrot.slane %v12346_v14, %v10592_v47  ;;  %v6072_v32 = vsel %vm5980_vm9, %v6071_v28, %v6067_v46  ;;  %v12348_v62 = vld [vmem:[#allocation40_spill] sm:$0xff]  ;;  %v12357_v15 = vld [vmem:[#allocation75_spill] sm:$0xff] }
 0x449   :  { %12341 = vst [vmem:[#allocation144_spill] sm:$0xff] %v11132_v25  ;;  %v6077_v24 = vsel %vm5987_vm10, %v6076_v7, %v6072_v32  ;;  %v6086_v43 = vrot.slane %v12348_v62, %v10611_v49  ;;  %v6141_v58 = vsel %vm5966_vm7, %v6140_v54, %v6136_v39  ;;  %v6204_v14 = vrot.slane %v12350_v20, %v10509_v19  ;;  %v12353_v39 = vld [vmem:[#allocation54_spill] sm:$0xff]  ;;  %v12356_v20 = vld [vmem:[#allocation51_spill] sm:$0xff] }
 0x44a   :  { %v6190_v4 = vsel %vm5924_vm1, %v6189_v42, %v6185_v26  ;;  %v6264_v46 = vrot.slane %v12351_v11, %v10478_v57  ;;  %v6146_v32 = vsel %vm5973_vm8, %v6145_v38, %v6141_v58  ;;  %v6155_v54 = vrot.slane %v12353_v39, %v10587_v10  ;;  %v12354_v26 = vld [vmem:[#allocation78_spill] sm:$0xff] }
 0x44b   :  { %v6195_v55 = vsel %vm5931_vm2, %v6194_v50, %v6190_v4  ;;  %v6273_v42 = vrot.slane %v12354_v26, %v10499_v16  ;;  %v12355_v50 = vld [vmem:[#allocation41_spill] sm:$0xff]  ;;  %v6082_v18 = vsel %vm5994_vm11, %v6081_v27, %v6077_v24  ;;  %v6150_v11 = vrot.slane %v12356_v20, %v10578_v33  ;;  %v12358_v58 = vld [vmem:[#allocation42_spill] sm:$0xff] }
 0x44c   :  { %v5888_v28 = vpop.permute.xlu1 %5887  ;;  %v11160_v7 = vpop.permute.xlu0 %5707  ;;  %v6087_v38 = vsel %vm6001_vm12, %v6086_v43, %v6082_v18  ;;  %v6096_v39 = vrot.slane %v12358_v58, %v10628_v53  ;;  %v6200_v26 = vsel %vm5938_vm3, %v6199_v8, %v6195_v55  ;;  %v12360_v24 = vld [vmem:[#allocation66_spill] sm:$0xff]  ;;  %v12363_v8 = vld [vmem:[#allocation63_spill] sm:$0xff] }
 0x44d   :  { %12352 = vst [vmem:[#allocation157_spill] sm:$0xff] %v11160_v7  ;;  %v7167_v62 = vrot.slane %v5888_v28, %v10551_v29  ;;  %v6268_v7 = vrot.slane %v12357_v15, %v10491_v2  ;;  %v6151_v4 = vsel %vm5980_vm9, %v6150_v11, %v6146_v32  ;;  %v6205_v27 = vsel %vm5945_vm4, %v6204_v14, %v6200_v26  ;;  %v12364_v32 = vld [vmem:[#allocation80_spill] sm:$0xff]  ;;  %v12365_v11 = vld [vmem:[#allocation53_spill] sm:$0xff] }
 0x44e   :  { %v6214_v20 = vrot.slane %v12360_v24, %v10542_v21  ;;  %v6156_v18 = vsel %vm5987_vm10, %v6155_v54, %v6151_v4  ;;  %v6209_v55 = vrot.slane %v12363_v8, %v10537_v59  ;;  %v6092_v14 = vsel %vm6008_vm13, %v6091_v1, %v6087_v38  ;;  %v12367_v26 = vld [vmem:[#allocation77_spill] sm:$0xff]  ;;  %v12368_v4 = vld [vmem:[#allocation55_spill] sm:$0xff] }
 0x44f   :  { %v11181_v28 = vsel %vm5966_vm7, %v7167_v62, %v11003_v35  ;;  %v6269_v15 = vsel %vm5924_vm1, %v6268_v7, %v6264_v46  ;;  %v6283_v62 = vrot.slane %v12364_v32, %v10509_v19  ;;  %v6160_v58 = vrot.slane %v12365_v11, %v10592_v47  ;;  %v12366_v46 = vld [vmem:[#allocation56_spill] sm:$0xff] }
 0x450   :  { %12359 = vst [vmem:[#allocation158_spill] sm:$0xff] %v11181_v28  ;;  %v11188_v25 = vpop.permute.xlu1 %5749  ;;  %v11190_v43 = vpop.permute.xlu0 %5806  ;;  %v6274_v35 = vsel %vm5931_vm2, %v6273_v42, %v6269_v15  ;;  %v6165_v7 = vrot.slane %v12366_v46, %v10611_v49  ;;  %v6278_v24 = vrot.slane %v12367_v26, %v10502_v63  ;;  %v11206_v54 = vsel %vm6015_vm14, %v6096_v39, %v6092_v14  ;;  %v12369_v15 = vld [vmem:[#allocation57_spill] sm:$0xff]  ;;  %v12370_v11 = vld [vmem:[#allocation68_spill] sm:$0xff] }
 0x451   :  { %12361 = vst [vmem:[#allocation7_spill] sm:$0xff] %v11188_v25  ;;  %12362 = vst [vmem:[#allocation147_spill] sm:$0xff] %v11190_v43  ;;  %v6170_v42 = vrot.slane %v12368_v4, %v10615_v0  ;;  %v6210_v1 = vsel %vm5952_vm5, %v6209_v55, %v6205_v27  ;;  %v6161_v38 = vsel %vm5994_vm11, %v6160_v58, %v6156_v18  ;;  %v12372_v14 = vld [vmem:[#allocation65_spill] sm:$0xff]  ;;  %v12373_v27 = vld [vmem:[#allocation82_spill] sm:$0xff] }
 0x452   :  { %v6215_v32 = vsel %vm5959_vm6, %v6214_v20, %v6210_v1  ;;  %v6224_v46 = vrot.slane %v12370_v11, %v10559_v6  ;;  %v6279_v26 = vsel %vm5938_vm3, %v6278_v24, %v6274_v35  ;;  %v6219_v4 = vrot.slane %v12372_v14, %v10551_v29  ;;  %v12374_v18 = vld [vmem:[#allocation92_spill] sm:$0xff]  ;;  %v12375_v1 = vld [vmem:[#allocation79_spill] sm:$0xff]  ;;  %v12376_v24 = vld [vmem:[#allocation94_spill] sm:$0xff] }
 0x453   :  { %v6284_v8 = vsel %vm5945_vm4, %v6283_v62, %v6279_v26  ;;  %v6293_v55 = vrot.slane %v12373_v27, %v10542_v21  ;;  %v6343_v20 = vrot.slane %v12374_v18, %v10478_v57  ;;  %v6166_v58 = vsel %vm6001_vm12, %v6165_v7, %v6161_v38  ;;  %v12378_v14 = vld [vmem:[#allocation58_spill] sm:$0xff]  ;;  %v12379_v27 = vld [vmem:[#allocation91_spill] sm:$0xff] }
 0x454   :  { %v11218_v28 = vpop.permute.xlu1 %5839  ;;  %v11220_v39 = vpop.permute.xlu0 %5896  ;;  %v6288_v35 = vrot.slane %v12375_v1, %v10537_v59  ;;  %v6352_v11 = vrot.slane %v12376_v24, %v10499_v16  ;;  %v6175_v62 = vrot.slane %v12378_v14, %v10628_v53  ;;  %v6220_v26 = vsel %vm5966_vm7, %v6219_v4, %v6215_v32  ;;  %v12380_v18 = vld [vmem:[#allocation110_spill] sm:$0xff]  ;;  %v12385_v32 = vld [vmem:[#allocation67_spill] sm:$0xff] }
 0x455   :  { %12371 = vst [vmem:[#allocation154_spill] sm:$0xff] %v11220_v39  ;;  %v12377_v39 = vld [vmem:[#allocation108_spill] sm:$0xff]  ;;  %v6347_v36 = vrot.slane %v12379_v27, %v10491_v2  ;;  %v6431_v7 = vrot.slane %v12380_v18, %v10499_v16  ;;  %v6225_v38 = vsel %vm5973_vm8, %v6224_v46, %v6220_v26  ;;  %v12381_v1 = vld [vmem:[#allocation70_spill] sm:$0xff]  ;;  %v6229_v4 = vrot.slane %v12385_v32, %v10578_v33  ;;  %v12389_v32 = vld [vmem:[#allocation93_spill] sm:$0xff] }
 0x456   :  { %v6422_v44 = vrot.slane %v12377_v39, %v10478_v57  ;;  %v6234_v51 = vrot.slane %v12381_v1, %v10587_v10  ;;  %v6289_v24 = vsel %vm5952_vm5, %v6288_v35, %v6284_v8  ;;  %v12382_v39 = vld [vmem:[#allocation107_spill] sm:$0xff]  ;;  %v12386_v18 = vld [vmem:[#allocation84_spill] sm:$0xff]  ;;  %v12387_v1 = vld [vmem:[#allocation81_spill] sm:$0xff] }
 0x457   :  { %v6426_v34 = vrot.slane %v12382_v39, %v10491_v2  ;;  %v6294_v27 = vsel %vm5959_vm6, %v6293_v55, %v6289_v24  ;;  %v6303_v46 = vrot.slane %v12386_v18, %v10559_v6  ;;  %v6348_v26 = vsel %vm5924_vm1, %v6347_v36, %v6343_v20  ;;  %v12388_v39 = vld [vmem:[#allocation96_spill] sm:$0xff]  ;;  %v12391_v20 = vld [vmem:[#allocation69_spill] sm:$0xff] }
 0x458   :  { %v11249_v37 = vpop.permute.xlu1 %5704  ;;  %v11251_v14 = vpop.permute.xlu0 %5758  ;;  %v6298_v8 = vrot.slane %v12387_v1, %v10551_v29  ;;  %v6353_v35 = vsel %vm5931_vm2, %v6352_v11, %v6348_v26  ;;  %v6230_v43 = vsel %vm5980_vm9, %v6229_v4, %v6225_v38  ;;  %v6357_v55 = vrot.slane %v12389_v32, %v10502_v63  ;;  %v12390_v18 = vld [vmem:[#allocation112_spill] sm:$0xff]  ;;  %v12395_v32 = vld [vmem:[#allocation86_spill] sm:$0xff] }
 0x459   :  { %12383 = vst [vmem:[#allocation155_spill] sm:$0xff] %v11249_v37  ;;  %12384 = vst [vmem:[#allocation161_spill] sm:$0xff] %v11251_v14  ;;  %v6362_v37 = vrot.slane %v12388_v39, %v10509_v19  ;;  %v6427_v14 = vsel %vm5924_vm1, %v6426_v34, %v6422_v44  ;;  %v6441_v36 = vrot.slane %v12390_v18, %v10509_v19  ;;  %v12392_v39 = vld [vmem:[#allocation109_spill] sm:$0xff]  ;;  %v12394_v4 = vld [vmem:[#allocation72_spill] sm:$0xff] }
 0x45a   :  { %v6432_v24 = vsel %vm5931_vm2, %v6431_v7, %v6427_v14  ;;  %v6239_v1 = vrot.slane %v12391_v20, %v10592_v47  ;;  %v6235_v11 = vsel %vm5987_vm10, %v6234_v51, %v6230_v43  ;;  %v6299_v26 = vsel %vm5966_vm7, %v6298_v8, %v6294_v27  ;;  %v12396_v51 = vld [vmem:[#allocation83_spill] sm:$0xff]  ;;  %v12397_v8 = vld [vmem:[#allocation98_spill] sm:$0xff] }
 0x45b   :  { %v6436_v44 = vrot.slane %v12392_v39, %v10502_v63  ;;  %v6244_v7 = vrot.slane %v12394_v4, %v10611_v49  ;;  %v6304_v14 = vsel %vm5973_vm8, %v6303_v46, %v6299_v26  ;;  %v6313_v18 = vrot.slane %v12395_v32, %v10587_v10  ;;  %v12398_v4 = vld [vmem:[#allocation95_spill] sm:$0xff]  ;;  %v12399_v32 = vld [vmem:[#allocation114_spill] sm:$0xff] }
 0x45c   :  { %v11277_v34 = vpop.permute.xlu1 %5803  ;;  %v11279_v38 = vpop.permute.xlu0 %5848  ;;  %v6358_v20 = vsel %vm5938_vm3, %v6357_v55, %v6353_v35  ;;  %v6308_v43 = vrot.slane %v12396_v51, %v10578_v33  ;;  %v6372_v39 = vrot.slane %v12397_v8, %v10542_v21  ;;  %v6367_v46 = vrot.slane %v12398_v4, %v10537_v59 }
 0x45d   :  { %12393 = vst [vmem:[#allocation6_spill] sm:$0xff] %v11279_v38  ;;  %v6363_v27 = vsel %vm5945_vm4, %v6362_v37, %v6358_v20  ;;  %v6437_v25 = vsel %vm5938_vm3, %v6436_v44, %v6432_v24  ;;  %v6171_v38 = vsel %vm6008_vm13, %v6170_v42, %v6166_v58  ;;  %v6451_v35 = vrot.slane %v12399_v32, %v10542_v21  ;;  %v12400_v20 = vld [vmem:[#allocation111_spill] sm:$0xff] }
 0x45e   :  { %v6442_v26 = vsel %vm5945_vm4, %v6441_v36, %v6437_v25  ;;  %v6176_v55 = vsel %vm6015_vm14, %v6175_v62, %v6171_v38  ;;  %v6240_v51 = vsel %vm5994_vm11, %v6239_v1, %v6235_v11  ;;  %v6309_v37 = vsel %vm5980_vm9, %v6308_v43, %v6304_v14  ;;  %v12401_v36 = vld [vmem:[#allocation88_spill] sm:$0xff]  ;;  %v12402_v1 = vld [vmem:[#allocation85_spill] sm:$0xff]  ;;  %v12404_v32 = vld [vmem:[#allocation71_spill] sm:$0xff] }
 0x45f   :  { %v6446_v8 = vrot.slane %v12400_v20, %v10537_v59  ;;  %v6245_v58 = vsel %vm6001_vm12, %v6244_v7, %v6240_v51  ;;  %v6314_v25 = vsel %vm5987_vm10, %v6313_v18, %v6309_v37  ;;  %v6323_v44 = vrot.slane %v12401_v36, %v10611_v49  ;;  %v12403_v14 = vld [vmem:[#allocation100_spill] sm:$0xff]  ;;  %v12405_v18 = vld [vmem:[#allocation97_spill] sm:$0xff] }
 0x460   :  { %v11304_v24 = vpop.permute.xlu1 %5893  ;;  %v11306_v42 = vpop.permute.xlu0 %5713  ;;  %v6368_v62 = vsel %vm5952_vm5, %v6367_v46, %v6363_v27  ;;  %v6318_v11 = vrot.slane %v12402_v1, %v10592_v47  ;;  %v6382_v43 = vrot.slane %v12403_v14, %v10559_v6  ;;  %v6249_v7 = vrot.slane %v12404_v32, %v10615_v0  ;;  %v12406_v27 = vld [vmem:[#allocation116_spill] sm:$0xff]  ;;  %v12411_v32 = vld [vmem:[#allocation89_spill] sm:$0xff] }
 0x461   :  { %v6373_v38 = vsel %vm5959_vm6, %v6372_v39, %v6368_v62  ;;  %v6447_v4 = vsel %vm5952_vm5, %v6446_v8, %v6442_v26  ;;  %v6377_v51 = vrot.slane %v12405_v18, %v10551_v29  ;;  %v6461_v46 = vrot.slane %v12406_v27, %v10559_v6  ;;  %v12408_v26 = vld [vmem:[#allocation113_spill] sm:$0xff] }
 0x462   :  { %v6452_v37 = vsel %vm5959_vm6, %v6451_v35, %v6447_v4  ;;  %v12407_v20 = vrot.slane %v12369_v15, %v10639_v40  ;;  %v6319_v36 = vsel %vm5994_vm11, %v6318_v11, %v6314_v25  ;;  %v6456_v8 = vrot.slane %v12408_v26, %v10551_v29 }
 0x463   :  { %v12409_v35 = vrot.slane %v12355_v50, %v10639_v40  ;;  %v11347_v15 = vsel %vm6008_vm13, %v6249_v7, %v6245_v58  ;;  %v6324_v11 = vsel %vm6001_vm12, %v6323_v44, %v6319_v36  ;;  %v6378_v4 = vsel %vm5966_vm7, %v6377_v51, %v6373_v38  ;;  %v12412_v50 = vld [vmem:[#allocation102_spill] sm:$0xff]  ;;  %v12413_v58 = vld [vmem:[#allocation99_spill] sm:$0xff] }
 0x464   :  { %v11330_v39 = vsel %vm6022_vm15, %v12407_v20, %v6176_v55  ;;  %v11335_v62 = vpop.permute.xlu1 %5755  ;;  %v11337_v1 = vpop.permute.xlu0 %5812  ;;  %v12410_v55 = vld [vmem:[#allocation87_spill] sm:$0xff]  ;;  %v6338_v18 = vrot.slane %v12411_v32, %v10639_v40  ;;  %v6383_v27 = vsel %vm5973_vm8, %v6382_v43, %v6378_v4  ;;  %v6392_v20 = vrot.slane %v12412_v50, %v10587_v10  ;;  %v12417_v50 = vld [vmem:[#allocation104_spill] sm:$0xff] }
 0x465   :  { %v11344_v14 = vsel %vm6022_vm15, %v12409_v35, %v11206_v54  ;;  %v6328_v25 = vrot.slane %v12410_v55, %v10615_v0  ;;  %v6457_v54 = vsel %vm5966_vm7, %v6456_v8, %v6452_v37  ;;  %v6387_v7 = vrot.slane %v12413_v58, %v10578_v33  ;;  %v12414_v43 = vld [vmem:[#allocation115_spill] sm:$0xff]  ;;  %v12418_v58 = vld [vmem:[#allocation101_spill] sm:$0xff] }
 0x466   :  { %v6462_v26 = vsel %vm5973_vm8, %v6461_v46, %v6457_v54  ;;  %v6471_v44 = vrot.slane %v10243_v3, %v10587_v10  ;;  %v6501_v38 = vrot.slane %v10279_v13, %v10478_v57  ;;  %v6466_v36 = vrot.slane %v12414_v43, %v10578_v33  ;;  %v12415_v3 = vld [vmem:[#allocation90_spill] sm:$0xff] }
 0x467   :  { %v6329_v51 = vsel %vm6008_vm13, %v6328_v25, %v6324_v11  ;;  %v6510_v35 = vrot.slane %v10291_v41, %v10499_v16  ;;  %v6580_v37 = vrot.slane %v10375_v12, %v10478_v57  ;;  %v6333_v55 = vrot.slane %v12415_v3, %v10628_v53  ;;  %v12416_v25 = vld [vmem:[#allocation123_spill] sm:$0xff] }
 0x468   :  { %v11373_v8 = vpop.permute.xlu1 %5845  ;;  %v11375_v46 = vpop.permute.xlu0 %5902  ;;  %v6388_v13 = vsel %vm5980_vm9, %v6387_v7, %v6383_v27  ;;  %v6505_v11 = vrot.slane %v12416_v25, %v10491_v2  ;;  %v6589_v4 = vrot.slane %v10387_v5, %v10499_v16  ;;  %v6402_v12 = vrot.slane %v12417_v50, %v10611_v49  ;;  %v12419_v16 = vld [vmem:[#allocation117_spill] sm:$0xff] }
 0x469   :  { %v6393_v41 = vsel %vm5987_vm10, %v6392_v20, %v6388_v13  ;;  %v6467_v57 = vsel %vm5980_vm9, %v6466_v36, %v6462_v26  ;;  %v6584_v54 = vrot.slane %v10317_v31, %v10491_v2  ;;  %v6397_v43 = vrot.slane %v12418_v58, %v10592_v47 }
 0x46a   :  { %v6472_v27 = vsel %vm5987_vm10, %v6471_v44, %v6467_v57  ;;  %v6481_v7 = vrot.slane %v10255_v45, %v10611_v49  ;;  %v6506_v5 = vsel %vm5924_vm1, %v6505_v11, %v6501_v38  ;;  %v6476_v20 = vrot.slane %v12419_v16, %v10592_v47  ;;  %v12420_v45 = vld [vmem:[#allocation125_spill] sm:$0xff]  ;;  %v12425_v16 = vld [vmem:[#allocation118_spill] sm:$0xff] }
 0x46b   :  { %v6511_v3 = vsel %vm5931_vm2, %v6510_v35, %v6506_v5  ;;  %v6520_v26 = vrot.slane %v10303_v60, %v10509_v19  ;;  %v6585_v31 = vsel %vm5924_vm1, %v6584_v54, %v6580_v37  ;;  %v6398_v44 = vsel %vm5994_vm11, %v6397_v43, %v6393_v41  ;;  %v12421_v35 = vld [vmem:[#allocation103_spill] sm:$0xff]  ;;  %v12422_v41 = vld [vmem:[#allocation106_spill] sm:$0xff] }
 0x46c   :  { %v11402_v2 = vpop.permute.xlu1 %5710  ;;  %v11404_v36 = vpop.permute.xlu0 %5764  ;;  %v6515_v13 = vrot.slane %v12420_v45, %v10502_v63  ;;  %v6590_v38 = vsel %vm5931_vm2, %v6589_v4, %v6585_v31  ;;  %v6599_v25 = vrot.slane %v10399_v9, %v10509_v19  ;;  %v6407_v11 = vrot.slane %v12421_v35, %v10615_v0  ;;  %v12423_v4 = vld [vmem:[#allocation120_spill] sm:$0xff]  ;;  %v12424_v19 = vld [vmem:[#allocation119_spill] sm:$0xff]  ;;  %v12426_v31 = vld [vmem:[#allocation105_spill] sm:$0xff] }
 0x46d   :  { %v6403_v60 = vsel %vm6001_vm12, %v6402_v12, %v6398_v44  ;;  %v6477_v37 = vsel %vm5994_vm11, %v6476_v20, %v6472_v27  ;;  %v6594_v50 = vrot.slane %v10329_v23, %v10502_v63  ;;  %v6412_v57 = vrot.slane %v12422_v41, %v10628_v53 }
 0x46e   :  { %v6482_v54 = vsel %vm6001_vm12, %v6481_v7, %v6477_v37  ;;  %v6491_v58 = vrot.slane %v12423_v4, %v10628_v53  ;;  %v6516_v9 = vsel %vm5938_vm3, %v6515_v13, %v6511_v3  ;;  %v6486_v43 = vrot.slane %v12424_v19, %v10615_v0  ;;  %v12427_v13 = vld [vmem:[#allocation135_spill] sm:$0xff] }
 0x46f   :  { %v6521_v12 = vsel %vm5945_vm4, %v6520_v26, %v6516_v9  ;;  %v6530_v27 = vrot.slane %v10315_v30, %v10542_v21  ;;  %v6595_v23 = vsel %vm5938_vm3, %v6594_v50, %v6590_v38  ;;  %v6334_v7 = vsel %vm6015_vm14, %v6333_v55, %v6329_v51  ;;  %v12431_v4 = vld [vmem:[#allocation127_spill] sm:$0xff]  ;;  %v12432_v9 = vld [vmem:[#allocation138_spill] sm:$0xff] }
 0x470   :  { %v11430_v63 = vpop.permute.xlu1 %5809  ;;  %v11432_v5 = vpop.permute.xlu0 %5854  ;;  %v6525_v20 = vrot.slane %v12425_v16, %v10537_v59  ;;  %v6600_v3 = vsel %vm5945_vm4, %v6599_v25, %v6595_v23  ;;  %v6609_v26 = vrot.slane %v10411_v56, %v10542_v21  ;;  %v6417_v30 = vrot.slane %v12426_v31, %v10639_v40  ;;  %v12428_v56 = vld [vmem:[#allocation121_spill] sm:$0xff] }
 0x471   :  { %v6408_v44 = vsel %vm6008_vm13, %v6407_v11, %v6403_v60  ;;  %v6487_v45 = vsel %vm6008_vm13, %v6486_v43, %v6482_v54  ;;  %v6604_v38 = vrot.slane %v12427_v13, %v10537_v59  ;;  %v7088_v25 = vrot.slane %v11218_v28, %v10551_v29  ;;  %v12429_v11 = vld [vmem:[#allocation133_spill] sm:$0xff] }
 0x472   :  { %v6413_v51 = vsel %vm6015_vm14, %v6412_v57, %v6408_v44  ;;  %v6492_v55 = vsel %vm6015_vm14, %v6491_v58, %v6487_v45  ;;  %v6526_v35 = vsel %vm5952_vm5, %v6525_v20, %v6521_v12  ;;  %v6496_v21 = vrot.slane %v12428_v56, %v10639_v40  ;;  %v12430_v57 = vld [vmem:[#allocation74_spill] sm:$0xff] }
 0x473   :  { %v6531_v37 = vsel %vm5959_vm6, %v6530_v27, %v6526_v35  ;;  %v6540_v60 = vrot.slane %v12429_v11, %v10559_v6  ;;  %v6605_v50 = vsel %vm5952_vm5, %v6604_v38, %v6600_v3  ;;  %v6254_v54 = vrot.slane %v12430_v57, %v10628_v53  ;;  %v12433_v27 = vld [vmem:[#allocation137_spill] sm:$0xff] }
 0x474   :  { %v11457_v59 = vpop.permute.xlu1 %5899  ;;  %v11459_v41 = vpop.permute.xlu0 %5719  ;;  %v6535_v28 = vrot.slane %v12431_v4, %v10551_v29  ;;  %v6610_v58 = vsel %vm5959_vm6, %v6609_v26, %v6605_v50  ;;  %v6619_v19 = vrot.slane %v12432_v9, %v10559_v6  ;;  %v11472_v43 = vsel %vm6022_vm15, %v6338_v18, %v6334_v7  ;;  %v12434_v7 = vld [vmem:[#allocation126_spill] sm:$0xff] }
 0x475   :  { %v6497_v12 = vsel %vm6022_vm15, %v6496_v21, %v6492_v55  ;;  %v6614_v23 = vrot.slane %v12433_v27, %v10551_v29  ;;  %v6418_v16 = vsel %vm6022_vm15, %v6417_v30, %v6413_v51  ;;  %v7019_v3 = vrot.slane %v11127_v22, %v10578_v33  ;;  %v12435_v22 = vld [vmem:[#allocation129_spill] sm:$0xff]  ;;  %v12437_v55 = vld [vmem:[#allocation122_spill] sm:$0xff] }
 0x476   :  { %v6536_v20 = vsel %vm5966_vm7, %v6535_v28, %v6531_v37  ;;  %v7089_v26 = vsel %vm5966_vm7, %v7088_v25, %v11102_v52  ;;  %v7098_v32 = vrot.slane %v11373_v8, %v10578_v33  ;;  %v6550_v31 = vrot.slane %v12434_v7, %v10587_v10  ;;  %v12436_v8 = vld [vmem:[#allocation140_spill] sm:$0xff] }
 0x477   :  { %v6541_v18 = vsel %vm5973_vm8, %v6540_v60, %v6536_v20  ;;  %v6615_v29 = vsel %vm5966_vm7, %v6614_v23, %v6610_v58  ;;  %v7093_v30 = vrot.slane %v11129_v61, %v10559_v6  ;;  %v6545_v13 = vrot.slane %v12435_v22, %v10578_v33  ;;  %v12438_v61 = vld [vmem:[#allocation139_spill] sm:$0xff]  ;;  %v12439_v58 = vld [vmem:[#allocation6_spill] sm:$0xff] }
 0x478   :  { %v11491_v44 = vpop.permute.xlu1 %5761  ;;  %v5858_v45 = vpop.permute.xlu0 %5857  ;;  %v6620_v52 = vsel %vm5973_vm8, %v6619_v19, %v6615_v29  ;;  %v6629_v38 = vrot.slane %v12436_v8, %v10587_v10  ;;  %vm7211_vm1 = vcmask 1042434   ;;  %v7215_v51 = vsel %vm7209_vm0, %v6418_v16, %v11344_v14  ;;  %v12442_v20 = vld [vmem:[#allocation7_spill] sm:$0xff] }
 0x479   :  { %v6555_v35 = vrot.slane %v12437_v55, %v10592_v47  ;;  %v6624_v25 = vrot.slane %v12438_v61, %v10578_v33  ;;  %v7094_v56 = vsel %vm5973_vm8, %v7093_v30, %v7089_v26  ;;  %v7218_v21 = vsel %vm7209_vm0, %v6497_v12, %v11330_v39  ;;  %v12440_v12 = vld [vmem:[#allocation132_spill] sm:$0xff]  ;;  %v12443_v30 = vld [vmem:[#allocation134_spill] sm:$0xff] }
 0x47a   :  { %v6546_v37 = vsel %vm5980_vm9, %v6545_v13, %v6541_v18  ;;  %v7020_v11 = vsel %vm5980_vm9, %v7019_v3, %v10990_v48  ;;  %v7029_v60 = vrot.slane %v11277_v34, %v10592_v47  ;;  %v7099_v14 = vsel %vm5980_vm9, %v7098_v32, %v7094_v56  ;;  %v12441_v34 = vld [vmem:[#allocation150_spill] sm:$0xff]  ;;  %v12444_v13 = vld [vmem:[#allocation147_spill] sm:$0xff] }
 0x47b   :  { %v6551_v50 = vsel %vm5987_vm10, %v6550_v31, %v6546_v37  ;;  %v6625_v4 = vsel %vm5980_vm9, %v6624_v25, %v6620_v52  ;;  %v7024_v28 = vrot.slane %v11052_v17, %v10587_v10  ;;  %v7103_v39 = vrot.slane %v12439_v58, %v10587_v10 }
 0x47c   :  { %v5852_v9 = vpop.permute.xlu1 %5851  ;;  %v5861_v19 = vpop.permute.xlu0 %5860  ;;  %v6634_v48 = vrot.slane %v12440_v12, %v10592_v47  ;;  %v6630_v27 = vsel %vm5987_vm10, %v6629_v38, %v6625_v4  ;;  %v6639_v23 = vrot.slane %v12441_v34, %v10611_v49  ;;  %v6940_v3 = vrot.slane %v12442_v20, %v10578_v33  ;;  %v12448_v12 = vld [vmem:[#allocation143_spill] sm:$0xff] }
 0x47d   :  { %v7108_v16 = vrot.slane %v5852_v9, %v10592_v47  ;;  %v7025_v17 = vsel %vm5987_vm10, %v7024_v28, %v7020_v11  ;;  %v7113_v26 = vrot.slane %v11432_v5, %v10611_v49  ;;  %v7104_v32 = vsel %vm5987_vm10, %v7103_v39, %v7099_v14  ;;  %v12445_v11 = vld [vmem:[#allocation145_spill] sm:$0xff]  ;;  %v12446_v14 = vld [vmem:[#allocation142_spill] sm:$0xff]  ;;  %v12447_v9 = vld [vmem:[#allocation164_spill] sm:$0xff] }
 0x47e   :  { %v7030_v18 = vsel %vm5994_vm11, %v7029_v60, %v7025_v17  ;;  %v7039_v7 = vrot.slane %v11430_v63, %v10615_v0  ;;  %v7118_v31 = vrot.slane %v5858_v45, %v10615_v0  ;;  %v6644_v22 = vrot.slane %v12443_v30, %v10615_v0  ;;  %v12450_v20 = vld [vmem:[#allocation155_spill] sm:$0xff] }
 0x47f   :  { %v7109_v29 = vsel %vm5994_vm11, %v7108_v16, %v7104_v32  ;;  %v7034_v52 = vrot.slane %v12444_v13, %v10611_v49  ;;  %v7123_v5 = vrot.slane %v5861_v19, %v10628_v53  ;;  %v6635_v61 = vsel %vm5994_vm11, %v6634_v48, %v6630_v27 }
 0x480   :  { %v7114_v8 = vsel %vm6001_vm12, %v7113_v26, %v7109_v29  ;;  %v11542_v38 = vpop.permute.xlu1 %5716  ;;  %v5864_v55 = vpop.permute.xlu0 %5863  ;;  %vm7213_vm2 = vcmask 1043459   ;;  %v6640_v25 = vsel %vm6001_vm12, %v6639_v23, %v6635_v61  ;;  %v7219_v60 = vsel %vm7211_vm1, %v12445_v11, %v7218_v21  ;;  %v12449_v23 = vld [vmem:[#allocation131_spill] sm:$0xff]  ;;  %v12451_v26 = vld [vmem:[#allocation128_spill] sm:$0xff] }
 0x481   :  { %v7119_v63 = vsel %vm6008_vm13, %v7118_v31, %v7114_v8  ;;  %v7128_v45 = vrot.slane %v5864_v55, %v10639_v40  ;;  %v7035_v56 = vsel %vm6001_vm12, %v7034_v52, %v7030_v18  ;;  %v6941_v4 = vsel %vm5980_vm9, %v6940_v3, %v12446_v14  ;;  %v12453_v52 = vld [vmem:[#allocation161_spill] sm:$0xff]  ;;  %v12454_v61 = vld [vmem:[#allocation151_spill] sm:$0xff]  ;;  %v12458_v14 = vld [vmem:[#allocation130_spill] sm:$0xff] }
 0x482   :  { %v7124_v37 = vsel %vm6015_vm14, %v7123_v5, %v7119_v63  ;;  %v6950_v28 = vrot.slane %v11335_v62, %v10592_v47  ;;  %v7040_v58 = vsel %vm6008_vm13, %v7039_v7, %v7035_v56  ;;  %v6649_v19 = vrot.slane %v12447_v9, %v10628_v53 }
 0x483   :  { %v7129_v39 = vsel %vm6022_vm15, %v7128_v45, %v7124_v37  ;;  %v6945_v48 = vrot.slane %v12448_v12, %v10587_v10  ;;  %v7044_v27 = vrot.slane %v11337_v1, %v10628_v53  ;;  %v6565_v62 = vrot.slane %v12449_v23, %v10615_v0  ;;  %v12456_v37 = vld [vmem:[#allocation136_spill] sm:$0xff] }
 0x484   :  { %v5816_v21 = vpop.permute.xlu1 %5815  ;;  %v11565_v34 = vsel %vm7213_vm2, %v7129_v39, %v7219_v60  ;;  %v6556_v16 = vsel %vm5994_vm11, %v6555_v35, %v6551_v50  ;;  %v6866_v3 = vrot.slane %v12450_v20, %v10587_v10  ;;  %v6560_v32 = vrot.slane %v12451_v26, %v10611_v49  ;;  %v12452_v50 = vld [vmem:[#allocation141_spill] sm:$0xff]  ;;  %v12460_v20 = vld [vmem:[#allocation154_spill] sm:$0xff] }
 0x485   :  { %v7049_v17 = vrot.slane %v5816_v21, %v10639_v40  ;;  %v6645_v18 = vsel %vm6008_vm13, %v6644_v22, %v6640_v25  ;;  %v6946_v1 = vsel %vm5987_vm10, %v6945_v48, %v6941_v4  ;;  %v7045_v7 = vsel %vm6015_vm14, %v7044_v27, %v7040_v58  ;;  %v12459_v4 = vld [vmem:[#allocation158_spill] sm:$0xff] }
 0x486   :  { %v6951_v31 = vsel %vm5994_vm11, %v6950_v28, %v6946_v1  ;;  %v6960_v29 = vrot.slane %v11491_v44, %v10615_v0  ;;  %v7216_v30 = vsel %vm7211_vm1, %v12452_v50, %v7215_v51  ;;  %v6650_v13 = vsel %vm6015_vm14, %v6649_v19, %v6645_v18  ;;  %v12455_v44 = vld [vmem:[#allocation144_spill] sm:$0xff]  ;;  %v12461_v26 = vld [vmem:[#allocation146_spill] sm:$0xff] }
 0x487   :  { %v7050_v35 = vsel %vm6022_vm15, %v7049_v17, %v7045_v7  ;;  %v6955_v8 = vrot.slane %v12453_v52, %v10611_v49  ;;  %v7177_v22 = vrot.slane %v11304_v24, %v10578_v33  ;;  %v7172_v63 = vrot.slane %v12454_v61, %v10559_v6  ;;  %v12457_v33 = vld [vmem:[#allocation157_spill] sm:$0xff] }
 0x488   :  { %v5906_v5 = vpop.permute.xlu1 %5905  ;;  %v7217_v55 = vsel %vm7213_vm2, %v7050_v35, %v7216_v30  ;;  %v6867_v45 = vsel %vm5987_vm10, %v6866_v3, %v12455_v44  ;;  %v6876_v51 = vrot.slane %v11402_v2, %v10611_v49  ;;  %v6561_v56 = vsel %vm6001_vm12, %v6560_v32, %v6556_v16 }
 0x489   :  { %v7638_v25 = vcombine.low %v7217_v55, %v7217_v55  ;;  %v6654_v11 = vrot.slane %v12456_v37, %v10639_v40  ;;  %v6871_v24 = vrot.slane %v12457_v33, %v10592_v47  ;;  %v6956_v60 = vsel %vm6001_vm12, %v6955_v8, %v6951_v31 }
 0x48a   :  { %v6570_v6 = vrot.slane %v12458_v14, %v10628_v53  ;;  %v7173_v28 = vsel %vm5973_vm8, %v7172_v63, %v12459_v4  ;;  %v6961_v58 = vsel %vm6008_vm13, %v6960_v29, %v6956_v60  ;;  %v6965_v19 = vrot.slane %v11404_v36, %v10628_v53  ;;  %v7605_v14 = vld [vmem:[%s11670_s2] ss:$0 sm:$0xff] }
 0x48b   :  { %v7244_v2 = vpack.c.bf16 %v7638_v25, %v7638_v25  ;;  %v7178_v39 = vsel %vm5980_vm9, %v7177_v22, %v7173_v28  ;;  %v6872_v9 = vsel %vm5994_vm11, %v6871_v24, %v6867_v45  ;;  %v6655_v48 = vsel %vm6022_vm15, %v6654_v11, %v6650_v13  ;;  %v12463_v22 = vld [vmem:[#allocation73_spill] sm:$0xff] }
 0x48c   :  { %v5768_v12 = vpop.permute.xlu1 %5767  ;;  %v6877_v27 = vsel %vm6001_vm12, %v6876_v51, %v6872_v9  ;;  %v7187_v21 = vrot.slane %v11457_v59, %v10592_v47  ;;  %v6886_v23 = vrot.slane %v11542_v38, %v10628_v53  ;;  %v7182_v3 = vrot.slane %v12460_v20, %v10587_v10  ;;  %v12462_v47 = vld [vmem:[#allocation124_spill] sm:$0xff] }
 0x48d   :  { %v6970_v16 = vrot.slane %v5768_v12, %v10639_v40  ;;  %7542 = vmatprep.mubr.bf16.mxu0 %v7244_v2  ;;  %v6881_v36 = vrot.slane %v11306_v42, %v10615_v0  ;;  %v6966_v17 = vsel %vm6015_vm14, %v6965_v19, %v6961_v58  ;;  %v7210_v32 = vsel %vm7209_vm0, %v11472_v43, %v12461_v26 }
 0x48e   :  { %v6575_v59 = vrot.slane %v12462_v47, %v10639_v40  ;;  %v6566_v38 = vsel %vm6008_vm13, %v6565_v62, %v6561_v56  ;;  %v7212_v1 = vsel %vm7211_vm1, %v6655_v48, %v7210_v32  ;;  %v7183_v7 = vsel %vm5987_vm10, %v7182_v3, %v7178_v39 }
 0x48f   :  { %v6971_v18 = vsel %vm6022_vm15, %v6970_v16, %v6966_v17  ;;  %v6571_v10 = vsel %vm6015_vm14, %v6570_v6, %v6566_v38  ;;  %v6882_v42 = vsel %vm6008_vm13, %v6881_v36, %v6877_v27  ;;  %v7188_v43 = vsel %vm5994_vm11, %v7187_v21, %v7183_v7 }
 0x490   :  { %v7214_v31 = vsel %vm7213_vm2, %v6971_v18, %v7212_v1  ;;  %v5909_v29 = vpop.permute.xlu1 %5908  ;;  %v6887_v35 = vsel %vm6015_vm14, %v6886_v23, %v6882_v42  ;;  %v7197_v50 = vrot.slane %v5906_v5, %v10615_v0  ;;  %v6255_v30 = vsel %vm6015_vm14, %v6254_v54, %v11347_v15 }
 0x491   :  { %v7224_v62 = vcombine.low %v7214_v31, %v7217_v55  ;;  %v7192_v13 = vrot.slane %v11375_v46, %v10611_v49  ;;  %v6891_v52 = vrot.slane %v11459_v41, %v10639_v40  ;;  %v7202_v8 = vrot.slane %v5909_v29, %v10628_v53 }
 0x492   :  { %v6259_v61 = vrot.slane %v12463_v22, %v10639_v40  ;;  %v6576_v0 = vsel %vm6022_vm15, %v6575_v59, %v6571_v10 }
 0x493   :  { %v7243_v63 = vpack.c.bf16 %v7224_v62, %v7224_v62  ;;  %v7193_v5 = vsel %vm6001_vm12, %v7192_v13, %v7188_v43  ;;  %v6892_v57 = vsel %vm6022_vm15, %v6891_v52, %v6887_v35 }
 0x494   :  { %v5912_v55 = vpop.permute.xlu1 %5911  ;;  %v7198_v15 = vsel %vm6008_vm13, %v7197_v50, %v7193_v5  ;;  %v6260_v46 = vsel %vm6022_vm15, %v6259_v61, %v6255_v30 }
 0x495   :  { %v7207_v49 = vrot.slane %v5912_v55, %v10639_v40  ;;  %7543 = vmatmul.mubr.bf16.vlgmr.msra.gmra.mxu0 %v7243_v63  ;;  %v7203_v53 = vsel %vm6015_vm14, %v7202_v8, %v7198_v15  ;;  %v7221_v41 = vsel %vm7209_vm0, %v6576_v0, %v6260_v46 }
 0x496   :  { %v7222_v44 = vsel %vm7211_vm1, %v6892_v57, %v7221_v41 }
 0x497   :  { %v7208_v54 = vsel %vm6022_vm15, %v7207_v49, %v7203_v53 }
 0x498   :  { %v7223_v45 = vsel %vm7213_vm2, %v7208_v54, %v7222_v44 }
 0x499   :  { %v7225_v51 = vcombine.low %v11565_v34, %v7223_v45  ;;  %v7639_v25 = vcombine.low %v7223_v45, %v7223_v45 }
 0x49b   :  { %v7245_v56 = vpack.c.bf16 %v7225_v51, %v7225_v51  ;;  %v7246_v37 = vpack.c.bf16 %v7639_v25, %v7639_v25 }
 0x49d   :  { %7582 = vmatprep.mubr.bf16.mxu1 %v7246_v37 }
 0x49e   :  { %7583 = vmatmul.mubr.bf16.vlgmr.msra.gmra.mxu1 %v7245_v56 }
 0x555   :  { %v7656_v40 = vpop.f32.mrf.mxu0 }
 0x557   :  { %v7657_v11 = vpop.f32.mrf.mxu0 }
 0x558   :  { %v7658_v60 = vadd.f32 %v7657_v11, %v7656_v40 }
 0x559   :  { %v7659_v33 = vpop.f32.mrf.mxu0 }
 0x55a   :  { %v7545_v28 = vadd.f32 %v7658_v60, %v7605_v14 }
 0x55b   :  { %v7660_v24 = vpop.f32.mrf.mxu0 }
 0x55e   :  { %v7678_v6 = vpop.f32.mrf.mxu1 }
 0x560   :  { %v7679_v4 = vpop.f32.mrf.mxu1 }
 0x561   :  { %v7680_v34 = vadd.f32 %v7679_v4, %v7678_v6 }
 0x562   :  { %v7681_v58 = vpop.f32.mrf.mxu1 }
 0x563   :  { %v7585_v2 = vadd.f32 %v7680_v34, %v7545_v28 }
 0x564   :  { %v7682_v39 = vpop.f32.mrf.mxu1 }
 0x565   :  { %7590 = vst [vmem:[#allocation3] sm:$0xf] %v7585_v2 }
 0x566   :  { %7733 = shalt.err (!%p7730_p4)
}
 0x567   :  { %7600 = dma.vmem_to_hbm [thread:$0]  %s7598_s20, 64, %s11671_s3, [#allocation4]  }
 0x568   :  { %7742 = dma.done.wait [#allocation4], 64  }
 0x569   :  { %7743 = vsyncadd [#allocation4], 4294967232 }
 0x56a   :  { %7604 = vsyncpa [#allocation4], 1 }

</bundles_post_ra>
